<compile_context>
chip_gen: v7x
topology: tpu7x:2x2x1
jax: 0.10.0
libtpu: 0.0.40
codegen_flags: <defaults>
</compile_context>

<pallas_src>
import jax
import jax.numpy as jnp
from jax.experimental import pallas as pl
from jax.experimental.pallas import tpu as pltpu

_LANE_WIDTHS = (1024, 512, 256, 128)   # lane-dense widths (multiples of 128)
_MIN_PALLAS_ELEMENTS = 128 * 1024      # below this, fused XLA tanh already wins


def _chip_config():
    """Per-generation block size / VMEM limit / bf16-compute capability."""
    try:
        kind = jax.devices()[0].device_kind.lower()
    except Exception:  # pragma: no cover - defensive; fall back to conservative
        kind = ""
    if "v7" in kind:
        # 8 MiB blocks -> 32 MiB pipelined (in+out double-buffered); raise the
        # scoped-VMEM limit since the default (32 MiB) is exactly at budget.
        return {"block_bytes": 8 << 20, "vmem_limit": 48 << 20, "bf16_ok": True}
    if "v6" in kind:
        # 4 MiB blocks -> 16 MiB pipelined; fits the 32 MiB default limit.
        return {"block_bytes": 4 << 20, "vmem_limit": None, "bf16_ok": True}
    # v5e / unknown: 2 MiB blocks -> 8 MiB pipelined within the 16 MiB default
    # scoped VMEM; no bf16 VPU/EUP, so force f32 compute.
    return {"block_bytes": 2 << 20, "vmem_limit": None, "bf16_ok": False}


def _pick_lane(n):
    for lane in _LANE_WIDTHS:
        if n % lane == 0:
            return lane
    return None


def _make_kernel(compute_dtype):
    def _tanh_kx_kernel(k_ref, x_ref, o_ref):
        # One scalar load (SMEM) per grid step; scalar slot is otherwise idle.
        k = k_ref[0, 0].astype(compute_dtype)
        x = x_ref[...].astype(compute_dtype)
        o_ref[...] = jnp.tanh(k * x).astype(o_ref.dtype)
    return _tanh_kx_kernel


def _tanh_kx_2d(x2d, k_arr, out_dtype, compute_dtype, cfg):
    """Run the Pallas kernel on a lane-dense (rows, lane) view."""
    rows, lane = x2d.shape
    in_itemsize = jnp.dtype(x2d.dtype).itemsize
    out_itemsize = jnp.dtype(out_dtype).itemsize

    # Block rows sized so one block ~= cfg["block_bytes"]; rounded to 8 rows.
    block_rows = max(8, (cfg["block_bytes"] // (lane * in_itemsize)) // 8 * 8)
    if rows <= block_rows:
        block_rows = rows  # full-array block is allowed even if not 8-divisible
    grid_rows = pl.cdiv(rows, block_rows)

    n = rows * lane
    cost = pl.CostEstimate(
        flops=n,
        transcendentals=n,
        bytes_accessed=n * in_itemsize + n * out_itemsize,
    )
    # NOTE: "parallel" lets the runtime shard blocks across v7x's 2 TCs; if a
    # trace shows only one TC active, switch this axis to pltpu.CORE_PARALLEL.
    compiler_params = pltpu.CompilerParams(
        dimension_semantics=("parallel",),
        vmem_limit_bytes=cfg["vmem_limit"],
    )

    return pl.pallas_call(
        _make_kernel(compute_dtype),
        out_shape=jax.ShapeDtypeStruct((rows, lane), out_dtype),
        grid=(grid_rows,),
        in_specs=[
            pl.BlockSpec(memory_space=pltpu.MemorySpace.SMEM),    # k (scalar)
            pl.BlockSpec((block_rows, lane), lambda i: (i, 0)),   # x tile
        ],
        out_specs=pl.BlockSpec((block_rows, lane), lambda i: (i, 0)),
        compiler_params=compiler_params,
        cost_estimate=cost,
    )(k_arr, x2d)


def tanh_kx(x, k=1.0):
    """Pallas TPU implementation of Tanh_kx.forward: tanh(k * x)."""
    orig_shape = x.shape
    orig_dtype = x.dtype
    n = x.size

    if jnp.issubdtype(orig_dtype, jnp.floating):
        out_dtype = orig_dtype
    else:
        # torch promotes (python float k) * int tensor -> float before tanh.
        out_dtype = jnp.float32

    def _jnp_path(xx):
        kk = jnp.asarray(k, dtype=jnp.float32)
        return jnp.tanh(kk * xx.astype(jnp.float32)).astype(out_dtype)

    # Tiny / exotic-dtype inputs: XLA fusion is already optimal, avoid Pallas
    # launch + per-step overhead (and unsupported >4-byte dtypes).
    if (n == 0 or n < _MIN_PALLAS_ELEMENTS
            or jnp.dtype(orig_dtype).itemsize not in (2, 4)):
        return _jnp_path(x)

    cfg = _chip_config()
    compute_dtype = (jnp.bfloat16
                     if (cfg["bf16_ok"] and orig_dtype == jnp.bfloat16)
                     else jnp.float32)
    k_arr = jnp.asarray(k, dtype=jnp.float32).reshape(1, 1)
    flat = x.reshape(-1)

    lane = _pick_lane(n)
    if lane is not None:
        # Zero-copy: reshape of a contiguous flat array is free.
        out2d = _tanh_kx_2d(flat.reshape(n // lane, lane), k_arr,
                            out_dtype, compute_dtype, cfg)
        return out2d.reshape(orig_shape)

    # Ragged size: Pallas on the 128-aligned prefix, <128-element tail via jnp.
    aligned = (n // 128) * 128
    lane = _pick_lane(aligned)
    head = flat[:aligned]
    tail = flat[aligned:]
    out_head = _tanh_kx_2d(head.reshape(aligned // lane, lane), k_arr,
                           out_dtype, compute_dtype, cfg)
    out_tail = _jnp_path(tail)
    return jnp.concatenate([out_head.reshape(-1), out_tail]).reshape(orig_shape)


if __name__ == "__main__":
    k = 0.75
    key = jax.random.PRNGKey(0)
    k0, k1, k2, k3 = jax.random.split(key, 4)

    # 1) Small NCHW feature map consistent with the module: batch=2, channels=4,
    #    16x16. Below _MIN_PALLAS_ELEMENTS -> fused XLA path (by design).
    x = jax.random.normal(k0, (2, 4, 16, 16), dtype=jnp.float32)
    y = jax.block_until_ready(tanh_kx(x, k=k))
    assert y.shape == x.shape and y.dtype == x.dtype
    assert jnp.allclose(y, jnp.tanh(k * x), atol=1e-5, rtol=1e-5)

    # 2) Large f32 input (size % 1024 == 0) -> zero-copy lane-dense Pallas path
    #    with a multi-block pipelined grid.
    x_big = jax.random.normal(k1, (4, 4, 256, 257), dtype=jnp.float32)
    y_big = jax.block_until_ready(tanh_kx(x_big, k=k))
    assert y_big.shape == x_big.shape and y_big.dtype == x_big.dtype
    assert jnp.allclose(y_big, jnp.tanh(k * x_big), atol=1e-5, rtol=1e-5)

    # 3) bf16 input -> bf16 compute on v6e/v7x, f32 compute fallback on v5e.
    x_bf16 = jax.random.normal(k2, (8, 128, 256), dtype=jnp.bfloat16)
    y_bf16 = jax.block_until_ready(tanh_kx(x_bf16, k=k))
    assert y_bf16.shape == x_bf16.shape and y_bf16.dtype == jnp.bfloat16
    assert jnp.allclose(y_bf16.astype(jnp.float32),
                        jnp.tanh(k * x_bf16.astype(jnp.float32)),
                        atol=2e-2, rtol=2e-2)

    # 4) Truly ragged size (not a multiple of 128) -> aligned prefix + jnp tail.
    x_rag = jax.random.normal(k3, (257, 515), dtype=jnp.float32)
    y_rag = jax.block_until_ready(tanh_kx(x_rag, k=k))
    assert y_rag.shape == x_rag.shape and y_rag.dtype == x_rag.dtype
    assert jnp.allclose(y_rag, jnp.tanh(k * x_rag), atol=1e-5, rtol=1e-5)

    print("KERNEL_OK")
</pallas_src>

<mosaic_0001>
module attributes {stable_mosaic.version = 11 : i64} {
  func.func @_tanh_kx_kernel(%arg0: i32, %arg1: memref<1x1xf32, #tpu.memory_space<smem>>, %arg2: memref<512x1024xf32, #tpu.memory_space<vmem>>, %arg3: memref<512x1024xf32, #tpu.memory_space<vmem>>) attributes {dimension_semantics = [#tpu.dimension_semantics<parallel>], iteration_bounds = array<i64: 3>, scalar_prefetch = 0 : i64, scratch_operands = 0 : i64, tpu.core_type = #tpu.core_type<tc>, window_params = [{transform_indices = @transform_0, window_bounds = array<i64: 1, 1>}, {transform_indices = @transform_1, window_bounds = array<i64: 512, 1024>}, {transform_indices = @transform_2, window_bounds = array<i64: 512, 1024>}]} {
    %c0 = arith.constant 0 : index
    %c0_0 = arith.constant 0 : index
    %0 = memref.load %arg1[%c0, %c0_0] : memref<1x1xf32, #tpu.memory_space<smem>>
    %c0_1 = arith.constant 0 : index
    %c0_2 = arith.constant 0 : index
    %1 = vector.load %arg2[%c0_1, %c0_2] : memref<512x1024xf32, #tpu.memory_space<vmem>>, vector<512x1024xf32>
    %2 = vector.broadcast %0 : f32 to vector<512x1024xf32>
    %3 = arith.mulf %2, %1 : vector<512x1024xf32>
    %4 = math.tanh %3 : vector<512x1024xf32>
    %c0_3 = arith.constant 0 : index
    %c0_4 = arith.constant 0 : index
    %5 = vector.load %arg3[%c0_3, %c0_4] : memref<512x1024xf32, #tpu.memory_space<vmem>>, vector<512x1024xf32>
    tpu.vector_store %arg3[%c0_3, %c0_4], %4 {strides = array<i32>} : memref<512x1024xf32, #tpu.memory_space<vmem>>, vector<512x1024xf32>,
    return
  }
  func.func @transform_0(%arg0: i32) -> (i32, i32) {
    %c0_i32 = arith.constant 0 : i32
    %c0_i32_0 = arith.constant 0 : i32
    %c0_i32_1 = arith.constant 0 : i32
    return %c0_i32, %c0_i32_0 : i32, i32
  }
  func.func @transform_1(%arg0: i32) -> (i32, i32) {
    %c0_i32 = arith.constant 0 : i32
    %c0_i32_0 = arith.constant 0 : i32
    return %arg0, %c0_i32 : i32, i32
  }
  func.func @transform_2(%arg0: i32) -> (i32, i32) {
    %c0_i32 = arith.constant 0 : i32
    %c0_i32_0 = arith.constant 0 : i32
    return %arg0, %c0_i32 : i32, i32
  }
}

</mosaic_0001>

<bundles_post_ra>
// kernel: tpu_custom_call.1
= control target key start
LH: loop header
LB: loop body
LE: loop exit
PB: predicated region body
PF: predicated region fallthrough
CT: control target
= control target key end

     0   :  { %s5261_s0 = inlined_call_operand.<no memory space> [shape: f32[1,1], index: 0, kind: input, shape index: {}]   ;;  %s5262_s1 = inlined_call_operand.hbm [shape: f32[1028,1024], index: 1, kind: input, shape index: {}]   ;;  %s5263_s2 = inlined_call_operand.hbm [shape: f32[1028,1024], index: 2, kind: output, shape index: {}]  }
   0x1   :  { %7 = sst [smem:[#allocation2]] %s5261_s0 }
   0x2   :  { %8 = vsyncpa [#allocation4], 0 }
   0x3   :  { %10 = vsyncpa [#allocation4 + $0x1], 0 }
   0x4   :  { %11 = vsyncpa [#allocation5], 0 }
   0x5   :  { %13 = vsyncpa [#allocation5 + $0x1], 0  ;;  %s3547_s11 = smov 0   ;;  %s3549_s12 = smov 0  }
   0x6   :  { %s3551_s13 = smov 0   ;;  %s3553_s14 = smov 0  }
   0x7 LB: > { %s3568_s0 = sadd.s32 4294967295, %s3521_s14   ;;  %s2328_s15 = sadd.s32 4294967294, %s3521_s14   ;;  %s3521_s14 = sphi %s3553_s14, %s5271_s14   ;;  %s3517_s13 = sphi %s3551_s13, %s5270_s13   ;;  %s3513_s12 = sphi %s3549_s12, %s5269_s12   ;;  %s3509_s11 = sphi %s3547_s11, %s5268_s11  }
   0x8   : > { %s3572_s16 = sadd.s32 1, %s3521_s14   ;;  %s47_s17 = sadd.s32 1, %s3517_s13 }
   0x9   : > { %s44_s18 = ssub.s32 %s3521_s14, %s3572_s16  ;;  %p54_p0 = scmp.ne.s32.totalorder %s3517_s13, %s3513_s12 }
   0xa   : > { %p45_p1 = scmp.eq.s32.totalorder %s44_s18, 0  ;;  %p55_p2 = scmp.eq.s32.totalorder %s3521_s14, 0 }
   0xb   : > { %p60_p3 = scmp.ne.s32.totalorder %s3513_s12, %s3509_s11  ;;  %p61_p4 = scmp.eq.s32.totalorder %s3568_s0, 0 }
   0xc   : > { %s3584_s19 = scalar_select %p45_p1, %s3517_s13, %s47_s17  }
   0xd   : > { %p56_p5 = por %p55_p2, %p54_p0  ;;  %p3586_p6 = por %p61_p4, %p60_p3 }
   0xe   : > { %p84_p7 = scmp.eq.s32.totalorder %s3568_s0, 2  ;;  %p90_p8 = scmp.eq.s32.totalorder %s2328_s15, 2 }
   0xf   : > { %p2330_p11 = scmp.ge.s32.totalorder %s3521_s14, 3 }
  0x10   : > { %p3591_p9 = por %p84_p7, %p54_p0  ;;  %p3595_p10 = por %p90_p8, %p60_p3 }
  0x11   : > { %109 = sbr.rel (%p2330_p11) target bundleno = 59 (0x3b), region = 20 }
  0x12   : > { %s5266_s22 = scalar_select %p3595_p10, 1, 0 }
  0x18   : > { %112 = sbr.rel (!%p56_p5) target bundleno = 59 (0x3b), region = 24  ;;  %s113_s23 = sand.u32 (%p56_p5), 1, %s3517_s13  }
  0x19   : > { %s2332_s24 = sshll.u32 (%p56_p5), %s3521_s14, 6  ;;  %s2331_s25 = sshll.u32 (%p56_p5), %s113_s23, 12 }
  0x1a   : > { %s119_s26 = ssub.s32 (%p56_p5), 129, %s2332_s24  ;;  %s3605_s29 = scalar_lea.sflag (%p56_p5), [#allocation4], %s113_s23 }
  0x1b   : > { %p120_p12 = scmp.lt.s32.totalorder (%p56_p5), %s119_s26, 64  ;;  %s117_s30 = scalar_lea.vmem (%p56_p5), [#allocation3], %s2331_s25 }
  0x1f   : > { %s5273_s26 = smov (!%p120_p12, %s119_s26), 64 }
  0x20   : > { %s3602_s27 = sshll.u32 %s5273_s26, 10 }
  0x21   : > { %s125_s28 = ssub.s32 65536, %s3602_s27 }
  0x22   : > { %126 = vsyncadd %s3605_s29, %s125_s28  ;;  %p2335_p13 = scmp.ne.s32.totalorder %s3602_s27, 0  ;;  %s2356_s3 = sshll.u32 %s3521_s14, 16 }
  0x23   : > { %s3613_s6 = scalar_lea.hbm %s5262_s1, %s2356_s3  ;;  %s132_s7 = sshll.u32 %s117_s30, 4  ;;  %s3615_s7 = int_to_ptr.vmem [resolvable:$true] %s132_s7 }
  0x24   : > { %s3427_s8 = scalar_lea.hbm %s3613_s6, %s3602_s27  ;;  %s3431_s15 = scalar_lea.hbm %s5262_s1, 132096 }
  0x25   : > { %p3428_p0 = scmp.ne.s32.totalorder %s3613_s6, %s3427_s8  ;;  %p3432_p3 = scmp.lt.u32.totalorder %s3613_s6, %s5262_s1 }
  0x26   : > { %p3433_p4 = scmp.lt.u32.totalorder %s3431_s15, %s3427_s8  ;;  %p3435_p7 = scmp.lt.u32.totalorder %s3427_s8, %s3613_s6 }
  0x27   : > { %p3429_p1 = pnand %p3428_p0, %p2335_p13 }
  0x28   : > { %p3434_p5 = por %p3433_p4, %p3432_p3 }
  0x29   : > { %p3430_p2 = pneg %p3429_p1 }
  0x2a   : > { %p3436_p8 = por %p3435_p7, %p3434_p5 }
  0x2c   : > { %p3437_p11 = pnand %p3436_p8, %p3430_p2 }
  0x2e   : > { %3440 = shalt.err (!%p3437_p11)
}
  0x2f   : > { %s3441_s23 = scalar_lea.vmem %s3615_s7, %s3602_s27  ;;  %s3523_s24 = smov [#allocation3]  }
  0x30   : > { %p3442_p12 = scmp.ne.s32.totalorder %s3615_s7, %s3441_s23  ;;  %s3445_s25 = sshll.u32 %s3523_s24, 4  ;;  %s3446_s25 = int_to_ptr.vmem [resolvable:$false] %s3445_s25 }
  0x31   : > { %s3447_s26 = scalar_lea.vmem %s3446_s25, 131072  ;;  %p3448_p10 = scmp.lt.s32.totalorder %s3615_s7, %s3446_s25 }
  0x32   : > { %p3443_p0 = pnand %p3442_p12, %p2335_p13  ;;  %p3449_p3 = scmp.lt.s32.totalorder %s3447_s26, %s3441_s23 }
  0x34   : > { %p3444_p1 = pneg %p3443_p0  ;;  %p3450_p4 = por %p3449_p3, %p3448_p10 }
  0x36   : > { %p3451_p5 = pnand %p3450_p4, %p3444_p1 }
  0x38   : > { %3454 = shalt.err (!%p3451_p5)
}
  0x39   : > { %s3524_s28 = smov 1024   ;;  %s3525_s30 = smov 64  }
  0x3a   : > { %138 = dma.hbm_to_vmem [thread:$0]  (%p2335_p13), %s3613_s6, %s3602_s27, %s3615_s7, %s3605_s29, %s3524_s28, %s3524_s28, %s3525_s30  }
  0x3b PF: > { %p2340_p2 = scmp.ge.s32.totalorder %s3521_s14, 1  ;;  %p140_p7 = scmp.lt.s32.totalorder %s3521_s14, 4 }
  0x3d   : > { %p141_p8 = pnand %p2340_p2, %p140_p7 }
  0x3e   : > { %s3645_s3 = sand.u32 (!%p141_p8), 1, %s3513_s12  }
  0x3f   : > { %144 = sbr.rel (%p141_p8) target bundleno = 631 (0x277), region = 28  ;;  %s2341_s4 = sshll.u32 (!%p141_p8), %s3645_s3, 12 }
  0x40   : > { %s147_s5 = scalar_lea.sflag (!%p141_p8), [#allocation4], %s3645_s3  ;;  %s3651_s8 = scalar_lea.vmem (!%p141_p8), [#allocation3], %s2341_s4 }
  0x46   : > { %3500 = dma.done.wait (%p3586_p6), %s147_s5, 65536  }
  0x47   : > { %3502 = vsyncadd (%p3586_p6), %s147_s5, 4294901760  ;;  %s183_s27 = sld [smem:[#allocation2]]  ;;  %v184_v0 = vld [vmem:[%s3651_s8] sm:$0xff]  ;;  %v185_v2 = vld [vmem:[%s3651_s8 + $0x8] sm:$0xff]  ;;  %s3694_s20 = scalar_lea.vmem [#allocation6], %s2341_s4 }
  0x48   : > { %v186_v3 = vld [vmem:[%s3651_s8 + $0x10] sm:$0xff]  ;;  %v187_v7 = vld [vmem:[%s3651_s8 + $0x18] sm:$0xff]  ;;  %v188_v8 = vld [vmem:[%s3651_s8 + $0x20] sm:$0xff]  ;;  %s2234_s29 = scalar_lea.sflag [#allocation5], %s3645_s3  ;;  %s2344_s6 = sshll.u32 (%p3591_p9), %s3568_s0, 6 }
  0x49   : > { %v189_v9 = vld [vmem:[%s3651_s8 + $0x28] sm:$0xff]  ;;  %v190_v11 = vld [vmem:[%s3651_s8 + $0x30] sm:$0xff]  ;;  %v191_v13 = vld [vmem:[%s3651_s8 + $0x38] sm:$0xff]  ;;  %s2242_s7 = ssub.s32 (%p3591_p9), 129, %s2344_s6 }
  0x4a   : > { %v192_v15 = vld [vmem:[%s3651_s8 + $0x40] sm:$0xff]  ;;  %v193_v17 = vld [vmem:[%s3651_s8 + $0x48] sm:$0xff]  ;;  %v194_v19 = vld [vmem:[%s3651_s8 + $0x50] sm:$0xff]  ;;  %p2243_p6 = scmp.lt.s32.totalorder (%p3591_p9), %s2242_s7, 64 }
  0x4b   : > { %v195_v21 = vld [vmem:[%s3651_s8 + $0x58] sm:$0xff]  ;;  %v196_v23 = vld [vmem:[%s3651_s8 + $0x60] sm:$0xff]  ;;  %v197_v25 = vld [vmem:[%s3651_s8 + $0x68] sm:$0xff] }
  0x4c   : > { %v198_v27 = vld [vmem:[%s3651_s8 + $0x70] sm:$0xff]  ;;  %v199_v29 = vld [vmem:[%s3651_s8 + $0x78] sm:$0xff]  ;;  %v200_v31 = vld [vmem:[%s3651_s8 + $0x80] sm:$0xff] }
  0x4d   : > { %v3658_v1 = vstv %s183_s27  ;;  %v201_v34 = vld [vmem:[%s3651_s8 + $0x88] sm:$0xff]  ;;  %v202_v37 = vld [vmem:[%s3651_s8 + $0x90] sm:$0xff]  ;;  %v203_v40 = vld [vmem:[%s3651_s8 + $0x98] sm:$0xff] }
  0x4e   : > { %v697_v4 = vmul.f32 %v3658_v1, %v184_v0  ;;  %v698_v5 = vmul.f32 %v3658_v1, %v185_v2  ;;  %v699_v6 = vmul.f32 %v3658_v1, %v186_v3  ;;  %v700_v10 = vmul.f32 %v3658_v1, %v187_v7  ;;  %v204_v43 = vld [vmem:[%s3651_s8 + $0xa0] sm:$0xff]  ;;  %v205_v46 = vld [vmem:[%s3651_s8 + $0xa8] sm:$0xff]  ;;  %v206_v49 = vld [vmem:[%s3651_s8 + $0xb0] sm:$0xff] }
  0x4f   : > { %v701_v12 = vmul.f32 %v3658_v1, %v188_v8  ;;  %v702_v14 = vmul.f32 %v3658_v1, %v189_v9  ;;  %v703_v16 = vmul.f32 %v3658_v1, %v190_v11  ;;  %v704_v18 = vmul.f32 %v3658_v1, %v191_v13  ;;  %v207_v52 = vld [vmem:[%s3651_s8 + $0xb8] sm:$0xff]  ;;  %v208_v55 = vld [vmem:[%s3651_s8 + $0xc0] sm:$0xff]  ;;  %v209_v58 = vld [vmem:[%s3651_s8 + $0xc8] sm:$0xff] }
  0x50   : > { %2403 = vtanh.f32 %v697_v4  ;;  %v705_v20 = vmul.f32 %v3658_v1, %v192_v15  ;;  %v706_v22 = vmul.f32 %v3658_v1, %v193_v17  ;;  %v707_v24 = vmul.f32 %v3658_v1, %v194_v19  ;;  %v210_v61 = vld [vmem:[%s3651_s8 + $0xd0] sm:$0xff]  ;;  %v211_v0 = vld [vmem:[%s3651_s8 + $0xd8] sm:$0xff]  ;;  %v212_v4 = vld [vmem:[%s3651_s8 + $0xe0] sm:$0xff] }
  0x51   : > { %2405 = vtanh.f32 %v698_v5  ;;  %v708_v26 = vmul.f32 %v3658_v1, %v195_v21  ;;  %v709_v28 = vmul.f32 %v3658_v1, %v196_v23  ;;  %v710_v30 = vmul.f32 %v3658_v1, %v197_v25  ;;  %v213_v7 = vld [vmem:[%s3651_s8 + $0xe8] sm:$0xff]  ;;  %v215_v13 = vld [vmem:[%s3651_s8 + $0xf8] sm:$0xff] }
  0x52   : > { %2407 = vtanh.f32 %v699_v6  ;;  %v711_v33 = vmul.f32 %v3658_v1, %v198_v27  ;;  %v712_v36 = vmul.f32 %v3658_v1, %v199_v29  ;;  %v713_v39 = vmul.f32 %v3658_v1, %v200_v31  ;;  %v217_v19 = vld [vmem:[%s3651_s8 + $0x108] sm:$0xff]  ;;  %v219_v25 = vld [vmem:[%s3651_s8 + $0x118] sm:$0xff] }
  0x53   : > { %2409 = vtanh.f32 %v700_v10  ;;  %v714_v42 = vmul.f32 %v3658_v1, %v201_v34  ;;  %v715_v45 = vmul.f32 %v3658_v1, %v202_v37  ;;  %v716_v48 = vmul.f32 %v3658_v1, %v203_v40  ;;  %v214_v10 = vld [vmem:[%s3651_s8 + $0xf0] sm:$0xff]  ;;  %v221_v31 = vld [vmem:[%s3651_s8 + $0x128] sm:$0xff]  ;;  %v223_v37 = vld [vmem:[%s3651_s8 + $0x138] sm:$0xff] }
  0x54   : > { %2411 = vtanh.f32 %v701_v12  ;;  %v717_v51 = vmul.f32 %v3658_v1, %v204_v43  ;;  %v718_v54 = vmul.f32 %v3658_v1, %v205_v46  ;;  %v719_v57 = vmul.f32 %v3658_v1, %v206_v49  ;;  %v222_v34 = vld [vmem:[%s3651_s8 + $0x130] sm:$0xff]  ;;  %v224_v40 = vld [vmem:[%s3651_s8 + $0x140] sm:$0xff]  ;;  %v225_v43 = vld [vmem:[%s3651_s8 + $0x148] sm:$0xff] }
  0x55   : > { %2413 = vtanh.f32 %v702_v14  ;;  %v720_v60 = vmul.f32 %v3658_v1, %v207_v52  ;;  %v721_v63 = vmul.f32 %v3658_v1, %v208_v55  ;;  %v722_v3 = vmul.f32 %v3658_v1, %v209_v58  ;;  %v226_v46 = vld [vmem:[%s3651_s8 + $0x150] sm:$0xff]  ;;  %v227_v49 = vld [vmem:[%s3651_s8 + $0x158] sm:$0xff]  ;;  %v228_v52 = vld [vmem:[%s3651_s8 + $0x160] sm:$0xff] }
  0x56   : > { %2415 = vtanh.f32 %v703_v16  ;;  %v723_v6 = vmul.f32 %v3658_v1, %v210_v61  ;;  %v724_v9 = vmul.f32 %v3658_v1, %v211_v0  ;;  %v725_v12 = vmul.f32 %v3658_v1, %v212_v4  ;;  %v216_v16 = vld [vmem:[%s3651_s8 + $0x100] sm:$0xff]  ;;  %v229_v55 = vld [vmem:[%s3651_s8 + $0x168] sm:$0xff]  ;;  %v230_v58 = vld [vmem:[%s3651_s8 + $0x170] sm:$0xff] }
  0x57   : > { %2417 = vtanh.f32 %v704_v18  ;;  %v726_v15 = vmul.f32 %v3658_v1, %v213_v7  ;;  %v727_v18 = vmul.f32 %v3658_v1, %v214_v10  ;;  %v728_v21 = vmul.f32 %v3658_v1, %v215_v13  ;;  %v231_v61 = vld [vmem:[%s3651_s8 + $0x178] sm:$0xff]  ;;  %v232_v0 = vld [vmem:[%s3651_s8 + $0x180] sm:$0xff]  ;;  %v233_v4 = vld [vmem:[%s3651_s8 + $0x188] sm:$0xff] }
  0x58   : > { %2419 = vtanh.f32 %v705_v20  ;;  %v730_v27 = vmul.f32 %v3658_v1, %v217_v19  ;;  %v234_v7 = vld [vmem:[%s3651_s8 + $0x190] sm:$0xff]  ;;  %v235_v10 = vld [vmem:[%s3651_s8 + $0x198] sm:$0xff]  ;;  %v236_v13 = vld [vmem:[%s3651_s8 + $0x1a0] sm:$0xff] }
  0x59   : > { %2421 = vtanh.f32 %v706_v22  ;;  %v218_v22 = vld [vmem:[%s3651_s8 + $0x110] sm:$0xff] }
  0x5a   : > { %v2404_v32 = vpop.eup %2403  ;;  %2423 = vtanh.f32 %v707_v24  ;;  %v729_v24 = vmul.f32 %v3658_v1, %v216_v16  ;;  %v237_v16 = vld [vmem:[%s3651_s8 + $0x1a8] sm:$0xff]  ;;  %v238_v19 = vld [vmem:[%s3651_s8 + $0x1b0] sm:$0xff] }
  0x5b   : > { %v2406_v35 = vpop.eup %2405  ;;  %1721 = vst [vmem:[%s3694_s20] sm:$0xff] %v2404_v32  ;;  %2425 = vtanh.f32 %v708_v26 }
  0x5c   : > { %v2408_v38 = vpop.eup %2407  ;;  %1722 = vst [vmem:[%s3694_s20 + $0x8] sm:$0xff] %v2406_v35  ;;  %2427 = vtanh.f32 %v709_v28  ;;  %v220_v28 = vld [vmem:[%s3651_s8 + $0x120] sm:$0xff] }
  0x5d   : > { %v2410_v41 = vpop.eup %2409  ;;  %1723 = vst [vmem:[%s3694_s20 + $0x10] sm:$0xff] %v2408_v38  ;;  %2429 = vtanh.f32 %v710_v30  ;;  %v731_v30 = vmul.f32 %v3658_v1, %v218_v22  ;;  %v239_v22 = vld [vmem:[%s3651_s8 + $0x1b8] sm:$0xff] }
  0x5e   : > { %v2412_v44 = vpop.eup %2411  ;;  %1724 = vst [vmem:[%s3694_s20 + $0x18] sm:$0xff] %v2410_v41  ;;  %2431 = vtanh.f32 %v711_v33  ;;  %v732_v33 = vmul.f32 %v3658_v1, %v219_v25  ;;  %v240_v25 = vld [vmem:[%s3651_s8 + $0x1c0] sm:$0xff] }
  0x5f   : > { %v2414_v47 = vpop.eup %2413  ;;  %1725 = vst [vmem:[%s3694_s20 + $0x20] sm:$0xff] %v2412_v44  ;;  %2433 = vtanh.f32 %v712_v36  ;;  %v733_v36 = vmul.f32 %v3658_v1, %v220_v28  ;;  %v241_v28 = vld [vmem:[%s3651_s8 + $0x1c8] sm:$0xff] }
  0x60   : > { %v2416_v50 = vpop.eup %2415  ;;  %1726 = vst [vmem:[%s3694_s20 + $0x28] sm:$0xff] %v2414_v47  ;;  %2435 = vtanh.f32 %v713_v39  ;;  %v734_v39 = vmul.f32 %v3658_v1, %v221_v31  ;;  %v242_v31 = vld [vmem:[%s3651_s8 + $0x1d0] sm:$0xff] }
  0x61   : > { %v2418_v53 = vpop.eup %2417  ;;  %1727 = vst [vmem:[%s3694_s20 + $0x30] sm:$0xff] %v2416_v50  ;;  %2437 = vtanh.f32 %v714_v42  ;;  %v735_v42 = vmul.f32 %v3658_v1, %v222_v34  ;;  %v243_v34 = vld [vmem:[%s3651_s8 + $0x1d8] sm:$0xff] }
  0x62   : > { %v2420_v56 = vpop.eup %2419  ;;  %1728 = vst [vmem:[%s3694_s20 + $0x38] sm:$0xff] %v2418_v53  ;;  %2439 = vtanh.f32 %v715_v45  ;;  %v736_v45 = vmul.f32 %v3658_v1, %v223_v37  ;;  %v244_v37 = vld [vmem:[%s3651_s8 + $0x1e0] sm:$0xff] }
  0x63   : > { %v2422_v59 = vpop.eup %2421  ;;  %1729 = vst [vmem:[%s3694_s20 + $0x40] sm:$0xff] %v2420_v56  ;;  %2441 = vtanh.f32 %v716_v48  ;;  %v737_v48 = vmul.f32 %v3658_v1, %v224_v40  ;;  %v245_v40 = vld [vmem:[%s3651_s8 + $0x1e8] sm:$0xff] }
  0x64   : > { %v2424_v62 = vpop.eup %2423  ;;  %1730 = vst [vmem:[%s3694_s20 + $0x48] sm:$0xff] %v2422_v59  ;;  %2443 = vtanh.f32 %v717_v51  ;;  %v738_v51 = vmul.f32 %v3658_v1, %v225_v43  ;;  %v246_v43 = vld [vmem:[%s3651_s8 + $0x1f0] sm:$0xff] }
  0x65   : > { %v2426_v2 = vpop.eup %2425  ;;  %1731 = vst [vmem:[%s3694_s20 + $0x50] sm:$0xff] %v2424_v62  ;;  %2445 = vtanh.f32 %v718_v54  ;;  %v739_v54 = vmul.f32 %v3658_v1, %v226_v46  ;;  %v247_v46 = vld [vmem:[%s3651_s8 + $0x1f8] sm:$0xff] }
  0x66   : > { %v2428_v5 = vpop.eup %2427  ;;  %1732 = vst [vmem:[%s3694_s20 + $0x58] sm:$0xff] %v2426_v2  ;;  %2447 = vtanh.f32 %v719_v57  ;;  %v740_v57 = vmul.f32 %v3658_v1, %v227_v49  ;;  %v248_v49 = vld [vmem:[%s3651_s8 + $0x200] sm:$0xff] }
  0x67   : > { %v2430_v8 = vpop.eup %2429  ;;  %1733 = vst [vmem:[%s3694_s20 + $0x60] sm:$0xff] %v2428_v5  ;;  %2449 = vtanh.f32 %v720_v60  ;;  %v741_v60 = vmul.f32 %v3658_v1, %v228_v52  ;;  %v249_v52 = vld [vmem:[%s3651_s8 + $0x208] sm:$0xff] }
  0x68   : > { %v2432_v11 = vpop.eup %2431  ;;  %1734 = vst [vmem:[%s3694_s20 + $0x68] sm:$0xff] %v2430_v8  ;;  %2451 = vtanh.f32 %v721_v63  ;;  %v742_v63 = vmul.f32 %v3658_v1, %v229_v55  ;;  %v250_v55 = vld [vmem:[%s3651_s8 + $0x210] sm:$0xff] }
  0x69   : > { %v2434_v14 = vpop.eup %2433  ;;  %1735 = vst [vmem:[%s3694_s20 + $0x70] sm:$0xff] %v2432_v11  ;;  %2453 = vtanh.f32 %v722_v3  ;;  %v743_v3 = vmul.f32 %v3658_v1, %v230_v58  ;;  %v251_v58 = vld [vmem:[%s3651_s8 + $0x218] sm:$0xff] }
  0x6a   : > { %v2436_v17 = vpop.eup %2435  ;;  %1736 = vst [vmem:[%s3694_s20 + $0x78] sm:$0xff] %v2434_v14  ;;  %2455 = vtanh.f32 %v723_v6  ;;  %v744_v6 = vmul.f32 %v3658_v1, %v231_v61  ;;  %v252_v61 = vld [vmem:[%s3651_s8 + $0x220] sm:$0xff] }
  0x6b   : > { %v2438_v20 = vpop.eup %2437  ;;  %1737 = vst [vmem:[%s3694_s20 + $0x80] sm:$0xff] %v2436_v17  ;;  %2457 = vtanh.f32 %v724_v9  ;;  %v745_v9 = vmul.f32 %v3658_v1, %v232_v0  ;;  %v253_v0 = vld [vmem:[%s3651_s8 + $0x228] sm:$0xff] }
  0x6c   : > { %v2440_v23 = vpop.eup %2439  ;;  %1738 = vst [vmem:[%s3694_s20 + $0x88] sm:$0xff] %v2438_v20  ;;  %2459 = vtanh.f32 %v725_v12  ;;  %v746_v12 = vmul.f32 %v3658_v1, %v233_v4  ;;  %v254_v4 = vld [vmem:[%s3651_s8 + $0x230] sm:$0xff] }
  0x6d   : > { %v2442_v26 = vpop.eup %2441  ;;  %1739 = vst [vmem:[%s3694_s20 + $0x90] sm:$0xff] %v2440_v23  ;;  %2461 = vtanh.f32 %v726_v15  ;;  %v747_v15 = vmul.f32 %v3658_v1, %v234_v7  ;;  %v255_v7 = vld [vmem:[%s3651_s8 + $0x238] sm:$0xff] }
  0x6e   : > { %v2444_v29 = vpop.eup %2443  ;;  %1740 = vst [vmem:[%s3694_s20 + $0x98] sm:$0xff] %v2442_v26  ;;  %2463 = vtanh.f32 %v727_v18  ;;  %v748_v18 = vmul.f32 %v3658_v1, %v235_v10  ;;  %v256_v10 = vld [vmem:[%s3651_s8 + $0x240] sm:$0xff] }
  0x6f   : > { %v2446_v32 = vpop.eup %2445  ;;  %1741 = vst [vmem:[%s3694_s20 + $0xa0] sm:$0xff] %v2444_v29  ;;  %2465 = vtanh.f32 %v728_v21  ;;  %v749_v21 = vmul.f32 %v3658_v1, %v236_v13  ;;  %v257_v13 = vld [vmem:[%s3651_s8 + $0x248] sm:$0xff] }
  0x70   : > { %v2448_v35 = vpop.eup %2447  ;;  %1742 = vst [vmem:[%s3694_s20 + $0xa8] sm:$0xff] %v2446_v32  ;;  %2467 = vtanh.f32 %v729_v24  ;;  %v750_v24 = vmul.f32 %v3658_v1, %v237_v16  ;;  %v258_v16 = vld [vmem:[%s3651_s8 + $0x250] sm:$0xff] }
  0x71   : > { %v2450_v38 = vpop.eup %2449  ;;  %1743 = vst [vmem:[%s3694_s20 + $0xb0] sm:$0xff] %v2448_v35  ;;  %2469 = vtanh.f32 %v730_v27  ;;  %v751_v27 = vmul.f32 %v3658_v1, %v238_v19  ;;  %v259_v19 = vld [vmem:[%s3651_s8 + $0x258] sm:$0xff] }
  0x72   : > { %v2452_v41 = vpop.eup %2451  ;;  %1744 = vst [vmem:[%s3694_s20 + $0xb8] sm:$0xff] %v2450_v38  ;;  %2471 = vtanh.f32 %v731_v30  ;;  %v752_v30 = vmul.f32 %v3658_v1, %v239_v22  ;;  %v260_v22 = vld [vmem:[%s3651_s8 + $0x260] sm:$0xff] }
  0x73   : > { %v2454_v44 = vpop.eup %2453  ;;  %1745 = vst [vmem:[%s3694_s20 + $0xc0] sm:$0xff] %v2452_v41  ;;  %2473 = vtanh.f32 %v732_v33  ;;  %v753_v33 = vmul.f32 %v3658_v1, %v240_v25  ;;  %v261_v25 = vld [vmem:[%s3651_s8 + $0x268] sm:$0xff] }
  0x74   : > { %v2456_v47 = vpop.eup %2455  ;;  %1746 = vst [vmem:[%s3694_s20 + $0xc8] sm:$0xff] %v2454_v44  ;;  %2475 = vtanh.f32 %v733_v36  ;;  %v754_v36 = vmul.f32 %v3658_v1, %v241_v28  ;;  %v262_v28 = vld [vmem:[%s3651_s8 + $0x270] sm:$0xff] }
  0x75   : > { %v2458_v50 = vpop.eup %2457  ;;  %1747 = vst [vmem:[%s3694_s20 + $0xd0] sm:$0xff] %v2456_v47  ;;  %2477 = vtanh.f32 %v734_v39  ;;  %v755_v39 = vmul.f32 %v3658_v1, %v242_v31  ;;  %v263_v31 = vld [vmem:[%s3651_s8 + $0x278] sm:$0xff] }
  0x76   : > { %v2460_v53 = vpop.eup %2459  ;;  %1748 = vst [vmem:[%s3694_s20 + $0xd8] sm:$0xff] %v2458_v50  ;;  %2479 = vtanh.f32 %v735_v42  ;;  %v756_v42 = vmul.f32 %v3658_v1, %v243_v34  ;;  %v264_v34 = vld [vmem:[%s3651_s8 + $0x280] sm:$0xff] }
  0x77   : > { %v2462_v56 = vpop.eup %2461  ;;  %1749 = vst [vmem:[%s3694_s20 + $0xe0] sm:$0xff] %v2460_v53  ;;  %2481 = vtanh.f32 %v736_v45  ;;  %v757_v45 = vmul.f32 %v3658_v1, %v244_v37  ;;  %v265_v37 = vld [vmem:[%s3651_s8 + $0x288] sm:$0xff] }
  0x78   : > { %v2464_v59 = vpop.eup %2463  ;;  %1750 = vst [vmem:[%s3694_s20 + $0xe8] sm:$0xff] %v2462_v56  ;;  %2483 = vtanh.f32 %v737_v48  ;;  %v758_v48 = vmul.f32 %v3658_v1, %v245_v40  ;;  %v266_v40 = vld [vmem:[%s3651_s8 + $0x290] sm:$0xff] }
  0x79   : > { %v2466_v62 = vpop.eup %2465  ;;  %1751 = vst [vmem:[%s3694_s20 + $0xf0] sm:$0xff] %v2464_v59  ;;  %2485 = vtanh.f32 %v738_v51  ;;  %v759_v51 = vmul.f32 %v3658_v1, %v246_v43  ;;  %v267_v43 = vld [vmem:[%s3651_s8 + $0x298] sm:$0xff] }
  0x7a   : > { %v2468_v2 = vpop.eup %2467  ;;  %1752 = vst [vmem:[%s3694_s20 + $0xf8] sm:$0xff] %v2466_v62  ;;  %2487 = vtanh.f32 %v739_v54  ;;  %v760_v54 = vmul.f32 %v3658_v1, %v247_v46  ;;  %v268_v46 = vld [vmem:[%s3651_s8 + $0x2a0] sm:$0xff] }
  0x7b   : > { %v2470_v5 = vpop.eup %2469  ;;  %1753 = vst [vmem:[%s3694_s20 + $0x100] sm:$0xff] %v2468_v2  ;;  %2489 = vtanh.f32 %v740_v57  ;;  %v761_v57 = vmul.f32 %v3658_v1, %v248_v49  ;;  %v269_v49 = vld [vmem:[%s3651_s8 + $0x2a8] sm:$0xff] }
  0x7c   : > { %v2472_v8 = vpop.eup %2471  ;;  %1754 = vst [vmem:[%s3694_s20 + $0x108] sm:$0xff] %v2470_v5  ;;  %2491 = vtanh.f32 %v741_v60  ;;  %v762_v60 = vmul.f32 %v3658_v1, %v249_v52  ;;  %v270_v52 = vld [vmem:[%s3651_s8 + $0x2b0] sm:$0xff] }
  0x7d   : > { %v2474_v11 = vpop.eup %2473  ;;  %1755 = vst [vmem:[%s3694_s20 + $0x110] sm:$0xff] %v2472_v8  ;;  %2493 = vtanh.f32 %v742_v63  ;;  %v763_v63 = vmul.f32 %v3658_v1, %v250_v55  ;;  %v271_v55 = vld [vmem:[%s3651_s8 + $0x2b8] sm:$0xff] }
  0x7e   : > { %v2476_v14 = vpop.eup %2475  ;;  %1756 = vst [vmem:[%s3694_s20 + $0x118] sm:$0xff] %v2474_v11  ;;  %2495 = vtanh.f32 %v743_v3  ;;  %v764_v3 = vmul.f32 %v3658_v1, %v251_v58  ;;  %v272_v58 = vld [vmem:[%s3651_s8 + $0x2c0] sm:$0xff] }
  0x7f   : > { %v2478_v17 = vpop.eup %2477  ;;  %1757 = vst [vmem:[%s3694_s20 + $0x120] sm:$0xff] %v2476_v14  ;;  %2497 = vtanh.f32 %v744_v6  ;;  %v765_v6 = vmul.f32 %v3658_v1, %v252_v61  ;;  %v273_v61 = vld [vmem:[%s3651_s8 + $0x2c8] sm:$0xff] }
  0x80   : > { %v2480_v20 = vpop.eup %2479  ;;  %1758 = vst [vmem:[%s3694_s20 + $0x128] sm:$0xff] %v2478_v17  ;;  %2499 = vtanh.f32 %v745_v9  ;;  %v766_v9 = vmul.f32 %v3658_v1, %v253_v0  ;;  %v274_v0 = vld [vmem:[%s3651_s8 + $0x2d0] sm:$0xff] }
  0x81   : > { %v2482_v23 = vpop.eup %2481  ;;  %1759 = vst [vmem:[%s3694_s20 + $0x130] sm:$0xff] %v2480_v20  ;;  %2501 = vtanh.f32 %v746_v12  ;;  %v767_v12 = vmul.f32 %v3658_v1, %v254_v4  ;;  %v275_v4 = vld [vmem:[%s3651_s8 + $0x2d8] sm:$0xff] }
  0x82   : > { %v2484_v26 = vpop.eup %2483  ;;  %1760 = vst [vmem:[%s3694_s20 + $0x138] sm:$0xff] %v2482_v23  ;;  %2503 = vtanh.f32 %v747_v15  ;;  %v768_v15 = vmul.f32 %v3658_v1, %v255_v7  ;;  %v276_v7 = vld [vmem:[%s3651_s8 + $0x2e0] sm:$0xff] }
  0x83   : > { %v2486_v29 = vpop.eup %2485  ;;  %1761 = vst [vmem:[%s3694_s20 + $0x140] sm:$0xff] %v2484_v26  ;;  %2505 = vtanh.f32 %v748_v18  ;;  %v769_v18 = vmul.f32 %v3658_v1, %v256_v10  ;;  %v277_v10 = vld [vmem:[%s3651_s8 + $0x2e8] sm:$0xff] }
  0x84   : > { %v2488_v32 = vpop.eup %2487  ;;  %1762 = vst [vmem:[%s3694_s20 + $0x148] sm:$0xff] %v2486_v29  ;;  %2507 = vtanh.f32 %v749_v21  ;;  %v770_v21 = vmul.f32 %v3658_v1, %v257_v13  ;;  %v278_v13 = vld [vmem:[%s3651_s8 + $0x2f0] sm:$0xff] }
  0x85   : > { %v2490_v35 = vpop.eup %2489  ;;  %1763 = vst [vmem:[%s3694_s20 + $0x150] sm:$0xff] %v2488_v32  ;;  %2509 = vtanh.f32 %v750_v24  ;;  %v771_v24 = vmul.f32 %v3658_v1, %v258_v16  ;;  %v279_v16 = vld [vmem:[%s3651_s8 + $0x2f8] sm:$0xff] }
  0x86   : > { %v2492_v38 = vpop.eup %2491  ;;  %1764 = vst [vmem:[%s3694_s20 + $0x158] sm:$0xff] %v2490_v35  ;;  %2511 = vtanh.f32 %v751_v27  ;;  %v772_v27 = vmul.f32 %v3658_v1, %v259_v19  ;;  %v280_v19 = vld [vmem:[%s3651_s8 + $0x300] sm:$0xff] }
  0x87   : > { %v2494_v41 = vpop.eup %2493  ;;  %1765 = vst [vmem:[%s3694_s20 + $0x160] sm:$0xff] %v2492_v38  ;;  %2513 = vtanh.f32 %v752_v30  ;;  %v773_v30 = vmul.f32 %v3658_v1, %v260_v22  ;;  %v281_v22 = vld [vmem:[%s3651_s8 + $0x308] sm:$0xff] }
  0x88   : > { %v2496_v44 = vpop.eup %2495  ;;  %1766 = vst [vmem:[%s3694_s20 + $0x168] sm:$0xff] %v2494_v41  ;;  %2515 = vtanh.f32 %v753_v33  ;;  %v774_v33 = vmul.f32 %v3658_v1, %v261_v25  ;;  %v282_v25 = vld [vmem:[%s3651_s8 + $0x310] sm:$0xff] }
  0x89   : > { %v2498_v47 = vpop.eup %2497  ;;  %1767 = vst [vmem:[%s3694_s20 + $0x170] sm:$0xff] %v2496_v44  ;;  %2517 = vtanh.f32 %v754_v36  ;;  %v775_v36 = vmul.f32 %v3658_v1, %v262_v28  ;;  %v283_v28 = vld [vmem:[%s3651_s8 + $0x318] sm:$0xff] }
  0x8a   : > { %v2500_v50 = vpop.eup %2499  ;;  %1768 = vst [vmem:[%s3694_s20 + $0x178] sm:$0xff] %v2498_v47  ;;  %2519 = vtanh.f32 %v755_v39  ;;  %v776_v39 = vmul.f32 %v3658_v1, %v263_v31  ;;  %v284_v31 = vld [vmem:[%s3651_s8 + $0x320] sm:$0xff] }
  0x8b   : > { %v2502_v53 = vpop.eup %2501  ;;  %1769 = vst [vmem:[%s3694_s20 + $0x180] sm:$0xff] %v2500_v50  ;;  %2521 = vtanh.f32 %v756_v42  ;;  %v777_v42 = vmul.f32 %v3658_v1, %v264_v34  ;;  %v285_v34 = vld [vmem:[%s3651_s8 + $0x328] sm:$0xff] }
  0x8c   : > { %v2504_v56 = vpop.eup %2503  ;;  %1770 = vst [vmem:[%s3694_s20 + $0x188] sm:$0xff] %v2502_v53  ;;  %2523 = vtanh.f32 %v757_v45  ;;  %v778_v45 = vmul.f32 %v3658_v1, %v265_v37  ;;  %v286_v37 = vld [vmem:[%s3651_s8 + $0x330] sm:$0xff] }
  0x8d   : > { %v2506_v59 = vpop.eup %2505  ;;  %1771 = vst [vmem:[%s3694_s20 + $0x190] sm:$0xff] %v2504_v56  ;;  %2525 = vtanh.f32 %v758_v48  ;;  %v779_v48 = vmul.f32 %v3658_v1, %v266_v40  ;;  %v287_v40 = vld [vmem:[%s3651_s8 + $0x338] sm:$0xff] }
  0x8e   : > { %v2508_v62 = vpop.eup %2507  ;;  %1772 = vst [vmem:[%s3694_s20 + $0x198] sm:$0xff] %v2506_v59  ;;  %2527 = vtanh.f32 %v759_v51  ;;  %v780_v51 = vmul.f32 %v3658_v1, %v267_v43  ;;  %v288_v43 = vld [vmem:[%s3651_s8 + $0x340] sm:$0xff] }
  0x8f   : > { %v2510_v2 = vpop.eup %2509  ;;  %1773 = vst [vmem:[%s3694_s20 + $0x1a0] sm:$0xff] %v2508_v62  ;;  %2529 = vtanh.f32 %v760_v54  ;;  %v781_v54 = vmul.f32 %v3658_v1, %v268_v46  ;;  %v289_v46 = vld [vmem:[%s3651_s8 + $0x348] sm:$0xff] }
  0x90   : > { %v2512_v5 = vpop.eup %2511  ;;  %1774 = vst [vmem:[%s3694_s20 + $0x1a8] sm:$0xff] %v2510_v2  ;;  %2531 = vtanh.f32 %v761_v57  ;;  %v782_v57 = vmul.f32 %v3658_v1, %v269_v49  ;;  %v290_v49 = vld [vmem:[%s3651_s8 + $0x350] sm:$0xff] }
  0x91   : > { %v2514_v8 = vpop.eup %2513  ;;  %1775 = vst [vmem:[%s3694_s20 + $0x1b0] sm:$0xff] %v2512_v5  ;;  %2533 = vtanh.f32 %v762_v60  ;;  %v783_v60 = vmul.f32 %v3658_v1, %v270_v52  ;;  %v291_v52 = vld [vmem:[%s3651_s8 + $0x358] sm:$0xff] }
  0x92   : > { %v2516_v11 = vpop.eup %2515  ;;  %1776 = vst [vmem:[%s3694_s20 + $0x1b8] sm:$0xff] %v2514_v8  ;;  %2535 = vtanh.f32 %v763_v63  ;;  %v784_v63 = vmul.f32 %v3658_v1, %v271_v55  ;;  %v292_v55 = vld [vmem:[%s3651_s8 + $0x360] sm:$0xff] }
  0x93   : > { %v2518_v14 = vpop.eup %2517  ;;  %1777 = vst [vmem:[%s3694_s20 + $0x1c0] sm:$0xff] %v2516_v11  ;;  %2537 = vtanh.f32 %v764_v3  ;;  %v785_v3 = vmul.f32 %v3658_v1, %v272_v58  ;;  %v293_v58 = vld [vmem:[%s3651_s8 + $0x368] sm:$0xff] }
  0x94   : > { %v2520_v17 = vpop.eup %2519  ;;  %1778 = vst [vmem:[%s3694_s20 + $0x1c8] sm:$0xff] %v2518_v14  ;;  %2539 = vtanh.f32 %v765_v6  ;;  %v786_v6 = vmul.f32 %v3658_v1, %v273_v61  ;;  %v294_v61 = vld [vmem:[%s3651_s8 + $0x370] sm:$0xff] }
  0x95   : > { %v2522_v20 = vpop.eup %2521  ;;  %1779 = vst [vmem:[%s3694_s20 + $0x1d0] sm:$0xff] %v2520_v17  ;;  %2541 = vtanh.f32 %v766_v9  ;;  %v787_v9 = vmul.f32 %v3658_v1, %v274_v0  ;;  %v295_v0 = vld [vmem:[%s3651_s8 + $0x378] sm:$0xff] }
  0x96   : > { %v2524_v23 = vpop.eup %2523  ;;  %1780 = vst [vmem:[%s3694_s20 + $0x1d8] sm:$0xff] %v2522_v20  ;;  %2543 = vtanh.f32 %v767_v12  ;;  %v788_v12 = vmul.f32 %v3658_v1, %v275_v4  ;;  %v296_v4 = vld [vmem:[%s3651_s8 + $0x380] sm:$0xff] }
  0x97   : > { %v2526_v26 = vpop.eup %2525  ;;  %1781 = vst [vmem:[%s3694_s20 + $0x1e0] sm:$0xff] %v2524_v23  ;;  %2545 = vtanh.f32 %v768_v15  ;;  %v789_v15 = vmul.f32 %v3658_v1, %v276_v7  ;;  %v297_v7 = vld [vmem:[%s3651_s8 + $0x388] sm:$0xff] }
  0x98   : > { %v2528_v29 = vpop.eup %2527  ;;  %1782 = vst [vmem:[%s3694_s20 + $0x1e8] sm:$0xff] %v2526_v26  ;;  %2547 = vtanh.f32 %v769_v18  ;;  %v790_v18 = vmul.f32 %v3658_v1, %v277_v10  ;;  %v298_v10 = vld [vmem:[%s3651_s8 + $0x390] sm:$0xff] }
  0x99   : > { %v2530_v32 = vpop.eup %2529  ;;  %1783 = vst [vmem:[%s3694_s20 + $0x1f0] sm:$0xff] %v2528_v29  ;;  %2549 = vtanh.f32 %v770_v21  ;;  %v791_v21 = vmul.f32 %v3658_v1, %v278_v13  ;;  %v299_v13 = vld [vmem:[%s3651_s8 + $0x398] sm:$0xff] }
  0x9a   : > { %v2532_v35 = vpop.eup %2531  ;;  %1784 = vst [vmem:[%s3694_s20 + $0x1f8] sm:$0xff] %v2530_v32  ;;  %2551 = vtanh.f32 %v771_v24  ;;  %v792_v24 = vmul.f32 %v3658_v1, %v279_v16  ;;  %v300_v16 = vld [vmem:[%s3651_s8 + $0x3a0] sm:$0xff] }
  0x9b   : > { %v2534_v38 = vpop.eup %2533  ;;  %1785 = vst [vmem:[%s3694_s20 + $0x200] sm:$0xff] %v2532_v35  ;;  %2553 = vtanh.f32 %v772_v27  ;;  %v793_v27 = vmul.f32 %v3658_v1, %v280_v19  ;;  %v301_v19 = vld [vmem:[%s3651_s8 + $0x3a8] sm:$0xff] }
  0x9c   : > { %v2536_v41 = vpop.eup %2535  ;;  %1786 = vst [vmem:[%s3694_s20 + $0x208] sm:$0xff] %v2534_v38  ;;  %2555 = vtanh.f32 %v773_v30  ;;  %v794_v30 = vmul.f32 %v3658_v1, %v281_v22  ;;  %v302_v22 = vld [vmem:[%s3651_s8 + $0x3b0] sm:$0xff] }
  0x9d   : > { %v2538_v44 = vpop.eup %2537  ;;  %1787 = vst [vmem:[%s3694_s20 + $0x210] sm:$0xff] %v2536_v41  ;;  %2557 = vtanh.f32 %v774_v33  ;;  %v795_v33 = vmul.f32 %v3658_v1, %v282_v25  ;;  %v303_v25 = vld [vmem:[%s3651_s8 + $0x3b8] sm:$0xff] }
  0x9e   : > { %v2540_v47 = vpop.eup %2539  ;;  %1788 = vst [vmem:[%s3694_s20 + $0x218] sm:$0xff] %v2538_v44  ;;  %2559 = vtanh.f32 %v775_v36  ;;  %v796_v36 = vmul.f32 %v3658_v1, %v283_v28  ;;  %v304_v28 = vld [vmem:[%s3651_s8 + $0x3c0] sm:$0xff] }
  0x9f   : > { %v2542_v50 = vpop.eup %2541  ;;  %1789 = vst [vmem:[%s3694_s20 + $0x220] sm:$0xff] %v2540_v47  ;;  %2561 = vtanh.f32 %v776_v39  ;;  %v797_v39 = vmul.f32 %v3658_v1, %v284_v31  ;;  %v305_v31 = vld [vmem:[%s3651_s8 + $0x3c8] sm:$0xff] }
  0xa0   : > { %v2544_v53 = vpop.eup %2543  ;;  %1790 = vst [vmem:[%s3694_s20 + $0x228] sm:$0xff] %v2542_v50  ;;  %2563 = vtanh.f32 %v777_v42  ;;  %v798_v42 = vmul.f32 %v3658_v1, %v285_v34  ;;  %v306_v34 = vld [vmem:[%s3651_s8 + $0x3d0] sm:$0xff] }
  0xa1   : > { %v2546_v56 = vpop.eup %2545  ;;  %1791 = vst [vmem:[%s3694_s20 + $0x230] sm:$0xff] %v2544_v53  ;;  %2565 = vtanh.f32 %v778_v45  ;;  %v799_v45 = vmul.f32 %v3658_v1, %v286_v37  ;;  %v307_v37 = vld [vmem:[%s3651_s8 + $0x3d8] sm:$0xff] }
  0xa2   : > { %v2548_v59 = vpop.eup %2547  ;;  %1792 = vst [vmem:[%s3694_s20 + $0x238] sm:$0xff] %v2546_v56  ;;  %2567 = vtanh.f32 %v779_v48  ;;  %v800_v48 = vmul.f32 %v3658_v1, %v287_v40  ;;  %v308_v40 = vld [vmem:[%s3651_s8 + $0x3e0] sm:$0xff] }
  0xa3   : > { %v2550_v62 = vpop.eup %2549  ;;  %1793 = vst [vmem:[%s3694_s20 + $0x240] sm:$0xff] %v2548_v59  ;;  %2569 = vtanh.f32 %v780_v51  ;;  %v801_v51 = vmul.f32 %v3658_v1, %v288_v43  ;;  %v309_v43 = vld [vmem:[%s3651_s8 + $0x3e8] sm:$0xff] }
  0xa4   : > { %v2552_v2 = vpop.eup %2551  ;;  %1794 = vst [vmem:[%s3694_s20 + $0x248] sm:$0xff] %v2550_v62  ;;  %2571 = vtanh.f32 %v781_v54  ;;  %v802_v54 = vmul.f32 %v3658_v1, %v289_v46  ;;  %v310_v46 = vld [vmem:[%s3651_s8 + $0x3f0] sm:$0xff] }
  0xa5   : > { %v2554_v5 = vpop.eup %2553  ;;  %1795 = vst [vmem:[%s3694_s20 + $0x250] sm:$0xff] %v2552_v2  ;;  %2573 = vtanh.f32 %v782_v57  ;;  %v803_v57 = vmul.f32 %v3658_v1, %v290_v49  ;;  %v311_v49 = vld [vmem:[%s3651_s8 + $0x3f8] sm:$0xff] }
  0xa6   : > { %v2556_v8 = vpop.eup %2555  ;;  %1796 = vst [vmem:[%s3694_s20 + $0x258] sm:$0xff] %v2554_v5  ;;  %2575 = vtanh.f32 %v783_v60  ;;  %v804_v60 = vmul.f32 %v3658_v1, %v291_v52  ;;  %v312_v52 = vld [vmem:[%s3651_s8 + $0x400] sm:$0xff] }
  0xa7   : > { %v2558_v11 = vpop.eup %2557  ;;  %1797 = vst [vmem:[%s3694_s20 + $0x260] sm:$0xff] %v2556_v8  ;;  %2577 = vtanh.f32 %v784_v63  ;;  %v805_v63 = vmul.f32 %v3658_v1, %v292_v55  ;;  %v313_v55 = vld [vmem:[%s3651_s8 + $0x408] sm:$0xff] }
  0xa8   : > { %v2560_v14 = vpop.eup %2559  ;;  %1798 = vst [vmem:[%s3694_s20 + $0x268] sm:$0xff] %v2558_v11  ;;  %2579 = vtanh.f32 %v785_v3  ;;  %v806_v3 = vmul.f32 %v3658_v1, %v293_v58  ;;  %v314_v58 = vld [vmem:[%s3651_s8 + $0x410] sm:$0xff] }
  0xa9   : > { %v2562_v17 = vpop.eup %2561  ;;  %1799 = vst [vmem:[%s3694_s20 + $0x270] sm:$0xff] %v2560_v14  ;;  %2581 = vtanh.f32 %v786_v6  ;;  %v807_v6 = vmul.f32 %v3658_v1, %v294_v61  ;;  %v315_v61 = vld [vmem:[%s3651_s8 + $0x418] sm:$0xff] }
  0xaa   : > { %v2564_v20 = vpop.eup %2563  ;;  %1800 = vst [vmem:[%s3694_s20 + $0x278] sm:$0xff] %v2562_v17  ;;  %2583 = vtanh.f32 %v787_v9  ;;  %v808_v9 = vmul.f32 %v3658_v1, %v295_v0  ;;  %v316_v0 = vld [vmem:[%s3651_s8 + $0x420] sm:$0xff] }
  0xab   : > { %v2566_v23 = vpop.eup %2565  ;;  %1801 = vst [vmem:[%s3694_s20 + $0x280] sm:$0xff] %v2564_v20  ;;  %2585 = vtanh.f32 %v788_v12  ;;  %v809_v12 = vmul.f32 %v3658_v1, %v296_v4  ;;  %v317_v4 = vld [vmem:[%s3651_s8 + $0x428] sm:$0xff] }
  0xac   : > { %v2568_v26 = vpop.eup %2567  ;;  %1802 = vst [vmem:[%s3694_s20 + $0x288] sm:$0xff] %v2566_v23  ;;  %2587 = vtanh.f32 %v789_v15  ;;  %v810_v15 = vmul.f32 %v3658_v1, %v297_v7  ;;  %v318_v7 = vld [vmem:[%s3651_s8 + $0x430] sm:$0xff] }
  0xad   : > { %v2570_v29 = vpop.eup %2569  ;;  %1803 = vst [vmem:[%s3694_s20 + $0x290] sm:$0xff] %v2568_v26  ;;  %2589 = vtanh.f32 %v790_v18  ;;  %v811_v18 = vmul.f32 %v3658_v1, %v298_v10  ;;  %v319_v10 = vld [vmem:[%s3651_s8 + $0x438] sm:$0xff] }
  0xae   : > { %v2572_v32 = vpop.eup %2571  ;;  %1804 = vst [vmem:[%s3694_s20 + $0x298] sm:$0xff] %v2570_v29  ;;  %2591 = vtanh.f32 %v791_v21  ;;  %v812_v21 = vmul.f32 %v3658_v1, %v299_v13  ;;  %v320_v13 = vld [vmem:[%s3651_s8 + $0x440] sm:$0xff] }
  0xaf   : > { %v2574_v35 = vpop.eup %2573  ;;  %1805 = vst [vmem:[%s3694_s20 + $0x2a0] sm:$0xff] %v2572_v32  ;;  %2593 = vtanh.f32 %v792_v24  ;;  %v813_v24 = vmul.f32 %v3658_v1, %v300_v16  ;;  %v321_v16 = vld [vmem:[%s3651_s8 + $0x448] sm:$0xff] }
  0xb0   : > { %v2576_v38 = vpop.eup %2575  ;;  %1806 = vst [vmem:[%s3694_s20 + $0x2a8] sm:$0xff] %v2574_v35  ;;  %2595 = vtanh.f32 %v793_v27  ;;  %v814_v27 = vmul.f32 %v3658_v1, %v301_v19  ;;  %v322_v19 = vld [vmem:[%s3651_s8 + $0x450] sm:$0xff] }
  0xb1   : > { %v2578_v41 = vpop.eup %2577  ;;  %1807 = vst [vmem:[%s3694_s20 + $0x2b0] sm:$0xff] %v2576_v38  ;;  %2597 = vtanh.f32 %v794_v30  ;;  %v815_v30 = vmul.f32 %v3658_v1, %v302_v22  ;;  %v323_v22 = vld [vmem:[%s3651_s8 + $0x458] sm:$0xff] }
  0xb2   : > { %v2580_v44 = vpop.eup %2579  ;;  %1808 = vst [vmem:[%s3694_s20 + $0x2b8] sm:$0xff] %v2578_v41  ;;  %2599 = vtanh.f32 %v795_v33  ;;  %v816_v33 = vmul.f32 %v3658_v1, %v303_v25  ;;  %v324_v25 = vld [vmem:[%s3651_s8 + $0x460] sm:$0xff] }
  0xb3   : > { %v2582_v47 = vpop.eup %2581  ;;  %1809 = vst [vmem:[%s3694_s20 + $0x2c0] sm:$0xff] %v2580_v44  ;;  %2601 = vtanh.f32 %v796_v36  ;;  %v817_v36 = vmul.f32 %v3658_v1, %v304_v28  ;;  %v325_v28 = vld [vmem:[%s3651_s8 + $0x468] sm:$0xff] }
  0xb4   : > { %v2584_v50 = vpop.eup %2583  ;;  %1810 = vst [vmem:[%s3694_s20 + $0x2c8] sm:$0xff] %v2582_v47  ;;  %2603 = vtanh.f32 %v797_v39  ;;  %v818_v39 = vmul.f32 %v3658_v1, %v305_v31  ;;  %v326_v31 = vld [vmem:[%s3651_s8 + $0x470] sm:$0xff] }
  0xb5   : > { %v2586_v53 = vpop.eup %2585  ;;  %1811 = vst [vmem:[%s3694_s20 + $0x2d0] sm:$0xff] %v2584_v50  ;;  %2605 = vtanh.f32 %v798_v42  ;;  %v819_v42 = vmul.f32 %v3658_v1, %v306_v34  ;;  %v327_v34 = vld [vmem:[%s3651_s8 + $0x478] sm:$0xff] }
  0xb6   : > { %v2588_v56 = vpop.eup %2587  ;;  %1812 = vst [vmem:[%s3694_s20 + $0x2d8] sm:$0xff] %v2586_v53  ;;  %2607 = vtanh.f32 %v799_v45  ;;  %v820_v45 = vmul.f32 %v3658_v1, %v307_v37  ;;  %v328_v37 = vld [vmem:[%s3651_s8 + $0x480] sm:$0xff] }
  0xb7   : > { %v2590_v59 = vpop.eup %2589  ;;  %1813 = vst [vmem:[%s3694_s20 + $0x2e0] sm:$0xff] %v2588_v56  ;;  %2609 = vtanh.f32 %v800_v48  ;;  %v821_v48 = vmul.f32 %v3658_v1, %v308_v40  ;;  %v329_v40 = vld [vmem:[%s3651_s8 + $0x488] sm:$0xff] }
  0xb8   : > { %v2592_v62 = vpop.eup %2591  ;;  %1814 = vst [vmem:[%s3694_s20 + $0x2e8] sm:$0xff] %v2590_v59  ;;  %2611 = vtanh.f32 %v801_v51  ;;  %v822_v51 = vmul.f32 %v3658_v1, %v309_v43  ;;  %v330_v43 = vld [vmem:[%s3651_s8 + $0x490] sm:$0xff] }
  0xb9   : > { %v2594_v2 = vpop.eup %2593  ;;  %1815 = vst [vmem:[%s3694_s20 + $0x2f0] sm:$0xff] %v2592_v62  ;;  %2613 = vtanh.f32 %v802_v54  ;;  %v823_v54 = vmul.f32 %v3658_v1, %v310_v46  ;;  %v331_v46 = vld [vmem:[%s3651_s8 + $0x498] sm:$0xff] }
  0xba   : > { %v2596_v5 = vpop.eup %2595  ;;  %1816 = vst [vmem:[%s3694_s20 + $0x2f8] sm:$0xff] %v2594_v2  ;;  %2615 = vtanh.f32 %v803_v57  ;;  %v824_v57 = vmul.f32 %v3658_v1, %v311_v49  ;;  %v332_v49 = vld [vmem:[%s3651_s8 + $0x4a0] sm:$0xff] }
  0xbb   : > { %v2598_v8 = vpop.eup %2597  ;;  %1817 = vst [vmem:[%s3694_s20 + $0x300] sm:$0xff] %v2596_v5  ;;  %2617 = vtanh.f32 %v804_v60  ;;  %v825_v60 = vmul.f32 %v3658_v1, %v312_v52  ;;  %v333_v52 = vld [vmem:[%s3651_s8 + $0x4a8] sm:$0xff] }
  0xbc   : > { %v2600_v11 = vpop.eup %2599  ;;  %1818 = vst [vmem:[%s3694_s20 + $0x308] sm:$0xff] %v2598_v8  ;;  %2619 = vtanh.f32 %v805_v63  ;;  %v826_v63 = vmul.f32 %v3658_v1, %v313_v55  ;;  %v334_v55 = vld [vmem:[%s3651_s8 + $0x4b0] sm:$0xff] }
  0xbd   : > { %v2602_v14 = vpop.eup %2601  ;;  %1819 = vst [vmem:[%s3694_s20 + $0x310] sm:$0xff] %v2600_v11  ;;  %2621 = vtanh.f32 %v806_v3  ;;  %v827_v3 = vmul.f32 %v3658_v1, %v314_v58  ;;  %v335_v58 = vld [vmem:[%s3651_s8 + $0x4b8] sm:$0xff] }
  0xbe   : > { %v2604_v17 = vpop.eup %2603  ;;  %1820 = vst [vmem:[%s3694_s20 + $0x318] sm:$0xff] %v2602_v14  ;;  %2623 = vtanh.f32 %v807_v6  ;;  %v828_v6 = vmul.f32 %v3658_v1, %v315_v61  ;;  %v336_v61 = vld [vmem:[%s3651_s8 + $0x4c0] sm:$0xff] }
  0xbf   : > { %v2606_v20 = vpop.eup %2605  ;;  %1821 = vst [vmem:[%s3694_s20 + $0x320] sm:$0xff] %v2604_v17  ;;  %2625 = vtanh.f32 %v808_v9  ;;  %v829_v9 = vmul.f32 %v3658_v1, %v316_v0  ;;  %v337_v0 = vld [vmem:[%s3651_s8 + $0x4c8] sm:$0xff] }
  0xc0   : > { %v2608_v23 = vpop.eup %2607  ;;  %1822 = vst [vmem:[%s3694_s20 + $0x328] sm:$0xff] %v2606_v20  ;;  %2627 = vtanh.f32 %v809_v12  ;;  %v830_v12 = vmul.f32 %v3658_v1, %v317_v4  ;;  %v338_v4 = vld [vmem:[%s3651_s8 + $0x4d0] sm:$0xff] }
  0xc1   : > { %v2610_v26 = vpop.eup %2609  ;;  %1823 = vst [vmem:[%s3694_s20 + $0x330] sm:$0xff] %v2608_v23  ;;  %2629 = vtanh.f32 %v810_v15  ;;  %v831_v15 = vmul.f32 %v3658_v1, %v318_v7  ;;  %v339_v7 = vld [vmem:[%s3651_s8 + $0x4d8] sm:$0xff] }
  0xc2   : > { %v2612_v29 = vpop.eup %2611  ;;  %1824 = vst [vmem:[%s3694_s20 + $0x338] sm:$0xff] %v2610_v26  ;;  %2631 = vtanh.f32 %v811_v18  ;;  %v832_v18 = vmul.f32 %v3658_v1, %v319_v10  ;;  %v340_v10 = vld [vmem:[%s3651_s8 + $0x4e0] sm:$0xff] }
  0xc3   : > { %v2614_v32 = vpop.eup %2613  ;;  %1825 = vst [vmem:[%s3694_s20 + $0x340] sm:$0xff] %v2612_v29  ;;  %2633 = vtanh.f32 %v812_v21  ;;  %v833_v21 = vmul.f32 %v3658_v1, %v320_v13  ;;  %v341_v13 = vld [vmem:[%s3651_s8 + $0x4e8] sm:$0xff] }
  0xc4   : > { %v2616_v35 = vpop.eup %2615  ;;  %1826 = vst [vmem:[%s3694_s20 + $0x348] sm:$0xff] %v2614_v32  ;;  %2635 = vtanh.f32 %v813_v24  ;;  %v834_v24 = vmul.f32 %v3658_v1, %v321_v16  ;;  %v342_v16 = vld [vmem:[%s3651_s8 + $0x4f0] sm:$0xff] }
  0xc5   : > { %v2618_v38 = vpop.eup %2617  ;;  %1827 = vst [vmem:[%s3694_s20 + $0x350] sm:$0xff] %v2616_v35  ;;  %2637 = vtanh.f32 %v814_v27  ;;  %v835_v27 = vmul.f32 %v3658_v1, %v322_v19  ;;  %v343_v19 = vld [vmem:[%s3651_s8 + $0x4f8] sm:$0xff] }
  0xc6   : > { %v2620_v41 = vpop.eup %2619  ;;  %1828 = vst [vmem:[%s3694_s20 + $0x358] sm:$0xff] %v2618_v38  ;;  %2639 = vtanh.f32 %v815_v30  ;;  %v836_v30 = vmul.f32 %v3658_v1, %v323_v22  ;;  %v344_v22 = vld [vmem:[%s3651_s8 + $0x500] sm:$0xff] }
  0xc7   : > { %v2622_v44 = vpop.eup %2621  ;;  %1829 = vst [vmem:[%s3694_s20 + $0x360] sm:$0xff] %v2620_v41  ;;  %2641 = vtanh.f32 %v816_v33  ;;  %v837_v33 = vmul.f32 %v3658_v1, %v324_v25  ;;  %v345_v25 = vld [vmem:[%s3651_s8 + $0x508] sm:$0xff] }
  0xc8   : > { %v2624_v47 = vpop.eup %2623  ;;  %1830 = vst [vmem:[%s3694_s20 + $0x368] sm:$0xff] %v2622_v44  ;;  %2643 = vtanh.f32 %v817_v36  ;;  %v838_v36 = vmul.f32 %v3658_v1, %v325_v28  ;;  %v346_v28 = vld [vmem:[%s3651_s8 + $0x510] sm:$0xff] }
  0xc9   : > { %v2626_v50 = vpop.eup %2625  ;;  %1831 = vst [vmem:[%s3694_s20 + $0x370] sm:$0xff] %v2624_v47  ;;  %2645 = vtanh.f32 %v818_v39  ;;  %v839_v39 = vmul.f32 %v3658_v1, %v326_v31  ;;  %v347_v31 = vld [vmem:[%s3651_s8 + $0x518] sm:$0xff] }
  0xca   : > { %v2628_v53 = vpop.eup %2627  ;;  %1832 = vst [vmem:[%s3694_s20 + $0x378] sm:$0xff] %v2626_v50  ;;  %2647 = vtanh.f32 %v819_v42  ;;  %v840_v42 = vmul.f32 %v3658_v1, %v327_v34  ;;  %v348_v34 = vld [vmem:[%s3651_s8 + $0x520] sm:$0xff] }
  0xcb   : > { %v2630_v56 = vpop.eup %2629  ;;  %1833 = vst [vmem:[%s3694_s20 + $0x380] sm:$0xff] %v2628_v53  ;;  %2649 = vtanh.f32 %v820_v45  ;;  %v841_v45 = vmul.f32 %v3658_v1, %v328_v37  ;;  %v349_v37 = vld [vmem:[%s3651_s8 + $0x528] sm:$0xff] }
  0xcc   : > { %v2632_v59 = vpop.eup %2631  ;;  %1834 = vst [vmem:[%s3694_s20 + $0x388] sm:$0xff] %v2630_v56  ;;  %2651 = vtanh.f32 %v821_v48  ;;  %v842_v48 = vmul.f32 %v3658_v1, %v329_v40  ;;  %v350_v40 = vld [vmem:[%s3651_s8 + $0x530] sm:$0xff] }
  0xcd   : > { %v2634_v62 = vpop.eup %2633  ;;  %1835 = vst [vmem:[%s3694_s20 + $0x390] sm:$0xff] %v2632_v59  ;;  %2653 = vtanh.f32 %v822_v51  ;;  %v843_v51 = vmul.f32 %v3658_v1, %v330_v43  ;;  %v351_v43 = vld [vmem:[%s3651_s8 + $0x538] sm:$0xff] }
  0xce   : > { %v2636_v2 = vpop.eup %2635  ;;  %1836 = vst [vmem:[%s3694_s20 + $0x398] sm:$0xff] %v2634_v62  ;;  %2655 = vtanh.f32 %v823_v54  ;;  %v844_v54 = vmul.f32 %v3658_v1, %v331_v46  ;;  %v352_v46 = vld [vmem:[%s3651_s8 + $0x540] sm:$0xff] }
  0xcf   : > { %v2638_v5 = vpop.eup %2637  ;;  %1837 = vst [vmem:[%s3694_s20 + $0x3a0] sm:$0xff] %v2636_v2  ;;  %2657 = vtanh.f32 %v824_v57  ;;  %v845_v57 = vmul.f32 %v3658_v1, %v332_v49  ;;  %v353_v49 = vld [vmem:[%s3651_s8 + $0x548] sm:$0xff] }
  0xd0   : > { %v2640_v8 = vpop.eup %2639  ;;  %1838 = vst [vmem:[%s3694_s20 + $0x3a8] sm:$0xff] %v2638_v5  ;;  %2659 = vtanh.f32 %v825_v60  ;;  %v846_v60 = vmul.f32 %v3658_v1, %v333_v52  ;;  %v354_v52 = vld [vmem:[%s3651_s8 + $0x550] sm:$0xff] }
  0xd1   : > { %v2642_v11 = vpop.eup %2641  ;;  %1839 = vst [vmem:[%s3694_s20 + $0x3b0] sm:$0xff] %v2640_v8  ;;  %2661 = vtanh.f32 %v826_v63  ;;  %v847_v63 = vmul.f32 %v3658_v1, %v334_v55  ;;  %v355_v55 = vld [vmem:[%s3651_s8 + $0x558] sm:$0xff] }
  0xd2   : > { %v2644_v14 = vpop.eup %2643  ;;  %1840 = vst [vmem:[%s3694_s20 + $0x3b8] sm:$0xff] %v2642_v11  ;;  %2663 = vtanh.f32 %v827_v3  ;;  %v848_v3 = vmul.f32 %v3658_v1, %v335_v58  ;;  %v356_v58 = vld [vmem:[%s3651_s8 + $0x560] sm:$0xff] }
  0xd3   : > { %v2646_v17 = vpop.eup %2645  ;;  %1841 = vst [vmem:[%s3694_s20 + $0x3c0] sm:$0xff] %v2644_v14  ;;  %2665 = vtanh.f32 %v828_v6  ;;  %v849_v6 = vmul.f32 %v3658_v1, %v336_v61  ;;  %v357_v61 = vld [vmem:[%s3651_s8 + $0x568] sm:$0xff] }
  0xd4   : > { %v2648_v20 = vpop.eup %2647  ;;  %1842 = vst [vmem:[%s3694_s20 + $0x3c8] sm:$0xff] %v2646_v17  ;;  %2667 = vtanh.f32 %v829_v9  ;;  %v850_v9 = vmul.f32 %v3658_v1, %v337_v0  ;;  %v358_v0 = vld [vmem:[%s3651_s8 + $0x570] sm:$0xff] }
  0xd5   : > { %v2650_v23 = vpop.eup %2649  ;;  %1843 = vst [vmem:[%s3694_s20 + $0x3d0] sm:$0xff] %v2648_v20  ;;  %2669 = vtanh.f32 %v830_v12  ;;  %v851_v12 = vmul.f32 %v3658_v1, %v338_v4  ;;  %v359_v4 = vld [vmem:[%s3651_s8 + $0x578] sm:$0xff] }
  0xd6   : > { %v2652_v26 = vpop.eup %2651  ;;  %1844 = vst [vmem:[%s3694_s20 + $0x3d8] sm:$0xff] %v2650_v23  ;;  %2671 = vtanh.f32 %v831_v15  ;;  %v852_v15 = vmul.f32 %v3658_v1, %v339_v7  ;;  %v360_v7 = vld [vmem:[%s3651_s8 + $0x580] sm:$0xff] }
  0xd7   : > { %v2654_v29 = vpop.eup %2653  ;;  %1845 = vst [vmem:[%s3694_s20 + $0x3e0] sm:$0xff] %v2652_v26  ;;  %2673 = vtanh.f32 %v832_v18  ;;  %v853_v18 = vmul.f32 %v3658_v1, %v340_v10  ;;  %v361_v10 = vld [vmem:[%s3651_s8 + $0x588] sm:$0xff] }
  0xd8   : > { %v2656_v32 = vpop.eup %2655  ;;  %1846 = vst [vmem:[%s3694_s20 + $0x3e8] sm:$0xff] %v2654_v29  ;;  %2675 = vtanh.f32 %v833_v21  ;;  %v854_v21 = vmul.f32 %v3658_v1, %v341_v13  ;;  %v362_v13 = vld [vmem:[%s3651_s8 + $0x590] sm:$0xff] }
  0xd9   : > { %v2658_v35 = vpop.eup %2657  ;;  %1847 = vst [vmem:[%s3694_s20 + $0x3f0] sm:$0xff] %v2656_v32  ;;  %2677 = vtanh.f32 %v834_v24  ;;  %v855_v24 = vmul.f32 %v3658_v1, %v342_v16  ;;  %v363_v16 = vld [vmem:[%s3651_s8 + $0x598] sm:$0xff] }
  0xda   : > { %v2660_v38 = vpop.eup %2659  ;;  %1848 = vst [vmem:[%s3694_s20 + $0x3f8] sm:$0xff] %v2658_v35  ;;  %2679 = vtanh.f32 %v835_v27  ;;  %v856_v27 = vmul.f32 %v3658_v1, %v343_v19  ;;  %v364_v19 = vld [vmem:[%s3651_s8 + $0x5a0] sm:$0xff] }
  0xdb   : > { %v2662_v41 = vpop.eup %2661  ;;  %1849 = vst [vmem:[%s3694_s20 + $0x400] sm:$0xff] %v2660_v38  ;;  %2681 = vtanh.f32 %v836_v30  ;;  %v857_v30 = vmul.f32 %v3658_v1, %v344_v22  ;;  %v365_v22 = vld [vmem:[%s3651_s8 + $0x5a8] sm:$0xff] }
  0xdc   : > { %v2664_v44 = vpop.eup %2663  ;;  %1850 = vst [vmem:[%s3694_s20 + $0x408] sm:$0xff] %v2662_v41  ;;  %2683 = vtanh.f32 %v837_v33  ;;  %v858_v33 = vmul.f32 %v3658_v1, %v345_v25  ;;  %v366_v25 = vld [vmem:[%s3651_s8 + $0x5b0] sm:$0xff] }
  0xdd   : > { %v2666_v47 = vpop.eup %2665  ;;  %1851 = vst [vmem:[%s3694_s20 + $0x410] sm:$0xff] %v2664_v44  ;;  %2685 = vtanh.f32 %v838_v36  ;;  %v859_v36 = vmul.f32 %v3658_v1, %v346_v28  ;;  %v367_v28 = vld [vmem:[%s3651_s8 + $0x5b8] sm:$0xff] }
  0xde   : > { %v2668_v50 = vpop.eup %2667  ;;  %1852 = vst [vmem:[%s3694_s20 + $0x418] sm:$0xff] %v2666_v47  ;;  %2687 = vtanh.f32 %v839_v39  ;;  %v860_v39 = vmul.f32 %v3658_v1, %v347_v31  ;;  %v368_v31 = vld [vmem:[%s3651_s8 + $0x5c0] sm:$0xff] }
  0xdf   : > { %v2670_v53 = vpop.eup %2669  ;;  %1853 = vst [vmem:[%s3694_s20 + $0x420] sm:$0xff] %v2668_v50  ;;  %2689 = vtanh.f32 %v840_v42  ;;  %v861_v42 = vmul.f32 %v3658_v1, %v348_v34  ;;  %v369_v34 = vld [vmem:[%s3651_s8 + $0x5c8] sm:$0xff] }
  0xe0   : > { %v2672_v56 = vpop.eup %2671  ;;  %1854 = vst [vmem:[%s3694_s20 + $0x428] sm:$0xff] %v2670_v53  ;;  %2691 = vtanh.f32 %v841_v45  ;;  %v862_v45 = vmul.f32 %v3658_v1, %v349_v37  ;;  %v370_v37 = vld [vmem:[%s3651_s8 + $0x5d0] sm:$0xff] }
  0xe1   : > { %v2674_v59 = vpop.eup %2673  ;;  %1855 = vst [vmem:[%s3694_s20 + $0x430] sm:$0xff] %v2672_v56  ;;  %2693 = vtanh.f32 %v842_v48  ;;  %v863_v48 = vmul.f32 %v3658_v1, %v350_v40  ;;  %v371_v40 = vld [vmem:[%s3651_s8 + $0x5d8] sm:$0xff] }
  0xe2   : > { %v2676_v62 = vpop.eup %2675  ;;  %1856 = vst [vmem:[%s3694_s20 + $0x438] sm:$0xff] %v2674_v59  ;;  %2695 = vtanh.f32 %v843_v51  ;;  %v864_v51 = vmul.f32 %v3658_v1, %v351_v43  ;;  %v372_v43 = vld [vmem:[%s3651_s8 + $0x5e0] sm:$0xff] }
  0xe3   : > { %v2678_v2 = vpop.eup %2677  ;;  %1857 = vst [vmem:[%s3694_s20 + $0x440] sm:$0xff] %v2676_v62  ;;  %2697 = vtanh.f32 %v844_v54  ;;  %v865_v54 = vmul.f32 %v3658_v1, %v352_v46  ;;  %v373_v46 = vld [vmem:[%s3651_s8 + $0x5e8] sm:$0xff] }
  0xe4   : > { %v2680_v5 = vpop.eup %2679  ;;  %1858 = vst [vmem:[%s3694_s20 + $0x448] sm:$0xff] %v2678_v2  ;;  %2699 = vtanh.f32 %v845_v57  ;;  %v866_v57 = vmul.f32 %v3658_v1, %v353_v49  ;;  %v374_v49 = vld [vmem:[%s3651_s8 + $0x5f0] sm:$0xff] }
  0xe5   : > { %v2682_v8 = vpop.eup %2681  ;;  %1859 = vst [vmem:[%s3694_s20 + $0x450] sm:$0xff] %v2680_v5  ;;  %2701 = vtanh.f32 %v846_v60  ;;  %v867_v60 = vmul.f32 %v3658_v1, %v354_v52  ;;  %v375_v52 = vld [vmem:[%s3651_s8 + $0x5f8] sm:$0xff] }
  0xe6   : > { %v2684_v11 = vpop.eup %2683  ;;  %1860 = vst [vmem:[%s3694_s20 + $0x458] sm:$0xff] %v2682_v8  ;;  %2703 = vtanh.f32 %v847_v63  ;;  %v868_v63 = vmul.f32 %v3658_v1, %v355_v55  ;;  %v376_v55 = vld [vmem:[%s3651_s8 + $0x600] sm:$0xff] }
  0xe7   : > { %v2686_v14 = vpop.eup %2685  ;;  %1861 = vst [vmem:[%s3694_s20 + $0x460] sm:$0xff] %v2684_v11  ;;  %2705 = vtanh.f32 %v848_v3  ;;  %v869_v3 = vmul.f32 %v3658_v1, %v356_v58  ;;  %v377_v58 = vld [vmem:[%s3651_s8 + $0x608] sm:$0xff] }
  0xe8   : > { %v2688_v17 = vpop.eup %2687  ;;  %1862 = vst [vmem:[%s3694_s20 + $0x468] sm:$0xff] %v2686_v14  ;;  %2707 = vtanh.f32 %v849_v6  ;;  %v870_v6 = vmul.f32 %v3658_v1, %v357_v61  ;;  %v378_v61 = vld [vmem:[%s3651_s8 + $0x610] sm:$0xff] }
  0xe9   : > { %v2690_v20 = vpop.eup %2689  ;;  %1863 = vst [vmem:[%s3694_s20 + $0x470] sm:$0xff] %v2688_v17  ;;  %2709 = vtanh.f32 %v850_v9  ;;  %v871_v9 = vmul.f32 %v3658_v1, %v358_v0  ;;  %v379_v0 = vld [vmem:[%s3651_s8 + $0x618] sm:$0xff] }
  0xea   : > { %v2692_v23 = vpop.eup %2691  ;;  %1864 = vst [vmem:[%s3694_s20 + $0x478] sm:$0xff] %v2690_v20  ;;  %2711 = vtanh.f32 %v851_v12  ;;  %v872_v12 = vmul.f32 %v3658_v1, %v359_v4  ;;  %v380_v4 = vld [vmem:[%s3651_s8 + $0x620] sm:$0xff] }
  0xeb   : > { %v2694_v26 = vpop.eup %2693  ;;  %1865 = vst [vmem:[%s3694_s20 + $0x480] sm:$0xff] %v2692_v23  ;;  %2713 = vtanh.f32 %v852_v15  ;;  %v873_v15 = vmul.f32 %v3658_v1, %v360_v7  ;;  %v381_v7 = vld [vmem:[%s3651_s8 + $0x628] sm:$0xff] }
  0xec   : > { %v2696_v29 = vpop.eup %2695  ;;  %1866 = vst [vmem:[%s3694_s20 + $0x488] sm:$0xff] %v2694_v26  ;;  %2715 = vtanh.f32 %v853_v18  ;;  %v874_v18 = vmul.f32 %v3658_v1, %v361_v10  ;;  %v382_v10 = vld [vmem:[%s3651_s8 + $0x630] sm:$0xff] }
  0xed   : > { %v2698_v32 = vpop.eup %2697  ;;  %1867 = vst [vmem:[%s3694_s20 + $0x490] sm:$0xff] %v2696_v29  ;;  %2717 = vtanh.f32 %v854_v21  ;;  %v875_v21 = vmul.f32 %v3658_v1, %v362_v13  ;;  %v383_v13 = vld [vmem:[%s3651_s8 + $0x638] sm:$0xff] }
  0xee   : > { %v2700_v35 = vpop.eup %2699  ;;  %1868 = vst [vmem:[%s3694_s20 + $0x498] sm:$0xff] %v2698_v32  ;;  %2719 = vtanh.f32 %v855_v24  ;;  %v876_v24 = vmul.f32 %v3658_v1, %v363_v16  ;;  %v384_v16 = vld [vmem:[%s3651_s8 + $0x640] sm:$0xff] }
  0xef   : > { %v2702_v38 = vpop.eup %2701  ;;  %1869 = vst [vmem:[%s3694_s20 + $0x4a0] sm:$0xff] %v2700_v35  ;;  %2721 = vtanh.f32 %v856_v27  ;;  %v877_v27 = vmul.f32 %v3658_v1, %v364_v19  ;;  %v385_v19 = vld [vmem:[%s3651_s8 + $0x648] sm:$0xff] }
  0xf0   : > { %v2704_v41 = vpop.eup %2703  ;;  %1870 = vst [vmem:[%s3694_s20 + $0x4a8] sm:$0xff] %v2702_v38  ;;  %2723 = vtanh.f32 %v857_v30  ;;  %v878_v30 = vmul.f32 %v3658_v1, %v365_v22  ;;  %v386_v22 = vld [vmem:[%s3651_s8 + $0x650] sm:$0xff] }
  0xf1   : > { %v2706_v44 = vpop.eup %2705  ;;  %1871 = vst [vmem:[%s3694_s20 + $0x4b0] sm:$0xff] %v2704_v41  ;;  %2725 = vtanh.f32 %v858_v33  ;;  %v879_v33 = vmul.f32 %v3658_v1, %v366_v25  ;;  %v387_v25 = vld [vmem:[%s3651_s8 + $0x658] sm:$0xff] }
  0xf2   : > { %v2708_v47 = vpop.eup %2707  ;;  %1872 = vst [vmem:[%s3694_s20 + $0x4b8] sm:$0xff] %v2706_v44  ;;  %2727 = vtanh.f32 %v859_v36  ;;  %v880_v36 = vmul.f32 %v3658_v1, %v367_v28  ;;  %v388_v28 = vld [vmem:[%s3651_s8 + $0x660] sm:$0xff] }
  0xf3   : > { %v2710_v50 = vpop.eup %2709  ;;  %1873 = vst [vmem:[%s3694_s20 + $0x4c0] sm:$0xff] %v2708_v47  ;;  %2729 = vtanh.f32 %v860_v39  ;;  %v881_v39 = vmul.f32 %v3658_v1, %v368_v31  ;;  %v389_v31 = vld [vmem:[%s3651_s8 + $0x668] sm:$0xff] }
  0xf4   : > { %v2712_v53 = vpop.eup %2711  ;;  %1874 = vst [vmem:[%s3694_s20 + $0x4c8] sm:$0xff] %v2710_v50  ;;  %2731 = vtanh.f32 %v861_v42  ;;  %v882_v42 = vmul.f32 %v3658_v1, %v369_v34  ;;  %v390_v34 = vld [vmem:[%s3651_s8 + $0x670] sm:$0xff] }
  0xf5   : > { %v2714_v56 = vpop.eup %2713  ;;  %1875 = vst [vmem:[%s3694_s20 + $0x4d0] sm:$0xff] %v2712_v53  ;;  %2733 = vtanh.f32 %v862_v45  ;;  %v883_v45 = vmul.f32 %v3658_v1, %v370_v37  ;;  %v391_v37 = vld [vmem:[%s3651_s8 + $0x678] sm:$0xff] }
  0xf6   : > { %v2716_v59 = vpop.eup %2715  ;;  %1876 = vst [vmem:[%s3694_s20 + $0x4d8] sm:$0xff] %v2714_v56  ;;  %2735 = vtanh.f32 %v863_v48  ;;  %v884_v48 = vmul.f32 %v3658_v1, %v371_v40  ;;  %v392_v40 = vld [vmem:[%s3651_s8 + $0x680] sm:$0xff] }
  0xf7   : > { %v2718_v62 = vpop.eup %2717  ;;  %1877 = vst [vmem:[%s3694_s20 + $0x4e0] sm:$0xff] %v2716_v59  ;;  %2737 = vtanh.f32 %v864_v51  ;;  %v885_v51 = vmul.f32 %v3658_v1, %v372_v43  ;;  %v393_v43 = vld [vmem:[%s3651_s8 + $0x688] sm:$0xff] }
  0xf8   : > { %v2720_v2 = vpop.eup %2719  ;;  %1878 = vst [vmem:[%s3694_s20 + $0x4e8] sm:$0xff] %v2718_v62  ;;  %2739 = vtanh.f32 %v865_v54  ;;  %v886_v54 = vmul.f32 %v3658_v1, %v373_v46  ;;  %v394_v46 = vld [vmem:[%s3651_s8 + $0x690] sm:$0xff] }
  0xf9   : > { %v2722_v5 = vpop.eup %2721  ;;  %1879 = vst [vmem:[%s3694_s20 + $0x4f0] sm:$0xff] %v2720_v2  ;;  %2741 = vtanh.f32 %v866_v57  ;;  %v887_v57 = vmul.f32 %v3658_v1, %v374_v49  ;;  %v395_v49 = vld [vmem:[%s3651_s8 + $0x698] sm:$0xff] }
  0xfa   : > { %v2724_v8 = vpop.eup %2723  ;;  %1880 = vst [vmem:[%s3694_s20 + $0x4f8] sm:$0xff] %v2722_v5  ;;  %2743 = vtanh.f32 %v867_v60  ;;  %v888_v60 = vmul.f32 %v3658_v1, %v375_v52  ;;  %v396_v52 = vld [vmem:[%s3651_s8 + $0x6a0] sm:$0xff] }
  0xfb   : > { %v2726_v11 = vpop.eup %2725  ;;  %1881 = vst [vmem:[%s3694_s20 + $0x500] sm:$0xff] %v2724_v8  ;;  %2745 = vtanh.f32 %v868_v63  ;;  %v889_v63 = vmul.f32 %v3658_v1, %v376_v55  ;;  %v397_v55 = vld [vmem:[%s3651_s8 + $0x6a8] sm:$0xff] }
  0xfc   : > { %v2728_v14 = vpop.eup %2727  ;;  %1882 = vst [vmem:[%s3694_s20 + $0x508] sm:$0xff] %v2726_v11  ;;  %2747 = vtanh.f32 %v869_v3  ;;  %v890_v3 = vmul.f32 %v3658_v1, %v377_v58  ;;  %v398_v58 = vld [vmem:[%s3651_s8 + $0x6b0] sm:$0xff] }
  0xfd   : > { %v2730_v17 = vpop.eup %2729  ;;  %1883 = vst [vmem:[%s3694_s20 + $0x510] sm:$0xff] %v2728_v14  ;;  %2749 = vtanh.f32 %v870_v6  ;;  %v891_v6 = vmul.f32 %v3658_v1, %v378_v61  ;;  %v399_v61 = vld [vmem:[%s3651_s8 + $0x6b8] sm:$0xff] }
  0xfe   : > { %v2732_v20 = vpop.eup %2731  ;;  %1884 = vst [vmem:[%s3694_s20 + $0x518] sm:$0xff] %v2730_v17  ;;  %2751 = vtanh.f32 %v871_v9  ;;  %v892_v9 = vmul.f32 %v3658_v1, %v379_v0  ;;  %v400_v0 = vld [vmem:[%s3651_s8 + $0x6c0] sm:$0xff] }
  0xff   : > { %v2734_v23 = vpop.eup %2733  ;;  %1885 = vst [vmem:[%s3694_s20 + $0x520] sm:$0xff] %v2732_v20  ;;  %2753 = vtanh.f32 %v872_v12  ;;  %v893_v12 = vmul.f32 %v3658_v1, %v380_v4  ;;  %v401_v4 = vld [vmem:[%s3651_s8 + $0x6c8] sm:$0xff] }
 0x100   : > { %v2736_v26 = vpop.eup %2735  ;;  %1886 = vst [vmem:[%s3694_s20 + $0x528] sm:$0xff] %v2734_v23  ;;  %2755 = vtanh.f32 %v873_v15  ;;  %v894_v15 = vmul.f32 %v3658_v1, %v381_v7  ;;  %v402_v7 = vld [vmem:[%s3651_s8 + $0x6d0] sm:$0xff] }
 0x101   : > { %v2738_v29 = vpop.eup %2737  ;;  %1887 = vst [vmem:[%s3694_s20 + $0x530] sm:$0xff] %v2736_v26  ;;  %2757 = vtanh.f32 %v874_v18  ;;  %v895_v18 = vmul.f32 %v3658_v1, %v382_v10  ;;  %v403_v10 = vld [vmem:[%s3651_s8 + $0x6d8] sm:$0xff] }
 0x102   : > { %v2740_v32 = vpop.eup %2739  ;;  %1888 = vst [vmem:[%s3694_s20 + $0x538] sm:$0xff] %v2738_v29  ;;  %2759 = vtanh.f32 %v875_v21  ;;  %v896_v21 = vmul.f32 %v3658_v1, %v383_v13  ;;  %v404_v13 = vld [vmem:[%s3651_s8 + $0x6e0] sm:$0xff] }
 0x103   : > { %v2742_v35 = vpop.eup %2741  ;;  %1889 = vst [vmem:[%s3694_s20 + $0x540] sm:$0xff] %v2740_v32  ;;  %2761 = vtanh.f32 %v876_v24  ;;  %v897_v24 = vmul.f32 %v3658_v1, %v384_v16  ;;  %v405_v16 = vld [vmem:[%s3651_s8 + $0x6e8] sm:$0xff] }
 0x104   : > { %v2744_v38 = vpop.eup %2743  ;;  %1890 = vst [vmem:[%s3694_s20 + $0x548] sm:$0xff] %v2742_v35  ;;  %2763 = vtanh.f32 %v877_v27  ;;  %v898_v27 = vmul.f32 %v3658_v1, %v385_v19  ;;  %v406_v19 = vld [vmem:[%s3651_s8 + $0x6f0] sm:$0xff] }
 0x105   : > { %v2746_v41 = vpop.eup %2745  ;;  %1891 = vst [vmem:[%s3694_s20 + $0x550] sm:$0xff] %v2744_v38  ;;  %2765 = vtanh.f32 %v878_v30  ;;  %v899_v30 = vmul.f32 %v3658_v1, %v386_v22  ;;  %v407_v22 = vld [vmem:[%s3651_s8 + $0x6f8] sm:$0xff] }
 0x106   : > { %v2748_v44 = vpop.eup %2747  ;;  %1892 = vst [vmem:[%s3694_s20 + $0x558] sm:$0xff] %v2746_v41  ;;  %2767 = vtanh.f32 %v879_v33  ;;  %v900_v33 = vmul.f32 %v3658_v1, %v387_v25  ;;  %v408_v25 = vld [vmem:[%s3651_s8 + $0x700] sm:$0xff] }
 0x107   : > { %v2750_v47 = vpop.eup %2749  ;;  %1893 = vst [vmem:[%s3694_s20 + $0x560] sm:$0xff] %v2748_v44  ;;  %2769 = vtanh.f32 %v880_v36  ;;  %v901_v36 = vmul.f32 %v3658_v1, %v388_v28  ;;  %v409_v28 = vld [vmem:[%s3651_s8 + $0x708] sm:$0xff] }
 0x108   : > { %v2752_v50 = vpop.eup %2751  ;;  %1894 = vst [vmem:[%s3694_s20 + $0x568] sm:$0xff] %v2750_v47  ;;  %2771 = vtanh.f32 %v881_v39  ;;  %v902_v39 = vmul.f32 %v3658_v1, %v389_v31  ;;  %v410_v31 = vld [vmem:[%s3651_s8 + $0x710] sm:$0xff] }
 0x109   : > { %v2754_v53 = vpop.eup %2753  ;;  %1895 = vst [vmem:[%s3694_s20 + $0x570] sm:$0xff] %v2752_v50  ;;  %2773 = vtanh.f32 %v882_v42  ;;  %v903_v42 = vmul.f32 %v3658_v1, %v390_v34  ;;  %v411_v34 = vld [vmem:[%s3651_s8 + $0x718] sm:$0xff] }
 0x10a   : > { %v2756_v56 = vpop.eup %2755  ;;  %1896 = vst [vmem:[%s3694_s20 + $0x578] sm:$0xff] %v2754_v53  ;;  %2775 = vtanh.f32 %v883_v45  ;;  %v904_v45 = vmul.f32 %v3658_v1, %v391_v37  ;;  %v412_v37 = vld [vmem:[%s3651_s8 + $0x720] sm:$0xff] }
 0x10b   : > { %v2758_v59 = vpop.eup %2757  ;;  %1897 = vst [vmem:[%s3694_s20 + $0x580] sm:$0xff] %v2756_v56  ;;  %2777 = vtanh.f32 %v884_v48  ;;  %v905_v48 = vmul.f32 %v3658_v1, %v392_v40  ;;  %v413_v40 = vld [vmem:[%s3651_s8 + $0x728] sm:$0xff] }
 0x10c   : > { %v2760_v62 = vpop.eup %2759  ;;  %1898 = vst [vmem:[%s3694_s20 + $0x588] sm:$0xff] %v2758_v59  ;;  %2779 = vtanh.f32 %v885_v51  ;;  %v906_v51 = vmul.f32 %v3658_v1, %v393_v43  ;;  %v414_v43 = vld [vmem:[%s3651_s8 + $0x730] sm:$0xff] }
 0x10d   : > { %v2762_v2 = vpop.eup %2761  ;;  %1899 = vst [vmem:[%s3694_s20 + $0x590] sm:$0xff] %v2760_v62  ;;  %2781 = vtanh.f32 %v886_v54  ;;  %v907_v54 = vmul.f32 %v3658_v1, %v394_v46  ;;  %v415_v46 = vld [vmem:[%s3651_s8 + $0x738] sm:$0xff] }
 0x10e   : > { %v2764_v5 = vpop.eup %2763  ;;  %1900 = vst [vmem:[%s3694_s20 + $0x598] sm:$0xff] %v2762_v2  ;;  %2783 = vtanh.f32 %v887_v57  ;;  %v908_v57 = vmul.f32 %v3658_v1, %v395_v49  ;;  %v416_v49 = vld [vmem:[%s3651_s8 + $0x740] sm:$0xff] }
 0x10f   : > { %v2766_v8 = vpop.eup %2765  ;;  %1901 = vst [vmem:[%s3694_s20 + $0x5a0] sm:$0xff] %v2764_v5  ;;  %2785 = vtanh.f32 %v888_v60  ;;  %v909_v60 = vmul.f32 %v3658_v1, %v396_v52  ;;  %v417_v52 = vld [vmem:[%s3651_s8 + $0x748] sm:$0xff] }
 0x110   : > { %v2768_v11 = vpop.eup %2767  ;;  %1902 = vst [vmem:[%s3694_s20 + $0x5a8] sm:$0xff] %v2766_v8  ;;  %2787 = vtanh.f32 %v889_v63  ;;  %v910_v63 = vmul.f32 %v3658_v1, %v397_v55  ;;  %v418_v55 = vld [vmem:[%s3651_s8 + $0x750] sm:$0xff] }
 0x111   : > { %v2770_v14 = vpop.eup %2769  ;;  %1903 = vst [vmem:[%s3694_s20 + $0x5b0] sm:$0xff] %v2768_v11  ;;  %2789 = vtanh.f32 %v890_v3  ;;  %v911_v3 = vmul.f32 %v3658_v1, %v398_v58  ;;  %v419_v58 = vld [vmem:[%s3651_s8 + $0x758] sm:$0xff] }
 0x112   : > { %v2772_v17 = vpop.eup %2771  ;;  %1904 = vst [vmem:[%s3694_s20 + $0x5b8] sm:$0xff] %v2770_v14  ;;  %2791 = vtanh.f32 %v891_v6  ;;  %v912_v6 = vmul.f32 %v3658_v1, %v399_v61  ;;  %v420_v61 = vld [vmem:[%s3651_s8 + $0x760] sm:$0xff] }
 0x113   : > { %v2774_v20 = vpop.eup %2773  ;;  %1905 = vst [vmem:[%s3694_s20 + $0x5c0] sm:$0xff] %v2772_v17  ;;  %2793 = vtanh.f32 %v892_v9  ;;  %v913_v9 = vmul.f32 %v3658_v1, %v400_v0  ;;  %v421_v0 = vld [vmem:[%s3651_s8 + $0x768] sm:$0xff] }
 0x114   : > { %v2776_v23 = vpop.eup %2775  ;;  %1906 = vst [vmem:[%s3694_s20 + $0x5c8] sm:$0xff] %v2774_v20  ;;  %2795 = vtanh.f32 %v893_v12  ;;  %v914_v12 = vmul.f32 %v3658_v1, %v401_v4  ;;  %v422_v4 = vld [vmem:[%s3651_s8 + $0x770] sm:$0xff] }
 0x115   : > { %v2778_v26 = vpop.eup %2777  ;;  %1907 = vst [vmem:[%s3694_s20 + $0x5d0] sm:$0xff] %v2776_v23  ;;  %2797 = vtanh.f32 %v894_v15  ;;  %v915_v15 = vmul.f32 %v3658_v1, %v402_v7  ;;  %v423_v7 = vld [vmem:[%s3651_s8 + $0x778] sm:$0xff] }
 0x116   : > { %v2780_v29 = vpop.eup %2779  ;;  %1908 = vst [vmem:[%s3694_s20 + $0x5d8] sm:$0xff] %v2778_v26  ;;  %2799 = vtanh.f32 %v895_v18  ;;  %v916_v18 = vmul.f32 %v3658_v1, %v403_v10  ;;  %v424_v10 = vld [vmem:[%s3651_s8 + $0x780] sm:$0xff] }
 0x117   : > { %v2782_v32 = vpop.eup %2781  ;;  %1909 = vst [vmem:[%s3694_s20 + $0x5e0] sm:$0xff] %v2780_v29  ;;  %2801 = vtanh.f32 %v896_v21  ;;  %v917_v21 = vmul.f32 %v3658_v1, %v404_v13  ;;  %v425_v13 = vld [vmem:[%s3651_s8 + $0x788] sm:$0xff] }
 0x118   : > { %v2784_v35 = vpop.eup %2783  ;;  %1910 = vst [vmem:[%s3694_s20 + $0x5e8] sm:$0xff] %v2782_v32  ;;  %2803 = vtanh.f32 %v897_v24  ;;  %v918_v24 = vmul.f32 %v3658_v1, %v405_v16  ;;  %v426_v16 = vld [vmem:[%s3651_s8 + $0x790] sm:$0xff] }
 0x119   : > { %v2786_v38 = vpop.eup %2785  ;;  %1911 = vst [vmem:[%s3694_s20 + $0x5f0] sm:$0xff] %v2784_v35  ;;  %2805 = vtanh.f32 %v898_v27  ;;  %v919_v27 = vmul.f32 %v3658_v1, %v406_v19  ;;  %v427_v19 = vld [vmem:[%s3651_s8 + $0x798] sm:$0xff] }
 0x11a   : > { %v2788_v41 = vpop.eup %2787  ;;  %1912 = vst [vmem:[%s3694_s20 + $0x5f8] sm:$0xff] %v2786_v38  ;;  %2807 = vtanh.f32 %v899_v30  ;;  %v920_v30 = vmul.f32 %v3658_v1, %v407_v22  ;;  %v428_v22 = vld [vmem:[%s3651_s8 + $0x7a0] sm:$0xff] }
 0x11b   : > { %v2790_v44 = vpop.eup %2789  ;;  %1913 = vst [vmem:[%s3694_s20 + $0x600] sm:$0xff] %v2788_v41  ;;  %2809 = vtanh.f32 %v900_v33  ;;  %v921_v33 = vmul.f32 %v3658_v1, %v408_v25  ;;  %v429_v25 = vld [vmem:[%s3651_s8 + $0x7a8] sm:$0xff] }
 0x11c   : > { %v2792_v47 = vpop.eup %2791  ;;  %1914 = vst [vmem:[%s3694_s20 + $0x608] sm:$0xff] %v2790_v44  ;;  %2811 = vtanh.f32 %v901_v36  ;;  %v922_v36 = vmul.f32 %v3658_v1, %v409_v28  ;;  %v430_v28 = vld [vmem:[%s3651_s8 + $0x7b0] sm:$0xff] }
 0x11d   : > { %v2794_v50 = vpop.eup %2793  ;;  %1915 = vst [vmem:[%s3694_s20 + $0x610] sm:$0xff] %v2792_v47  ;;  %2813 = vtanh.f32 %v902_v39  ;;  %v923_v39 = vmul.f32 %v3658_v1, %v410_v31  ;;  %v431_v31 = vld [vmem:[%s3651_s8 + $0x7b8] sm:$0xff] }
 0x11e   : > { %v2796_v53 = vpop.eup %2795  ;;  %1916 = vst [vmem:[%s3694_s20 + $0x618] sm:$0xff] %v2794_v50  ;;  %2815 = vtanh.f32 %v903_v42  ;;  %v924_v42 = vmul.f32 %v3658_v1, %v411_v34  ;;  %v432_v34 = vld [vmem:[%s3651_s8 + $0x7c0] sm:$0xff] }
 0x11f   : > { %v2798_v56 = vpop.eup %2797  ;;  %1917 = vst [vmem:[%s3694_s20 + $0x620] sm:$0xff] %v2796_v53  ;;  %2817 = vtanh.f32 %v904_v45  ;;  %v925_v45 = vmul.f32 %v3658_v1, %v412_v37  ;;  %v433_v37 = vld [vmem:[%s3651_s8 + $0x7c8] sm:$0xff] }
 0x120   : > { %v2800_v59 = vpop.eup %2799  ;;  %1918 = vst [vmem:[%s3694_s20 + $0x628] sm:$0xff] %v2798_v56  ;;  %2819 = vtanh.f32 %v905_v48  ;;  %v926_v48 = vmul.f32 %v3658_v1, %v413_v40  ;;  %v434_v40 = vld [vmem:[%s3651_s8 + $0x7d0] sm:$0xff] }
 0x121   : > { %v2802_v62 = vpop.eup %2801  ;;  %1919 = vst [vmem:[%s3694_s20 + $0x630] sm:$0xff] %v2800_v59  ;;  %2821 = vtanh.f32 %v906_v51  ;;  %v927_v51 = vmul.f32 %v3658_v1, %v414_v43  ;;  %v435_v43 = vld [vmem:[%s3651_s8 + $0x7d8] sm:$0xff] }
 0x122   : > { %v2804_v2 = vpop.eup %2803  ;;  %1920 = vst [vmem:[%s3694_s20 + $0x638] sm:$0xff] %v2802_v62  ;;  %2823 = vtanh.f32 %v907_v54  ;;  %v928_v54 = vmul.f32 %v3658_v1, %v415_v46  ;;  %v436_v46 = vld [vmem:[%s3651_s8 + $0x7e0] sm:$0xff] }
 0x123   : > { %v2806_v5 = vpop.eup %2805  ;;  %1921 = vst [vmem:[%s3694_s20 + $0x640] sm:$0xff] %v2804_v2  ;;  %2825 = vtanh.f32 %v908_v57  ;;  %v929_v57 = vmul.f32 %v3658_v1, %v416_v49  ;;  %v437_v49 = vld [vmem:[%s3651_s8 + $0x7e8] sm:$0xff] }
 0x124   : > { %v2808_v8 = vpop.eup %2807  ;;  %1922 = vst [vmem:[%s3694_s20 + $0x648] sm:$0xff] %v2806_v5  ;;  %2827 = vtanh.f32 %v909_v60  ;;  %v930_v60 = vmul.f32 %v3658_v1, %v417_v52  ;;  %v438_v52 = vld [vmem:[%s3651_s8 + $0x7f0] sm:$0xff] }
 0x125   : > { %v2810_v11 = vpop.eup %2809  ;;  %1923 = vst [vmem:[%s3694_s20 + $0x650] sm:$0xff] %v2808_v8  ;;  %2829 = vtanh.f32 %v910_v63  ;;  %v931_v63 = vmul.f32 %v3658_v1, %v418_v55  ;;  %v439_v55 = vld [vmem:[%s3651_s8 + $0x7f8] sm:$0xff] }
 0x126   : > { %v2812_v14 = vpop.eup %2811  ;;  %1924 = vst [vmem:[%s3694_s20 + $0x658] sm:$0xff] %v2810_v11  ;;  %2831 = vtanh.f32 %v911_v3  ;;  %v932_v3 = vmul.f32 %v3658_v1, %v419_v58  ;;  %v440_v58 = vld [vmem:[%s3651_s8 + $0x800] sm:$0xff] }
 0x127   : > { %v2814_v17 = vpop.eup %2813  ;;  %1925 = vst [vmem:[%s3694_s20 + $0x660] sm:$0xff] %v2812_v14  ;;  %2833 = vtanh.f32 %v912_v6  ;;  %v933_v6 = vmul.f32 %v3658_v1, %v420_v61  ;;  %v441_v61 = vld [vmem:[%s3651_s8 + $0x808] sm:$0xff] }
 0x128   : > { %v2816_v20 = vpop.eup %2815  ;;  %1926 = vst [vmem:[%s3694_s20 + $0x668] sm:$0xff] %v2814_v17  ;;  %2835 = vtanh.f32 %v913_v9  ;;  %v934_v9 = vmul.f32 %v3658_v1, %v421_v0  ;;  %v442_v0 = vld [vmem:[%s3651_s8 + $0x810] sm:$0xff] }
 0x129   : > { %v2818_v23 = vpop.eup %2817  ;;  %1927 = vst [vmem:[%s3694_s20 + $0x670] sm:$0xff] %v2816_v20  ;;  %2837 = vtanh.f32 %v914_v12  ;;  %v935_v12 = vmul.f32 %v3658_v1, %v422_v4  ;;  %v443_v4 = vld [vmem:[%s3651_s8 + $0x818] sm:$0xff] }
 0x12a   : > { %v2820_v26 = vpop.eup %2819  ;;  %1928 = vst [vmem:[%s3694_s20 + $0x678] sm:$0xff] %v2818_v23  ;;  %2839 = vtanh.f32 %v915_v15  ;;  %v936_v15 = vmul.f32 %v3658_v1, %v423_v7  ;;  %v444_v7 = vld [vmem:[%s3651_s8 + $0x820] sm:$0xff] }
 0x12b   : > { %v2822_v29 = vpop.eup %2821  ;;  %1929 = vst [vmem:[%s3694_s20 + $0x680] sm:$0xff] %v2820_v26  ;;  %2841 = vtanh.f32 %v916_v18  ;;  %v937_v18 = vmul.f32 %v3658_v1, %v424_v10  ;;  %v445_v10 = vld [vmem:[%s3651_s8 + $0x828] sm:$0xff] }
 0x12c   : > { %v2824_v32 = vpop.eup %2823  ;;  %1930 = vst [vmem:[%s3694_s20 + $0x688] sm:$0xff] %v2822_v29  ;;  %2843 = vtanh.f32 %v917_v21  ;;  %v938_v21 = vmul.f32 %v3658_v1, %v425_v13  ;;  %v446_v13 = vld [vmem:[%s3651_s8 + $0x830] sm:$0xff] }
 0x12d   : > { %v2826_v35 = vpop.eup %2825  ;;  %1931 = vst [vmem:[%s3694_s20 + $0x690] sm:$0xff] %v2824_v32  ;;  %2845 = vtanh.f32 %v918_v24  ;;  %v939_v24 = vmul.f32 %v3658_v1, %v426_v16  ;;  %v447_v16 = vld [vmem:[%s3651_s8 + $0x838] sm:$0xff] }
 0x12e   : > { %v2828_v38 = vpop.eup %2827  ;;  %1932 = vst [vmem:[%s3694_s20 + $0x698] sm:$0xff] %v2826_v35  ;;  %2847 = vtanh.f32 %v919_v27  ;;  %v940_v27 = vmul.f32 %v3658_v1, %v427_v19  ;;  %v448_v19 = vld [vmem:[%s3651_s8 + $0x840] sm:$0xff] }
 0x12f   : > { %v2830_v41 = vpop.eup %2829  ;;  %1933 = vst [vmem:[%s3694_s20 + $0x6a0] sm:$0xff] %v2828_v38  ;;  %2849 = vtanh.f32 %v920_v30  ;;  %v941_v30 = vmul.f32 %v3658_v1, %v428_v22  ;;  %v449_v22 = vld [vmem:[%s3651_s8 + $0x848] sm:$0xff] }
 0x130   : > { %v2832_v44 = vpop.eup %2831  ;;  %1934 = vst [vmem:[%s3694_s20 + $0x6a8] sm:$0xff] %v2830_v41  ;;  %2851 = vtanh.f32 %v921_v33  ;;  %v942_v33 = vmul.f32 %v3658_v1, %v429_v25  ;;  %v450_v25 = vld [vmem:[%s3651_s8 + $0x850] sm:$0xff] }
 0x131   : > { %v2834_v47 = vpop.eup %2833  ;;  %1935 = vst [vmem:[%s3694_s20 + $0x6b0] sm:$0xff] %v2832_v44  ;;  %2853 = vtanh.f32 %v922_v36  ;;  %v943_v36 = vmul.f32 %v3658_v1, %v430_v28  ;;  %v451_v28 = vld [vmem:[%s3651_s8 + $0x858] sm:$0xff] }
 0x132   : > { %v2836_v50 = vpop.eup %2835  ;;  %1936 = vst [vmem:[%s3694_s20 + $0x6b8] sm:$0xff] %v2834_v47  ;;  %2855 = vtanh.f32 %v923_v39  ;;  %v944_v39 = vmul.f32 %v3658_v1, %v431_v31  ;;  %v452_v31 = vld [vmem:[%s3651_s8 + $0x860] sm:$0xff] }
 0x133   : > { %v2838_v53 = vpop.eup %2837  ;;  %1937 = vst [vmem:[%s3694_s20 + $0x6c0] sm:$0xff] %v2836_v50  ;;  %2857 = vtanh.f32 %v924_v42  ;;  %v945_v42 = vmul.f32 %v3658_v1, %v432_v34  ;;  %v453_v34 = vld [vmem:[%s3651_s8 + $0x868] sm:$0xff] }
 0x134   : > { %v2840_v56 = vpop.eup %2839  ;;  %1938 = vst [vmem:[%s3694_s20 + $0x6c8] sm:$0xff] %v2838_v53  ;;  %2859 = vtanh.f32 %v925_v45  ;;  %v946_v45 = vmul.f32 %v3658_v1, %v433_v37  ;;  %v454_v37 = vld [vmem:[%s3651_s8 + $0x870] sm:$0xff] }
 0x135   : > { %v2842_v59 = vpop.eup %2841  ;;  %1939 = vst [vmem:[%s3694_s20 + $0x6d0] sm:$0xff] %v2840_v56  ;;  %2861 = vtanh.f32 %v926_v48  ;;  %v947_v48 = vmul.f32 %v3658_v1, %v434_v40  ;;  %v455_v40 = vld [vmem:[%s3651_s8 + $0x878] sm:$0xff] }
 0x136   : > { %v2844_v62 = vpop.eup %2843  ;;  %1940 = vst [vmem:[%s3694_s20 + $0x6d8] sm:$0xff] %v2842_v59  ;;  %2863 = vtanh.f32 %v927_v51  ;;  %v948_v51 = vmul.f32 %v3658_v1, %v435_v43  ;;  %v456_v43 = vld [vmem:[%s3651_s8 + $0x880] sm:$0xff] }
 0x137   : > { %v2846_v2 = vpop.eup %2845  ;;  %1941 = vst [vmem:[%s3694_s20 + $0x6e0] sm:$0xff] %v2844_v62  ;;  %2865 = vtanh.f32 %v928_v54  ;;  %v949_v54 = vmul.f32 %v3658_v1, %v436_v46  ;;  %v457_v46 = vld [vmem:[%s3651_s8 + $0x888] sm:$0xff] }
 0x138   : > { %v2848_v5 = vpop.eup %2847  ;;  %1942 = vst [vmem:[%s3694_s20 + $0x6e8] sm:$0xff] %v2846_v2  ;;  %2867 = vtanh.f32 %v929_v57  ;;  %v950_v57 = vmul.f32 %v3658_v1, %v437_v49  ;;  %v458_v49 = vld [vmem:[%s3651_s8 + $0x890] sm:$0xff] }
 0x139   : > { %v2850_v8 = vpop.eup %2849  ;;  %1943 = vst [vmem:[%s3694_s20 + $0x6f0] sm:$0xff] %v2848_v5  ;;  %2869 = vtanh.f32 %v930_v60  ;;  %v951_v60 = vmul.f32 %v3658_v1, %v438_v52  ;;  %v459_v52 = vld [vmem:[%s3651_s8 + $0x898] sm:$0xff] }
 0x13a   : > { %v2852_v11 = vpop.eup %2851  ;;  %1944 = vst [vmem:[%s3694_s20 + $0x6f8] sm:$0xff] %v2850_v8  ;;  %2871 = vtanh.f32 %v931_v63  ;;  %v952_v63 = vmul.f32 %v3658_v1, %v439_v55  ;;  %v460_v55 = vld [vmem:[%s3651_s8 + $0x8a0] sm:$0xff] }
 0x13b   : > { %v2854_v14 = vpop.eup %2853  ;;  %1945 = vst [vmem:[%s3694_s20 + $0x700] sm:$0xff] %v2852_v11  ;;  %2873 = vtanh.f32 %v932_v3  ;;  %v953_v3 = vmul.f32 %v3658_v1, %v440_v58  ;;  %v461_v58 = vld [vmem:[%s3651_s8 + $0x8a8] sm:$0xff] }
 0x13c   : > { %v2856_v17 = vpop.eup %2855  ;;  %1946 = vst [vmem:[%s3694_s20 + $0x708] sm:$0xff] %v2854_v14  ;;  %2875 = vtanh.f32 %v933_v6  ;;  %v954_v6 = vmul.f32 %v3658_v1, %v441_v61  ;;  %v462_v61 = vld [vmem:[%s3651_s8 + $0x8b0] sm:$0xff] }
 0x13d   : > { %v2858_v20 = vpop.eup %2857  ;;  %1947 = vst [vmem:[%s3694_s20 + $0x710] sm:$0xff] %v2856_v17  ;;  %2877 = vtanh.f32 %v934_v9  ;;  %v955_v9 = vmul.f32 %v3658_v1, %v442_v0  ;;  %v463_v0 = vld [vmem:[%s3651_s8 + $0x8b8] sm:$0xff] }
 0x13e   : > { %v2860_v23 = vpop.eup %2859  ;;  %1948 = vst [vmem:[%s3694_s20 + $0x718] sm:$0xff] %v2858_v20  ;;  %2879 = vtanh.f32 %v935_v12  ;;  %v956_v12 = vmul.f32 %v3658_v1, %v443_v4  ;;  %v464_v4 = vld [vmem:[%s3651_s8 + $0x8c0] sm:$0xff] }
 0x13f   : > { %v2862_v26 = vpop.eup %2861  ;;  %1949 = vst [vmem:[%s3694_s20 + $0x720] sm:$0xff] %v2860_v23  ;;  %2881 = vtanh.f32 %v936_v15  ;;  %v957_v15 = vmul.f32 %v3658_v1, %v444_v7  ;;  %v465_v7 = vld [vmem:[%s3651_s8 + $0x8c8] sm:$0xff] }
 0x140   : > { %v2864_v29 = vpop.eup %2863  ;;  %1950 = vst [vmem:[%s3694_s20 + $0x728] sm:$0xff] %v2862_v26  ;;  %2883 = vtanh.f32 %v937_v18  ;;  %v958_v18 = vmul.f32 %v3658_v1, %v445_v10  ;;  %v466_v10 = vld [vmem:[%s3651_s8 + $0x8d0] sm:$0xff] }
 0x141   : > { %v2866_v32 = vpop.eup %2865  ;;  %1951 = vst [vmem:[%s3694_s20 + $0x730] sm:$0xff] %v2864_v29  ;;  %2885 = vtanh.f32 %v938_v21  ;;  %v959_v21 = vmul.f32 %v3658_v1, %v446_v13  ;;  %v467_v13 = vld [vmem:[%s3651_s8 + $0x8d8] sm:$0xff] }
 0x142   : > { %v2868_v35 = vpop.eup %2867  ;;  %1952 = vst [vmem:[%s3694_s20 + $0x738] sm:$0xff] %v2866_v32  ;;  %2887 = vtanh.f32 %v939_v24  ;;  %v960_v24 = vmul.f32 %v3658_v1, %v447_v16  ;;  %v468_v16 = vld [vmem:[%s3651_s8 + $0x8e0] sm:$0xff] }
 0x143   : > { %v2870_v38 = vpop.eup %2869  ;;  %1953 = vst [vmem:[%s3694_s20 + $0x740] sm:$0xff] %v2868_v35  ;;  %2889 = vtanh.f32 %v940_v27  ;;  %v961_v27 = vmul.f32 %v3658_v1, %v448_v19  ;;  %v469_v19 = vld [vmem:[%s3651_s8 + $0x8e8] sm:$0xff] }
 0x144   : > { %v2872_v41 = vpop.eup %2871  ;;  %1954 = vst [vmem:[%s3694_s20 + $0x748] sm:$0xff] %v2870_v38  ;;  %2891 = vtanh.f32 %v941_v30  ;;  %v962_v30 = vmul.f32 %v3658_v1, %v449_v22  ;;  %v470_v22 = vld [vmem:[%s3651_s8 + $0x8f0] sm:$0xff] }
 0x145   : > { %v2874_v44 = vpop.eup %2873  ;;  %1955 = vst [vmem:[%s3694_s20 + $0x750] sm:$0xff] %v2872_v41  ;;  %2893 = vtanh.f32 %v942_v33  ;;  %v963_v33 = vmul.f32 %v3658_v1, %v450_v25  ;;  %v471_v25 = vld [vmem:[%s3651_s8 + $0x8f8] sm:$0xff] }
 0x146   : > { %v2876_v47 = vpop.eup %2875  ;;  %1956 = vst [vmem:[%s3694_s20 + $0x758] sm:$0xff] %v2874_v44  ;;  %2895 = vtanh.f32 %v943_v36  ;;  %v964_v36 = vmul.f32 %v3658_v1, %v451_v28  ;;  %v472_v28 = vld [vmem:[%s3651_s8 + $0x900] sm:$0xff] }
 0x147   : > { %v2878_v50 = vpop.eup %2877  ;;  %1957 = vst [vmem:[%s3694_s20 + $0x760] sm:$0xff] %v2876_v47  ;;  %2897 = vtanh.f32 %v944_v39  ;;  %v965_v39 = vmul.f32 %v3658_v1, %v452_v31  ;;  %v473_v31 = vld [vmem:[%s3651_s8 + $0x908] sm:$0xff] }
 0x148   : > { %v2880_v53 = vpop.eup %2879  ;;  %1958 = vst [vmem:[%s3694_s20 + $0x768] sm:$0xff] %v2878_v50  ;;  %2899 = vtanh.f32 %v945_v42  ;;  %v966_v42 = vmul.f32 %v3658_v1, %v453_v34  ;;  %v474_v34 = vld [vmem:[%s3651_s8 + $0x910] sm:$0xff] }
 0x149   : > { %v2882_v56 = vpop.eup %2881  ;;  %1959 = vst [vmem:[%s3694_s20 + $0x770] sm:$0xff] %v2880_v53  ;;  %2901 = vtanh.f32 %v946_v45  ;;  %v967_v45 = vmul.f32 %v3658_v1, %v454_v37  ;;  %v475_v37 = vld [vmem:[%s3651_s8 + $0x918] sm:$0xff] }
 0x14a   : > { %v2884_v59 = vpop.eup %2883  ;;  %1960 = vst [vmem:[%s3694_s20 + $0x778] sm:$0xff] %v2882_v56  ;;  %2903 = vtanh.f32 %v947_v48  ;;  %v968_v48 = vmul.f32 %v3658_v1, %v455_v40  ;;  %v476_v40 = vld [vmem:[%s3651_s8 + $0x920] sm:$0xff] }
 0x14b   : > { %v2886_v62 = vpop.eup %2885  ;;  %1961 = vst [vmem:[%s3694_s20 + $0x780] sm:$0xff] %v2884_v59  ;;  %2905 = vtanh.f32 %v948_v51  ;;  %v969_v51 = vmul.f32 %v3658_v1, %v456_v43  ;;  %v477_v43 = vld [vmem:[%s3651_s8 + $0x928] sm:$0xff] }
 0x14c   : > { %v2888_v2 = vpop.eup %2887  ;;  %1962 = vst [vmem:[%s3694_s20 + $0x788] sm:$0xff] %v2886_v62  ;;  %2907 = vtanh.f32 %v949_v54  ;;  %v970_v54 = vmul.f32 %v3658_v1, %v457_v46  ;;  %v478_v46 = vld [vmem:[%s3651_s8 + $0x930] sm:$0xff] }
 0x14d   : > { %v2890_v5 = vpop.eup %2889  ;;  %1963 = vst [vmem:[%s3694_s20 + $0x790] sm:$0xff] %v2888_v2  ;;  %2909 = vtanh.f32 %v950_v57  ;;  %v971_v57 = vmul.f32 %v3658_v1, %v458_v49  ;;  %v479_v49 = vld [vmem:[%s3651_s8 + $0x938] sm:$0xff] }
 0x14e   : > { %v2892_v8 = vpop.eup %2891  ;;  %1964 = vst [vmem:[%s3694_s20 + $0x798] sm:$0xff] %v2890_v5  ;;  %2911 = vtanh.f32 %v951_v60  ;;  %v972_v60 = vmul.f32 %v3658_v1, %v459_v52  ;;  %v480_v52 = vld [vmem:[%s3651_s8 + $0x940] sm:$0xff] }
 0x14f   : > { %v2894_v11 = vpop.eup %2893  ;;  %1965 = vst [vmem:[%s3694_s20 + $0x7a0] sm:$0xff] %v2892_v8  ;;  %2913 = vtanh.f32 %v952_v63  ;;  %v973_v63 = vmul.f32 %v3658_v1, %v460_v55  ;;  %v481_v55 = vld [vmem:[%s3651_s8 + $0x948] sm:$0xff] }
 0x150   : > { %v2896_v14 = vpop.eup %2895  ;;  %1966 = vst [vmem:[%s3694_s20 + $0x7a8] sm:$0xff] %v2894_v11  ;;  %2915 = vtanh.f32 %v953_v3  ;;  %v974_v3 = vmul.f32 %v3658_v1, %v461_v58  ;;  %v482_v58 = vld [vmem:[%s3651_s8 + $0x950] sm:$0xff] }
 0x151   : > { %v2898_v17 = vpop.eup %2897  ;;  %1967 = vst [vmem:[%s3694_s20 + $0x7b0] sm:$0xff] %v2896_v14  ;;  %2917 = vtanh.f32 %v954_v6  ;;  %v975_v6 = vmul.f32 %v3658_v1, %v462_v61  ;;  %v483_v61 = vld [vmem:[%s3651_s8 + $0x958] sm:$0xff] }
 0x152   : > { %v2900_v20 = vpop.eup %2899  ;;  %1968 = vst [vmem:[%s3694_s20 + $0x7b8] sm:$0xff] %v2898_v17  ;;  %2919 = vtanh.f32 %v955_v9  ;;  %v976_v9 = vmul.f32 %v3658_v1, %v463_v0  ;;  %v484_v0 = vld [vmem:[%s3651_s8 + $0x960] sm:$0xff] }
 0x153   : > { %v2902_v23 = vpop.eup %2901  ;;  %1969 = vst [vmem:[%s3694_s20 + $0x7c0] sm:$0xff] %v2900_v20  ;;  %2921 = vtanh.f32 %v956_v12  ;;  %v977_v12 = vmul.f32 %v3658_v1, %v464_v4  ;;  %v485_v4 = vld [vmem:[%s3651_s8 + $0x968] sm:$0xff] }
 0x154   : > { %v2904_v26 = vpop.eup %2903  ;;  %1970 = vst [vmem:[%s3694_s20 + $0x7c8] sm:$0xff] %v2902_v23  ;;  %2923 = vtanh.f32 %v957_v15  ;;  %v978_v15 = vmul.f32 %v3658_v1, %v465_v7  ;;  %v486_v7 = vld [vmem:[%s3651_s8 + $0x970] sm:$0xff] }
 0x155   : > { %v2906_v29 = vpop.eup %2905  ;;  %1971 = vst [vmem:[%s3694_s20 + $0x7d0] sm:$0xff] %v2904_v26  ;;  %2925 = vtanh.f32 %v958_v18  ;;  %v979_v18 = vmul.f32 %v3658_v1, %v466_v10  ;;  %v487_v10 = vld [vmem:[%s3651_s8 + $0x978] sm:$0xff] }
 0x156   : > { %v2908_v32 = vpop.eup %2907  ;;  %1972 = vst [vmem:[%s3694_s20 + $0x7d8] sm:$0xff] %v2906_v29  ;;  %2927 = vtanh.f32 %v959_v21  ;;  %v980_v21 = vmul.f32 %v3658_v1, %v467_v13  ;;  %v488_v13 = vld [vmem:[%s3651_s8 + $0x980] sm:$0xff] }
 0x157   : > { %v2910_v35 = vpop.eup %2909  ;;  %1973 = vst [vmem:[%s3694_s20 + $0x7e0] sm:$0xff] %v2908_v32  ;;  %2929 = vtanh.f32 %v960_v24  ;;  %v981_v24 = vmul.f32 %v3658_v1, %v468_v16  ;;  %v489_v16 = vld [vmem:[%s3651_s8 + $0x988] sm:$0xff] }
 0x158   : > { %v2912_v38 = vpop.eup %2911  ;;  %1974 = vst [vmem:[%s3694_s20 + $0x7e8] sm:$0xff] %v2910_v35  ;;  %2931 = vtanh.f32 %v961_v27  ;;  %v982_v27 = vmul.f32 %v3658_v1, %v469_v19  ;;  %v490_v19 = vld [vmem:[%s3651_s8 + $0x990] sm:$0xff] }
 0x159   : > { %v2914_v41 = vpop.eup %2913  ;;  %1975 = vst [vmem:[%s3694_s20 + $0x7f0] sm:$0xff] %v2912_v38  ;;  %2933 = vtanh.f32 %v962_v30  ;;  %v983_v30 = vmul.f32 %v3658_v1, %v470_v22  ;;  %v491_v22 = vld [vmem:[%s3651_s8 + $0x998] sm:$0xff] }
 0x15a   : > { %v2916_v44 = vpop.eup %2915  ;;  %1976 = vst [vmem:[%s3694_s20 + $0x7f8] sm:$0xff] %v2914_v41  ;;  %2935 = vtanh.f32 %v963_v33  ;;  %v984_v33 = vmul.f32 %v3658_v1, %v471_v25  ;;  %v492_v25 = vld [vmem:[%s3651_s8 + $0x9a0] sm:$0xff] }
 0x15b   : > { %v2918_v47 = vpop.eup %2917  ;;  %1977 = vst [vmem:[%s3694_s20 + $0x800] sm:$0xff] %v2916_v44  ;;  %2937 = vtanh.f32 %v964_v36  ;;  %v985_v36 = vmul.f32 %v3658_v1, %v472_v28  ;;  %v493_v28 = vld [vmem:[%s3651_s8 + $0x9a8] sm:$0xff] }
 0x15c   : > { %v2920_v50 = vpop.eup %2919  ;;  %1978 = vst [vmem:[%s3694_s20 + $0x808] sm:$0xff] %v2918_v47  ;;  %2939 = vtanh.f32 %v965_v39  ;;  %v986_v39 = vmul.f32 %v3658_v1, %v473_v31  ;;  %v494_v31 = vld [vmem:[%s3651_s8 + $0x9b0] sm:$0xff] }
 0x15d   : > { %v2922_v53 = vpop.eup %2921  ;;  %1979 = vst [vmem:[%s3694_s20 + $0x810] sm:$0xff] %v2920_v50  ;;  %2941 = vtanh.f32 %v966_v42  ;;  %v987_v42 = vmul.f32 %v3658_v1, %v474_v34  ;;  %v495_v34 = vld [vmem:[%s3651_s8 + $0x9b8] sm:$0xff] }
 0x15e   : > { %v2924_v56 = vpop.eup %2923  ;;  %1980 = vst [vmem:[%s3694_s20 + $0x818] sm:$0xff] %v2922_v53  ;;  %2943 = vtanh.f32 %v967_v45  ;;  %v988_v45 = vmul.f32 %v3658_v1, %v475_v37  ;;  %v496_v37 = vld [vmem:[%s3651_s8 + $0x9c0] sm:$0xff] }
 0x15f   : > { %v2926_v59 = vpop.eup %2925  ;;  %1981 = vst [vmem:[%s3694_s20 + $0x820] sm:$0xff] %v2924_v56  ;;  %2945 = vtanh.f32 %v968_v48  ;;  %v989_v48 = vmul.f32 %v3658_v1, %v476_v40  ;;  %v497_v40 = vld [vmem:[%s3651_s8 + $0x9c8] sm:$0xff] }
 0x160   : > { %v2928_v62 = vpop.eup %2927  ;;  %1982 = vst [vmem:[%s3694_s20 + $0x828] sm:$0xff] %v2926_v59  ;;  %2947 = vtanh.f32 %v969_v51  ;;  %v990_v51 = vmul.f32 %v3658_v1, %v477_v43  ;;  %v498_v43 = vld [vmem:[%s3651_s8 + $0x9d0] sm:$0xff] }
 0x161   : > { %v2930_v2 = vpop.eup %2929  ;;  %1983 = vst [vmem:[%s3694_s20 + $0x830] sm:$0xff] %v2928_v62  ;;  %2949 = vtanh.f32 %v970_v54  ;;  %v991_v54 = vmul.f32 %v3658_v1, %v478_v46  ;;  %v499_v46 = vld [vmem:[%s3651_s8 + $0x9d8] sm:$0xff] }
 0x162   : > { %v2932_v5 = vpop.eup %2931  ;;  %1984 = vst [vmem:[%s3694_s20 + $0x838] sm:$0xff] %v2930_v2  ;;  %2951 = vtanh.f32 %v971_v57  ;;  %v992_v57 = vmul.f32 %v3658_v1, %v479_v49  ;;  %v500_v49 = vld [vmem:[%s3651_s8 + $0x9e0] sm:$0xff] }
 0x163   : > { %v2934_v8 = vpop.eup %2933  ;;  %1985 = vst [vmem:[%s3694_s20 + $0x840] sm:$0xff] %v2932_v5  ;;  %2953 = vtanh.f32 %v972_v60  ;;  %v993_v60 = vmul.f32 %v3658_v1, %v480_v52  ;;  %v501_v52 = vld [vmem:[%s3651_s8 + $0x9e8] sm:$0xff] }
 0x164   : > { %v2936_v11 = vpop.eup %2935  ;;  %1986 = vst [vmem:[%s3694_s20 + $0x848] sm:$0xff] %v2934_v8  ;;  %2955 = vtanh.f32 %v973_v63  ;;  %v994_v63 = vmul.f32 %v3658_v1, %v481_v55  ;;  %v502_v55 = vld [vmem:[%s3651_s8 + $0x9f0] sm:$0xff] }
 0x165   : > { %v2938_v14 = vpop.eup %2937  ;;  %1987 = vst [vmem:[%s3694_s20 + $0x850] sm:$0xff] %v2936_v11  ;;  %2957 = vtanh.f32 %v974_v3  ;;  %v995_v3 = vmul.f32 %v3658_v1, %v482_v58  ;;  %v503_v58 = vld [vmem:[%s3651_s8 + $0x9f8] sm:$0xff] }
 0x166   : > { %v2940_v17 = vpop.eup %2939  ;;  %1988 = vst [vmem:[%s3694_s20 + $0x858] sm:$0xff] %v2938_v14  ;;  %2959 = vtanh.f32 %v975_v6  ;;  %v996_v6 = vmul.f32 %v3658_v1, %v483_v61  ;;  %v504_v61 = vld [vmem:[%s3651_s8 + $0xa00] sm:$0xff] }
 0x167   : > { %v2942_v20 = vpop.eup %2941  ;;  %1989 = vst [vmem:[%s3694_s20 + $0x860] sm:$0xff] %v2940_v17  ;;  %2961 = vtanh.f32 %v976_v9  ;;  %v997_v9 = vmul.f32 %v3658_v1, %v484_v0  ;;  %v505_v0 = vld [vmem:[%s3651_s8 + $0xa08] sm:$0xff] }
 0x168   : > { %v2944_v23 = vpop.eup %2943  ;;  %1990 = vst [vmem:[%s3694_s20 + $0x868] sm:$0xff] %v2942_v20  ;;  %2963 = vtanh.f32 %v977_v12  ;;  %v998_v12 = vmul.f32 %v3658_v1, %v485_v4  ;;  %v506_v4 = vld [vmem:[%s3651_s8 + $0xa10] sm:$0xff] }
 0x169   : > { %v2946_v26 = vpop.eup %2945  ;;  %1991 = vst [vmem:[%s3694_s20 + $0x870] sm:$0xff] %v2944_v23  ;;  %2965 = vtanh.f32 %v978_v15  ;;  %v999_v15 = vmul.f32 %v3658_v1, %v486_v7  ;;  %v507_v7 = vld [vmem:[%s3651_s8 + $0xa18] sm:$0xff] }
 0x16a   : > { %v2948_v29 = vpop.eup %2947  ;;  %1992 = vst [vmem:[%s3694_s20 + $0x878] sm:$0xff] %v2946_v26  ;;  %2967 = vtanh.f32 %v979_v18  ;;  %v1000_v18 = vmul.f32 %v3658_v1, %v487_v10  ;;  %v508_v10 = vld [vmem:[%s3651_s8 + $0xa20] sm:$0xff] }
 0x16b   : > { %v2950_v32 = vpop.eup %2949  ;;  %1993 = vst [vmem:[%s3694_s20 + $0x880] sm:$0xff] %v2948_v29  ;;  %2969 = vtanh.f32 %v980_v21  ;;  %v1001_v21 = vmul.f32 %v3658_v1, %v488_v13  ;;  %v509_v13 = vld [vmem:[%s3651_s8 + $0xa28] sm:$0xff] }
 0x16c   : > { %v2952_v35 = vpop.eup %2951  ;;  %1994 = vst [vmem:[%s3694_s20 + $0x888] sm:$0xff] %v2950_v32  ;;  %2971 = vtanh.f32 %v981_v24  ;;  %v1002_v24 = vmul.f32 %v3658_v1, %v489_v16  ;;  %v510_v16 = vld [vmem:[%s3651_s8 + $0xa30] sm:$0xff] }
 0x16d   : > { %v2954_v38 = vpop.eup %2953  ;;  %1995 = vst [vmem:[%s3694_s20 + $0x890] sm:$0xff] %v2952_v35  ;;  %2973 = vtanh.f32 %v982_v27  ;;  %v1003_v27 = vmul.f32 %v3658_v1, %v490_v19  ;;  %v511_v19 = vld [vmem:[%s3651_s8 + $0xa38] sm:$0xff] }
 0x16e   : > { %v2956_v41 = vpop.eup %2955  ;;  %1996 = vst [vmem:[%s3694_s20 + $0x898] sm:$0xff] %v2954_v38  ;;  %2975 = vtanh.f32 %v983_v30  ;;  %v1004_v30 = vmul.f32 %v3658_v1, %v491_v22  ;;  %v512_v22 = vld [vmem:[%s3651_s8 + $0xa40] sm:$0xff] }
 0x16f   : > { %v2958_v44 = vpop.eup %2957  ;;  %1997 = vst [vmem:[%s3694_s20 + $0x8a0] sm:$0xff] %v2956_v41  ;;  %2977 = vtanh.f32 %v984_v33  ;;  %v1005_v33 = vmul.f32 %v3658_v1, %v492_v25  ;;  %v513_v25 = vld [vmem:[%s3651_s8 + $0xa48] sm:$0xff] }
 0x170   : > { %v2960_v47 = vpop.eup %2959  ;;  %1998 = vst [vmem:[%s3694_s20 + $0x8a8] sm:$0xff] %v2958_v44  ;;  %2979 = vtanh.f32 %v985_v36  ;;  %v1006_v36 = vmul.f32 %v3658_v1, %v493_v28  ;;  %v514_v28 = vld [vmem:[%s3651_s8 + $0xa50] sm:$0xff] }
 0x171   : > { %v2962_v50 = vpop.eup %2961  ;;  %1999 = vst [vmem:[%s3694_s20 + $0x8b0] sm:$0xff] %v2960_v47  ;;  %2981 = vtanh.f32 %v986_v39  ;;  %v1007_v39 = vmul.f32 %v3658_v1, %v494_v31  ;;  %v515_v31 = vld [vmem:[%s3651_s8 + $0xa58] sm:$0xff] }
 0x172   : > { %v2964_v53 = vpop.eup %2963  ;;  %2000 = vst [vmem:[%s3694_s20 + $0x8b8] sm:$0xff] %v2962_v50  ;;  %2983 = vtanh.f32 %v987_v42  ;;  %v1008_v42 = vmul.f32 %v3658_v1, %v495_v34  ;;  %v516_v34 = vld [vmem:[%s3651_s8 + $0xa60] sm:$0xff] }
 0x173   : > { %v2966_v56 = vpop.eup %2965  ;;  %2001 = vst [vmem:[%s3694_s20 + $0x8c0] sm:$0xff] %v2964_v53  ;;  %2985 = vtanh.f32 %v988_v45  ;;  %v1009_v45 = vmul.f32 %v3658_v1, %v496_v37  ;;  %v517_v37 = vld [vmem:[%s3651_s8 + $0xa68] sm:$0xff] }
 0x174   : > { %v2968_v59 = vpop.eup %2967  ;;  %2002 = vst [vmem:[%s3694_s20 + $0x8c8] sm:$0xff] %v2966_v56  ;;  %2987 = vtanh.f32 %v989_v48  ;;  %v1010_v48 = vmul.f32 %v3658_v1, %v497_v40  ;;  %v518_v40 = vld [vmem:[%s3651_s8 + $0xa70] sm:$0xff] }
 0x175   : > { %v2970_v62 = vpop.eup %2969  ;;  %2003 = vst [vmem:[%s3694_s20 + $0x8d0] sm:$0xff] %v2968_v59  ;;  %2989 = vtanh.f32 %v990_v51  ;;  %v1011_v51 = vmul.f32 %v3658_v1, %v498_v43  ;;  %v519_v43 = vld [vmem:[%s3651_s8 + $0xa78] sm:$0xff] }
 0x176   : > { %v2972_v2 = vpop.eup %2971  ;;  %2004 = vst [vmem:[%s3694_s20 + $0x8d8] sm:$0xff] %v2970_v62  ;;  %2991 = vtanh.f32 %v991_v54  ;;  %v1012_v54 = vmul.f32 %v3658_v1, %v499_v46  ;;  %v520_v46 = vld [vmem:[%s3651_s8 + $0xa80] sm:$0xff] }
 0x177   : > { %v2974_v5 = vpop.eup %2973  ;;  %2005 = vst [vmem:[%s3694_s20 + $0x8e0] sm:$0xff] %v2972_v2  ;;  %2993 = vtanh.f32 %v992_v57  ;;  %v1013_v57 = vmul.f32 %v3658_v1, %v500_v49  ;;  %v521_v49 = vld [vmem:[%s3651_s8 + $0xa88] sm:$0xff] }
 0x178   : > { %v2976_v8 = vpop.eup %2975  ;;  %2006 = vst [vmem:[%s3694_s20 + $0x8e8] sm:$0xff] %v2974_v5  ;;  %2995 = vtanh.f32 %v993_v60  ;;  %v1014_v60 = vmul.f32 %v3658_v1, %v501_v52  ;;  %v522_v52 = vld [vmem:[%s3651_s8 + $0xa90] sm:$0xff] }
 0x179   : > { %v2978_v11 = vpop.eup %2977  ;;  %2007 = vst [vmem:[%s3694_s20 + $0x8f0] sm:$0xff] %v2976_v8  ;;  %2997 = vtanh.f32 %v994_v63  ;;  %v1015_v63 = vmul.f32 %v3658_v1, %v502_v55  ;;  %v523_v55 = vld [vmem:[%s3651_s8 + $0xa98] sm:$0xff] }
 0x17a   : > { %v2980_v14 = vpop.eup %2979  ;;  %2008 = vst [vmem:[%s3694_s20 + $0x8f8] sm:$0xff] %v2978_v11  ;;  %2999 = vtanh.f32 %v995_v3  ;;  %v1016_v3 = vmul.f32 %v3658_v1, %v503_v58  ;;  %v524_v58 = vld [vmem:[%s3651_s8 + $0xaa0] sm:$0xff] }
 0x17b   : > { %v2982_v17 = vpop.eup %2981  ;;  %2009 = vst [vmem:[%s3694_s20 + $0x900] sm:$0xff] %v2980_v14  ;;  %3001 = vtanh.f32 %v996_v6  ;;  %v1017_v6 = vmul.f32 %v3658_v1, %v504_v61  ;;  %v525_v61 = vld [vmem:[%s3651_s8 + $0xaa8] sm:$0xff] }
 0x17c   : > { %v2984_v20 = vpop.eup %2983  ;;  %2010 = vst [vmem:[%s3694_s20 + $0x908] sm:$0xff] %v2982_v17  ;;  %3003 = vtanh.f32 %v997_v9  ;;  %v1018_v9 = vmul.f32 %v3658_v1, %v505_v0  ;;  %v526_v0 = vld [vmem:[%s3651_s8 + $0xab0] sm:$0xff] }
 0x17d   : > { %v2986_v23 = vpop.eup %2985  ;;  %2011 = vst [vmem:[%s3694_s20 + $0x910] sm:$0xff] %v2984_v20  ;;  %3005 = vtanh.f32 %v998_v12  ;;  %v1019_v12 = vmul.f32 %v3658_v1, %v506_v4  ;;  %v527_v4 = vld [vmem:[%s3651_s8 + $0xab8] sm:$0xff] }
 0x17e   : > { %v2988_v26 = vpop.eup %2987  ;;  %2012 = vst [vmem:[%s3694_s20 + $0x918] sm:$0xff] %v2986_v23  ;;  %3007 = vtanh.f32 %v999_v15  ;;  %v1020_v15 = vmul.f32 %v3658_v1, %v507_v7  ;;  %v528_v7 = vld [vmem:[%s3651_s8 + $0xac0] sm:$0xff] }
 0x17f   : > { %v2990_v29 = vpop.eup %2989  ;;  %2013 = vst [vmem:[%s3694_s20 + $0x920] sm:$0xff] %v2988_v26  ;;  %3009 = vtanh.f32 %v1000_v18  ;;  %v1021_v18 = vmul.f32 %v3658_v1, %v508_v10  ;;  %v529_v10 = vld [vmem:[%s3651_s8 + $0xac8] sm:$0xff] }
 0x180   : > { %v2992_v32 = vpop.eup %2991  ;;  %2014 = vst [vmem:[%s3694_s20 + $0x928] sm:$0xff] %v2990_v29  ;;  %3011 = vtanh.f32 %v1001_v21  ;;  %v1022_v21 = vmul.f32 %v3658_v1, %v509_v13  ;;  %v530_v13 = vld [vmem:[%s3651_s8 + $0xad0] sm:$0xff] }
 0x181   : > { %v2994_v35 = vpop.eup %2993  ;;  %2015 = vst [vmem:[%s3694_s20 + $0x930] sm:$0xff] %v2992_v32  ;;  %3013 = vtanh.f32 %v1002_v24  ;;  %v1023_v24 = vmul.f32 %v3658_v1, %v510_v16  ;;  %v531_v16 = vld [vmem:[%s3651_s8 + $0xad8] sm:$0xff] }
 0x182   : > { %v2996_v38 = vpop.eup %2995  ;;  %2016 = vst [vmem:[%s3694_s20 + $0x938] sm:$0xff] %v2994_v35  ;;  %3015 = vtanh.f32 %v1003_v27  ;;  %v1024_v27 = vmul.f32 %v3658_v1, %v511_v19  ;;  %v532_v19 = vld [vmem:[%s3651_s8 + $0xae0] sm:$0xff] }
 0x183   : > { %v2998_v41 = vpop.eup %2997  ;;  %2017 = vst [vmem:[%s3694_s20 + $0x940] sm:$0xff] %v2996_v38  ;;  %3017 = vtanh.f32 %v1004_v30  ;;  %v1025_v30 = vmul.f32 %v3658_v1, %v512_v22  ;;  %v533_v22 = vld [vmem:[%s3651_s8 + $0xae8] sm:$0xff] }
 0x184   : > { %v3000_v44 = vpop.eup %2999  ;;  %2018 = vst [vmem:[%s3694_s20 + $0x948] sm:$0xff] %v2998_v41  ;;  %3019 = vtanh.f32 %v1005_v33  ;;  %v1026_v33 = vmul.f32 %v3658_v1, %v513_v25  ;;  %v534_v25 = vld [vmem:[%s3651_s8 + $0xaf0] sm:$0xff] }
 0x185   : > { %v3002_v47 = vpop.eup %3001  ;;  %2019 = vst [vmem:[%s3694_s20 + $0x950] sm:$0xff] %v3000_v44  ;;  %3021 = vtanh.f32 %v1006_v36  ;;  %v1027_v36 = vmul.f32 %v3658_v1, %v514_v28  ;;  %v535_v28 = vld [vmem:[%s3651_s8 + $0xaf8] sm:$0xff] }
 0x186   : > { %v3004_v50 = vpop.eup %3003  ;;  %2020 = vst [vmem:[%s3694_s20 + $0x958] sm:$0xff] %v3002_v47  ;;  %3023 = vtanh.f32 %v1007_v39  ;;  %v1028_v39 = vmul.f32 %v3658_v1, %v515_v31  ;;  %v536_v31 = vld [vmem:[%s3651_s8 + $0xb00] sm:$0xff] }
 0x187   : > { %v3006_v53 = vpop.eup %3005  ;;  %2021 = vst [vmem:[%s3694_s20 + $0x960] sm:$0xff] %v3004_v50  ;;  %3025 = vtanh.f32 %v1008_v42  ;;  %v1029_v42 = vmul.f32 %v3658_v1, %v516_v34  ;;  %v537_v34 = vld [vmem:[%s3651_s8 + $0xb08] sm:$0xff] }
 0x188   : > { %v3008_v56 = vpop.eup %3007  ;;  %2022 = vst [vmem:[%s3694_s20 + $0x968] sm:$0xff] %v3006_v53  ;;  %3027 = vtanh.f32 %v1009_v45  ;;  %v1030_v45 = vmul.f32 %v3658_v1, %v517_v37  ;;  %v538_v37 = vld [vmem:[%s3651_s8 + $0xb10] sm:$0xff] }
 0x189   : > { %v3010_v59 = vpop.eup %3009  ;;  %2023 = vst [vmem:[%s3694_s20 + $0x970] sm:$0xff] %v3008_v56  ;;  %3029 = vtanh.f32 %v1010_v48  ;;  %v1031_v48 = vmul.f32 %v3658_v1, %v518_v40  ;;  %v539_v40 = vld [vmem:[%s3651_s8 + $0xb18] sm:$0xff] }
 0x18a   : > { %v3012_v62 = vpop.eup %3011  ;;  %2024 = vst [vmem:[%s3694_s20 + $0x978] sm:$0xff] %v3010_v59  ;;  %3031 = vtanh.f32 %v1011_v51  ;;  %v1032_v51 = vmul.f32 %v3658_v1, %v519_v43  ;;  %v540_v43 = vld [vmem:[%s3651_s8 + $0xb20] sm:$0xff] }
 0x18b   : > { %v3014_v2 = vpop.eup %3013  ;;  %2025 = vst [vmem:[%s3694_s20 + $0x980] sm:$0xff] %v3012_v62  ;;  %3033 = vtanh.f32 %v1012_v54  ;;  %v1033_v54 = vmul.f32 %v3658_v1, %v520_v46  ;;  %v541_v46 = vld [vmem:[%s3651_s8 + $0xb28] sm:$0xff] }
 0x18c   : > { %v3016_v5 = vpop.eup %3015  ;;  %2026 = vst [vmem:[%s3694_s20 + $0x988] sm:$0xff] %v3014_v2  ;;  %3035 = vtanh.f32 %v1013_v57  ;;  %v1034_v57 = vmul.f32 %v3658_v1, %v521_v49  ;;  %v542_v49 = vld [vmem:[%s3651_s8 + $0xb30] sm:$0xff] }
 0x18d   : > { %v3018_v8 = vpop.eup %3017  ;;  %2027 = vst [vmem:[%s3694_s20 + $0x990] sm:$0xff] %v3016_v5  ;;  %3037 = vtanh.f32 %v1014_v60  ;;  %v1035_v60 = vmul.f32 %v3658_v1, %v522_v52  ;;  %v543_v52 = vld [vmem:[%s3651_s8 + $0xb38] sm:$0xff] }
 0x18e   : > { %v3020_v11 = vpop.eup %3019  ;;  %2028 = vst [vmem:[%s3694_s20 + $0x998] sm:$0xff] %v3018_v8  ;;  %3039 = vtanh.f32 %v1015_v63  ;;  %v1036_v63 = vmul.f32 %v3658_v1, %v523_v55  ;;  %v544_v55 = vld [vmem:[%s3651_s8 + $0xb40] sm:$0xff] }
 0x18f   : > { %v3022_v14 = vpop.eup %3021  ;;  %2029 = vst [vmem:[%s3694_s20 + $0x9a0] sm:$0xff] %v3020_v11  ;;  %3041 = vtanh.f32 %v1016_v3  ;;  %v1037_v3 = vmul.f32 %v3658_v1, %v524_v58  ;;  %v545_v58 = vld [vmem:[%s3651_s8 + $0xb48] sm:$0xff] }
 0x190   : > { %v3024_v17 = vpop.eup %3023  ;;  %2030 = vst [vmem:[%s3694_s20 + $0x9a8] sm:$0xff] %v3022_v14  ;;  %3043 = vtanh.f32 %v1017_v6  ;;  %v1038_v6 = vmul.f32 %v3658_v1, %v525_v61  ;;  %v546_v61 = vld [vmem:[%s3651_s8 + $0xb50] sm:$0xff] }
 0x191   : > { %v3026_v20 = vpop.eup %3025  ;;  %2031 = vst [vmem:[%s3694_s20 + $0x9b0] sm:$0xff] %v3024_v17  ;;  %3045 = vtanh.f32 %v1018_v9  ;;  %v1039_v9 = vmul.f32 %v3658_v1, %v526_v0  ;;  %v547_v0 = vld [vmem:[%s3651_s8 + $0xb58] sm:$0xff] }
 0x192   : > { %v3028_v23 = vpop.eup %3027  ;;  %2032 = vst [vmem:[%s3694_s20 + $0x9b8] sm:$0xff] %v3026_v20  ;;  %3047 = vtanh.f32 %v1019_v12  ;;  %v1040_v12 = vmul.f32 %v3658_v1, %v527_v4  ;;  %v548_v4 = vld [vmem:[%s3651_s8 + $0xb60] sm:$0xff] }
 0x193   : > { %v3030_v26 = vpop.eup %3029  ;;  %2033 = vst [vmem:[%s3694_s20 + $0x9c0] sm:$0xff] %v3028_v23  ;;  %3049 = vtanh.f32 %v1020_v15  ;;  %v1041_v15 = vmul.f32 %v3658_v1, %v528_v7  ;;  %v549_v7 = vld [vmem:[%s3651_s8 + $0xb68] sm:$0xff] }
 0x194   : > { %v3032_v29 = vpop.eup %3031  ;;  %2034 = vst [vmem:[%s3694_s20 + $0x9c8] sm:$0xff] %v3030_v26  ;;  %3051 = vtanh.f32 %v1021_v18  ;;  %v1042_v18 = vmul.f32 %v3658_v1, %v529_v10  ;;  %v550_v10 = vld [vmem:[%s3651_s8 + $0xb70] sm:$0xff] }
 0x195   : > { %v3034_v32 = vpop.eup %3033  ;;  %2035 = vst [vmem:[%s3694_s20 + $0x9d0] sm:$0xff] %v3032_v29  ;;  %3053 = vtanh.f32 %v1022_v21  ;;  %v1043_v21 = vmul.f32 %v3658_v1, %v530_v13  ;;  %v551_v13 = vld [vmem:[%s3651_s8 + $0xb78] sm:$0xff] }
 0x196   : > { %v3036_v35 = vpop.eup %3035  ;;  %2036 = vst [vmem:[%s3694_s20 + $0x9d8] sm:$0xff] %v3034_v32  ;;  %3055 = vtanh.f32 %v1023_v24  ;;  %v1044_v24 = vmul.f32 %v3658_v1, %v531_v16  ;;  %v552_v16 = vld [vmem:[%s3651_s8 + $0xb80] sm:$0xff] }
 0x197   : > { %v3038_v38 = vpop.eup %3037  ;;  %2037 = vst [vmem:[%s3694_s20 + $0x9e0] sm:$0xff] %v3036_v35  ;;  %3057 = vtanh.f32 %v1024_v27  ;;  %v1045_v27 = vmul.f32 %v3658_v1, %v532_v19  ;;  %v553_v19 = vld [vmem:[%s3651_s8 + $0xb88] sm:$0xff] }
 0x198   : > { %v3040_v41 = vpop.eup %3039  ;;  %2038 = vst [vmem:[%s3694_s20 + $0x9e8] sm:$0xff] %v3038_v38  ;;  %3059 = vtanh.f32 %v1025_v30  ;;  %v1046_v30 = vmul.f32 %v3658_v1, %v533_v22  ;;  %v554_v22 = vld [vmem:[%s3651_s8 + $0xb90] sm:$0xff] }
 0x199   : > { %v3042_v44 = vpop.eup %3041  ;;  %2039 = vst [vmem:[%s3694_s20 + $0x9f0] sm:$0xff] %v3040_v41  ;;  %3061 = vtanh.f32 %v1026_v33  ;;  %v1047_v33 = vmul.f32 %v3658_v1, %v534_v25  ;;  %v555_v25 = vld [vmem:[%s3651_s8 + $0xb98] sm:$0xff] }
 0x19a   : > { %v3044_v47 = vpop.eup %3043  ;;  %2040 = vst [vmem:[%s3694_s20 + $0x9f8] sm:$0xff] %v3042_v44  ;;  %3063 = vtanh.f32 %v1027_v36  ;;  %v1048_v36 = vmul.f32 %v3658_v1, %v535_v28  ;;  %v556_v28 = vld [vmem:[%s3651_s8 + $0xba0] sm:$0xff] }
 0x19b   : > { %v3046_v50 = vpop.eup %3045  ;;  %2041 = vst [vmem:[%s3694_s20 + $0xa00] sm:$0xff] %v3044_v47  ;;  %3065 = vtanh.f32 %v1028_v39  ;;  %v1049_v39 = vmul.f32 %v3658_v1, %v536_v31  ;;  %v557_v31 = vld [vmem:[%s3651_s8 + $0xba8] sm:$0xff] }
 0x19c   : > { %v3048_v53 = vpop.eup %3047  ;;  %2042 = vst [vmem:[%s3694_s20 + $0xa08] sm:$0xff] %v3046_v50  ;;  %3067 = vtanh.f32 %v1029_v42  ;;  %v1050_v42 = vmul.f32 %v3658_v1, %v537_v34  ;;  %v558_v34 = vld [vmem:[%s3651_s8 + $0xbb0] sm:$0xff] }
 0x19d   : > { %v3050_v56 = vpop.eup %3049  ;;  %2043 = vst [vmem:[%s3694_s20 + $0xa10] sm:$0xff] %v3048_v53  ;;  %3069 = vtanh.f32 %v1030_v45  ;;  %v1051_v45 = vmul.f32 %v3658_v1, %v538_v37  ;;  %v559_v37 = vld [vmem:[%s3651_s8 + $0xbb8] sm:$0xff] }
 0x19e   : > { %v3052_v59 = vpop.eup %3051  ;;  %2044 = vst [vmem:[%s3694_s20 + $0xa18] sm:$0xff] %v3050_v56  ;;  %3071 = vtanh.f32 %v1031_v48  ;;  %v1052_v48 = vmul.f32 %v3658_v1, %v539_v40  ;;  %v560_v40 = vld [vmem:[%s3651_s8 + $0xbc0] sm:$0xff] }
 0x19f   : > { %v3054_v62 = vpop.eup %3053  ;;  %2045 = vst [vmem:[%s3694_s20 + $0xa20] sm:$0xff] %v3052_v59  ;;  %3073 = vtanh.f32 %v1032_v51  ;;  %v1053_v51 = vmul.f32 %v3658_v1, %v540_v43  ;;  %v561_v43 = vld [vmem:[%s3651_s8 + $0xbc8] sm:$0xff] }
 0x1a0   : > { %v3056_v2 = vpop.eup %3055  ;;  %2046 = vst [vmem:[%s3694_s20 + $0xa28] sm:$0xff] %v3054_v62  ;;  %3075 = vtanh.f32 %v1033_v54  ;;  %v1054_v54 = vmul.f32 %v3658_v1, %v541_v46  ;;  %v562_v46 = vld [vmem:[%s3651_s8 + $0xbd0] sm:$0xff] }
 0x1a1   : > { %v3058_v5 = vpop.eup %3057  ;;  %2047 = vst [vmem:[%s3694_s20 + $0xa30] sm:$0xff] %v3056_v2  ;;  %3077 = vtanh.f32 %v1034_v57  ;;  %v1055_v57 = vmul.f32 %v3658_v1, %v542_v49  ;;  %v563_v49 = vld [vmem:[%s3651_s8 + $0xbd8] sm:$0xff] }
 0x1a2   : > { %v3060_v8 = vpop.eup %3059  ;;  %2048 = vst [vmem:[%s3694_s20 + $0xa38] sm:$0xff] %v3058_v5  ;;  %3079 = vtanh.f32 %v1035_v60  ;;  %v1056_v60 = vmul.f32 %v3658_v1, %v543_v52  ;;  %v564_v52 = vld [vmem:[%s3651_s8 + $0xbe0] sm:$0xff] }
 0x1a3   : > { %v3062_v11 = vpop.eup %3061  ;;  %2049 = vst [vmem:[%s3694_s20 + $0xa40] sm:$0xff] %v3060_v8  ;;  %3081 = vtanh.f32 %v1036_v63  ;;  %v1057_v63 = vmul.f32 %v3658_v1, %v544_v55  ;;  %v565_v55 = vld [vmem:[%s3651_s8 + $0xbe8] sm:$0xff] }
 0x1a4   : > { %v3064_v14 = vpop.eup %3063  ;;  %2050 = vst [vmem:[%s3694_s20 + $0xa48] sm:$0xff] %v3062_v11  ;;  %3083 = vtanh.f32 %v1037_v3  ;;  %v1058_v3 = vmul.f32 %v3658_v1, %v545_v58  ;;  %v566_v58 = vld [vmem:[%s3651_s8 + $0xbf0] sm:$0xff] }
 0x1a5   : > { %v3066_v17 = vpop.eup %3065  ;;  %2051 = vst [vmem:[%s3694_s20 + $0xa50] sm:$0xff] %v3064_v14  ;;  %3085 = vtanh.f32 %v1038_v6  ;;  %v1059_v6 = vmul.f32 %v3658_v1, %v546_v61  ;;  %v567_v61 = vld [vmem:[%s3651_s8 + $0xbf8] sm:$0xff] }
 0x1a6   : > { %v3068_v20 = vpop.eup %3067  ;;  %2052 = vst [vmem:[%s3694_s20 + $0xa58] sm:$0xff] %v3066_v17  ;;  %3087 = vtanh.f32 %v1039_v9  ;;  %v1060_v9 = vmul.f32 %v3658_v1, %v547_v0  ;;  %v568_v0 = vld [vmem:[%s3651_s8 + $0xc00] sm:$0xff] }
 0x1a7   : > { %v3070_v23 = vpop.eup %3069  ;;  %2053 = vst [vmem:[%s3694_s20 + $0xa60] sm:$0xff] %v3068_v20  ;;  %3089 = vtanh.f32 %v1040_v12  ;;  %v1061_v12 = vmul.f32 %v3658_v1, %v548_v4  ;;  %v569_v4 = vld [vmem:[%s3651_s8 + $0xc08] sm:$0xff] }
 0x1a8   : > { %v3072_v26 = vpop.eup %3071  ;;  %2054 = vst [vmem:[%s3694_s20 + $0xa68] sm:$0xff] %v3070_v23  ;;  %3091 = vtanh.f32 %v1041_v15  ;;  %v1062_v15 = vmul.f32 %v3658_v1, %v549_v7  ;;  %v570_v7 = vld [vmem:[%s3651_s8 + $0xc10] sm:$0xff] }
 0x1a9   : > { %v3074_v29 = vpop.eup %3073  ;;  %2055 = vst [vmem:[%s3694_s20 + $0xa70] sm:$0xff] %v3072_v26  ;;  %3093 = vtanh.f32 %v1042_v18  ;;  %v1063_v18 = vmul.f32 %v3658_v1, %v550_v10  ;;  %v571_v10 = vld [vmem:[%s3651_s8 + $0xc18] sm:$0xff] }
 0x1aa   : > { %v3076_v32 = vpop.eup %3075  ;;  %2056 = vst [vmem:[%s3694_s20 + $0xa78] sm:$0xff] %v3074_v29  ;;  %3095 = vtanh.f32 %v1043_v21  ;;  %v1064_v21 = vmul.f32 %v3658_v1, %v551_v13  ;;  %v572_v13 = vld [vmem:[%s3651_s8 + $0xc20] sm:$0xff] }
 0x1ab   : > { %v3078_v35 = vpop.eup %3077  ;;  %2057 = vst [vmem:[%s3694_s20 + $0xa80] sm:$0xff] %v3076_v32  ;;  %3097 = vtanh.f32 %v1044_v24  ;;  %v1065_v24 = vmul.f32 %v3658_v1, %v552_v16  ;;  %v573_v16 = vld [vmem:[%s3651_s8 + $0xc28] sm:$0xff] }
 0x1ac   : > { %v3080_v38 = vpop.eup %3079  ;;  %2058 = vst [vmem:[%s3694_s20 + $0xa88] sm:$0xff] %v3078_v35  ;;  %3099 = vtanh.f32 %v1045_v27  ;;  %v1066_v27 = vmul.f32 %v3658_v1, %v553_v19  ;;  %v574_v19 = vld [vmem:[%s3651_s8 + $0xc30] sm:$0xff] }
 0x1ad   : > { %v3082_v41 = vpop.eup %3081  ;;  %2059 = vst [vmem:[%s3694_s20 + $0xa90] sm:$0xff] %v3080_v38  ;;  %3101 = vtanh.f32 %v1046_v30  ;;  %v1067_v30 = vmul.f32 %v3658_v1, %v554_v22  ;;  %v575_v22 = vld [vmem:[%s3651_s8 + $0xc38] sm:$0xff] }
 0x1ae   : > { %v3084_v44 = vpop.eup %3083  ;;  %2060 = vst [vmem:[%s3694_s20 + $0xa98] sm:$0xff] %v3082_v41  ;;  %3103 = vtanh.f32 %v1047_v33  ;;  %v1068_v33 = vmul.f32 %v3658_v1, %v555_v25  ;;  %v576_v25 = vld [vmem:[%s3651_s8 + $0xc40] sm:$0xff] }
 0x1af   : > { %v3086_v47 = vpop.eup %3085  ;;  %2061 = vst [vmem:[%s3694_s20 + $0xaa0] sm:$0xff] %v3084_v44  ;;  %3105 = vtanh.f32 %v1048_v36  ;;  %v1069_v36 = vmul.f32 %v3658_v1, %v556_v28  ;;  %v577_v28 = vld [vmem:[%s3651_s8 + $0xc48] sm:$0xff] }
 0x1b0   : > { %v3088_v50 = vpop.eup %3087  ;;  %2062 = vst [vmem:[%s3694_s20 + $0xaa8] sm:$0xff] %v3086_v47  ;;  %3107 = vtanh.f32 %v1049_v39  ;;  %v1070_v39 = vmul.f32 %v3658_v1, %v557_v31  ;;  %v578_v31 = vld [vmem:[%s3651_s8 + $0xc50] sm:$0xff] }
 0x1b1   : > { %v3090_v53 = vpop.eup %3089  ;;  %2063 = vst [vmem:[%s3694_s20 + $0xab0] sm:$0xff] %v3088_v50  ;;  %3109 = vtanh.f32 %v1050_v42  ;;  %v1071_v42 = vmul.f32 %v3658_v1, %v558_v34  ;;  %v579_v34 = vld [vmem:[%s3651_s8 + $0xc58] sm:$0xff] }
 0x1b2   : > { %v3092_v56 = vpop.eup %3091  ;;  %2064 = vst [vmem:[%s3694_s20 + $0xab8] sm:$0xff] %v3090_v53  ;;  %3111 = vtanh.f32 %v1051_v45  ;;  %v1072_v45 = vmul.f32 %v3658_v1, %v559_v37  ;;  %v580_v37 = vld [vmem:[%s3651_s8 + $0xc60] sm:$0xff] }
 0x1b3   : > { %v3094_v59 = vpop.eup %3093  ;;  %2065 = vst [vmem:[%s3694_s20 + $0xac0] sm:$0xff] %v3092_v56  ;;  %3113 = vtanh.f32 %v1052_v48  ;;  %v1073_v48 = vmul.f32 %v3658_v1, %v560_v40  ;;  %v581_v40 = vld [vmem:[%s3651_s8 + $0xc68] sm:$0xff] }
 0x1b4   : > { %v3096_v62 = vpop.eup %3095  ;;  %2066 = vst [vmem:[%s3694_s20 + $0xac8] sm:$0xff] %v3094_v59  ;;  %3115 = vtanh.f32 %v1053_v51  ;;  %v1074_v51 = vmul.f32 %v3658_v1, %v561_v43  ;;  %v582_v43 = vld [vmem:[%s3651_s8 + $0xc70] sm:$0xff] }
 0x1b5   : > { %v3098_v2 = vpop.eup %3097  ;;  %2067 = vst [vmem:[%s3694_s20 + $0xad0] sm:$0xff] %v3096_v62  ;;  %3117 = vtanh.f32 %v1054_v54  ;;  %v1075_v54 = vmul.f32 %v3658_v1, %v562_v46  ;;  %v583_v46 = vld [vmem:[%s3651_s8 + $0xc78] sm:$0xff] }
 0x1b6   : > { %v3100_v5 = vpop.eup %3099  ;;  %2068 = vst [vmem:[%s3694_s20 + $0xad8] sm:$0xff] %v3098_v2  ;;  %3119 = vtanh.f32 %v1055_v57  ;;  %v1076_v57 = vmul.f32 %v3658_v1, %v563_v49  ;;  %v584_v49 = vld [vmem:[%s3651_s8 + $0xc80] sm:$0xff] }
 0x1b7   : > { %v3102_v8 = vpop.eup %3101  ;;  %2069 = vst [vmem:[%s3694_s20 + $0xae0] sm:$0xff] %v3100_v5  ;;  %3121 = vtanh.f32 %v1056_v60  ;;  %v1077_v60 = vmul.f32 %v3658_v1, %v564_v52  ;;  %v585_v52 = vld [vmem:[%s3651_s8 + $0xc88] sm:$0xff] }
 0x1b8   : > { %v3104_v11 = vpop.eup %3103  ;;  %2070 = vst [vmem:[%s3694_s20 + $0xae8] sm:$0xff] %v3102_v8  ;;  %3123 = vtanh.f32 %v1057_v63  ;;  %v1078_v63 = vmul.f32 %v3658_v1, %v565_v55  ;;  %v586_v55 = vld [vmem:[%s3651_s8 + $0xc90] sm:$0xff] }
 0x1b9   : > { %v3106_v14 = vpop.eup %3105  ;;  %2071 = vst [vmem:[%s3694_s20 + $0xaf0] sm:$0xff] %v3104_v11  ;;  %3125 = vtanh.f32 %v1058_v3  ;;  %v1079_v3 = vmul.f32 %v3658_v1, %v566_v58  ;;  %v587_v58 = vld [vmem:[%s3651_s8 + $0xc98] sm:$0xff] }
 0x1ba   : > { %v3108_v17 = vpop.eup %3107  ;;  %2072 = vst [vmem:[%s3694_s20 + $0xaf8] sm:$0xff] %v3106_v14  ;;  %3127 = vtanh.f32 %v1059_v6  ;;  %v1080_v6 = vmul.f32 %v3658_v1, %v567_v61  ;;  %v588_v61 = vld [vmem:[%s3651_s8 + $0xca0] sm:$0xff] }
 0x1bb   : > { %v3110_v20 = vpop.eup %3109  ;;  %2073 = vst [vmem:[%s3694_s20 + $0xb00] sm:$0xff] %v3108_v17  ;;  %3129 = vtanh.f32 %v1060_v9  ;;  %v1081_v9 = vmul.f32 %v3658_v1, %v568_v0  ;;  %v589_v0 = vld [vmem:[%s3651_s8 + $0xca8] sm:$0xff] }
 0x1bc   : > { %v3112_v23 = vpop.eup %3111  ;;  %2074 = vst [vmem:[%s3694_s20 + $0xb08] sm:$0xff] %v3110_v20  ;;  %3131 = vtanh.f32 %v1061_v12  ;;  %v1082_v12 = vmul.f32 %v3658_v1, %v569_v4  ;;  %v590_v4 = vld [vmem:[%s3651_s8 + $0xcb0] sm:$0xff] }
 0x1bd   : > { %v3114_v26 = vpop.eup %3113  ;;  %2075 = vst [vmem:[%s3694_s20 + $0xb10] sm:$0xff] %v3112_v23  ;;  %3133 = vtanh.f32 %v1062_v15  ;;  %v1083_v15 = vmul.f32 %v3658_v1, %v570_v7  ;;  %v591_v7 = vld [vmem:[%s3651_s8 + $0xcb8] sm:$0xff] }
 0x1be   : > { %v3116_v29 = vpop.eup %3115  ;;  %2076 = vst [vmem:[%s3694_s20 + $0xb18] sm:$0xff] %v3114_v26  ;;  %3135 = vtanh.f32 %v1063_v18  ;;  %v1084_v18 = vmul.f32 %v3658_v1, %v571_v10  ;;  %v592_v10 = vld [vmem:[%s3651_s8 + $0xcc0] sm:$0xff] }
 0x1bf   : > { %v3118_v32 = vpop.eup %3117  ;;  %2077 = vst [vmem:[%s3694_s20 + $0xb20] sm:$0xff] %v3116_v29  ;;  %3137 = vtanh.f32 %v1064_v21  ;;  %v1085_v21 = vmul.f32 %v3658_v1, %v572_v13  ;;  %v593_v13 = vld [vmem:[%s3651_s8 + $0xcc8] sm:$0xff] }
 0x1c0   : > { %v3120_v35 = vpop.eup %3119  ;;  %2078 = vst [vmem:[%s3694_s20 + $0xb28] sm:$0xff] %v3118_v32  ;;  %3139 = vtanh.f32 %v1065_v24  ;;  %v1086_v24 = vmul.f32 %v3658_v1, %v573_v16  ;;  %v594_v16 = vld [vmem:[%s3651_s8 + $0xcd0] sm:$0xff] }
 0x1c1   : > { %v3122_v38 = vpop.eup %3121  ;;  %2079 = vst [vmem:[%s3694_s20 + $0xb30] sm:$0xff] %v3120_v35  ;;  %3141 = vtanh.f32 %v1066_v27  ;;  %v1087_v27 = vmul.f32 %v3658_v1, %v574_v19  ;;  %v595_v19 = vld [vmem:[%s3651_s8 + $0xcd8] sm:$0xff] }
 0x1c2   : > { %v3124_v41 = vpop.eup %3123  ;;  %2080 = vst [vmem:[%s3694_s20 + $0xb38] sm:$0xff] %v3122_v38  ;;  %3143 = vtanh.f32 %v1067_v30  ;;  %v1088_v30 = vmul.f32 %v3658_v1, %v575_v22  ;;  %v596_v22 = vld [vmem:[%s3651_s8 + $0xce0] sm:$0xff] }
 0x1c3   : > { %v3126_v44 = vpop.eup %3125  ;;  %2081 = vst [vmem:[%s3694_s20 + $0xb40] sm:$0xff] %v3124_v41  ;;  %3145 = vtanh.f32 %v1068_v33  ;;  %v1089_v33 = vmul.f32 %v3658_v1, %v576_v25  ;;  %v597_v25 = vld [vmem:[%s3651_s8 + $0xce8] sm:$0xff] }
 0x1c4   : > { %v3128_v47 = vpop.eup %3127  ;;  %2082 = vst [vmem:[%s3694_s20 + $0xb48] sm:$0xff] %v3126_v44  ;;  %3147 = vtanh.f32 %v1069_v36  ;;  %v1090_v36 = vmul.f32 %v3658_v1, %v577_v28  ;;  %v598_v28 = vld [vmem:[%s3651_s8 + $0xcf0] sm:$0xff] }
 0x1c5   : > { %v3130_v50 = vpop.eup %3129  ;;  %2083 = vst [vmem:[%s3694_s20 + $0xb50] sm:$0xff] %v3128_v47  ;;  %3149 = vtanh.f32 %v1070_v39  ;;  %v1091_v39 = vmul.f32 %v3658_v1, %v578_v31  ;;  %v599_v31 = vld [vmem:[%s3651_s8 + $0xcf8] sm:$0xff] }
 0x1c6   : > { %v3132_v53 = vpop.eup %3131  ;;  %2084 = vst [vmem:[%s3694_s20 + $0xb58] sm:$0xff] %v3130_v50  ;;  %3151 = vtanh.f32 %v1071_v42  ;;  %v1092_v42 = vmul.f32 %v3658_v1, %v579_v34  ;;  %v600_v34 = vld [vmem:[%s3651_s8 + $0xd00] sm:$0xff] }
 0x1c7   : > { %v3134_v56 = vpop.eup %3133  ;;  %2085 = vst [vmem:[%s3694_s20 + $0xb60] sm:$0xff] %v3132_v53  ;;  %3153 = vtanh.f32 %v1072_v45  ;;  %v1093_v45 = vmul.f32 %v3658_v1, %v580_v37  ;;  %v601_v37 = vld [vmem:[%s3651_s8 + $0xd08] sm:$0xff] }
 0x1c8   : > { %v3136_v59 = vpop.eup %3135  ;;  %2086 = vst [vmem:[%s3694_s20 + $0xb68] sm:$0xff] %v3134_v56  ;;  %3155 = vtanh.f32 %v1073_v48  ;;  %v1094_v48 = vmul.f32 %v3658_v1, %v581_v40  ;;  %v602_v40 = vld [vmem:[%s3651_s8 + $0xd10] sm:$0xff] }
 0x1c9   : > { %v3138_v62 = vpop.eup %3137  ;;  %2087 = vst [vmem:[%s3694_s20 + $0xb70] sm:$0xff] %v3136_v59  ;;  %3157 = vtanh.f32 %v1074_v51  ;;  %v1095_v51 = vmul.f32 %v3658_v1, %v582_v43  ;;  %v603_v43 = vld [vmem:[%s3651_s8 + $0xd18] sm:$0xff] }
 0x1ca   : > { %v3140_v2 = vpop.eup %3139  ;;  %2088 = vst [vmem:[%s3694_s20 + $0xb78] sm:$0xff] %v3138_v62  ;;  %3159 = vtanh.f32 %v1075_v54  ;;  %v1096_v54 = vmul.f32 %v3658_v1, %v583_v46  ;;  %v604_v46 = vld [vmem:[%s3651_s8 + $0xd20] sm:$0xff] }
 0x1cb   : > { %v3142_v5 = vpop.eup %3141  ;;  %2089 = vst [vmem:[%s3694_s20 + $0xb80] sm:$0xff] %v3140_v2  ;;  %3161 = vtanh.f32 %v1076_v57  ;;  %v1097_v57 = vmul.f32 %v3658_v1, %v584_v49  ;;  %v605_v49 = vld [vmem:[%s3651_s8 + $0xd28] sm:$0xff] }
 0x1cc   : > { %v3144_v8 = vpop.eup %3143  ;;  %2090 = vst [vmem:[%s3694_s20 + $0xb88] sm:$0xff] %v3142_v5  ;;  %3163 = vtanh.f32 %v1077_v60  ;;  %v1098_v60 = vmul.f32 %v3658_v1, %v585_v52  ;;  %v606_v52 = vld [vmem:[%s3651_s8 + $0xd30] sm:$0xff] }
 0x1cd   : > { %v3146_v11 = vpop.eup %3145  ;;  %2091 = vst [vmem:[%s3694_s20 + $0xb90] sm:$0xff] %v3144_v8  ;;  %3165 = vtanh.f32 %v1078_v63  ;;  %v1099_v63 = vmul.f32 %v3658_v1, %v586_v55  ;;  %v607_v55 = vld [vmem:[%s3651_s8 + $0xd38] sm:$0xff] }
 0x1ce   : > { %v3148_v14 = vpop.eup %3147  ;;  %2092 = vst [vmem:[%s3694_s20 + $0xb98] sm:$0xff] %v3146_v11  ;;  %3167 = vtanh.f32 %v1079_v3  ;;  %v1100_v3 = vmul.f32 %v3658_v1, %v587_v58  ;;  %v608_v58 = vld [vmem:[%s3651_s8 + $0xd40] sm:$0xff] }
 0x1cf   : > { %v3150_v17 = vpop.eup %3149  ;;  %2093 = vst [vmem:[%s3694_s20 + $0xba0] sm:$0xff] %v3148_v14  ;;  %3169 = vtanh.f32 %v1080_v6  ;;  %v1101_v6 = vmul.f32 %v3658_v1, %v588_v61  ;;  %v609_v61 = vld [vmem:[%s3651_s8 + $0xd48] sm:$0xff] }
 0x1d0   : > { %v3152_v20 = vpop.eup %3151  ;;  %2094 = vst [vmem:[%s3694_s20 + $0xba8] sm:$0xff] %v3150_v17  ;;  %3171 = vtanh.f32 %v1081_v9  ;;  %v1102_v9 = vmul.f32 %v3658_v1, %v589_v0  ;;  %v610_v0 = vld [vmem:[%s3651_s8 + $0xd50] sm:$0xff] }
 0x1d1   : > { %v3154_v23 = vpop.eup %3153  ;;  %2095 = vst [vmem:[%s3694_s20 + $0xbb0] sm:$0xff] %v3152_v20  ;;  %3173 = vtanh.f32 %v1082_v12  ;;  %v1103_v12 = vmul.f32 %v3658_v1, %v590_v4  ;;  %v611_v4 = vld [vmem:[%s3651_s8 + $0xd58] sm:$0xff] }
 0x1d2   : > { %v3156_v26 = vpop.eup %3155  ;;  %2096 = vst [vmem:[%s3694_s20 + $0xbb8] sm:$0xff] %v3154_v23  ;;  %3175 = vtanh.f32 %v1083_v15  ;;  %v1104_v15 = vmul.f32 %v3658_v1, %v591_v7  ;;  %v612_v7 = vld [vmem:[%s3651_s8 + $0xd60] sm:$0xff] }
 0x1d3   : > { %v3158_v29 = vpop.eup %3157  ;;  %2097 = vst [vmem:[%s3694_s20 + $0xbc0] sm:$0xff] %v3156_v26  ;;  %3177 = vtanh.f32 %v1084_v18  ;;  %v1105_v18 = vmul.f32 %v3658_v1, %v592_v10  ;;  %v613_v10 = vld [vmem:[%s3651_s8 + $0xd68] sm:$0xff] }
 0x1d4   : > { %v3160_v32 = vpop.eup %3159  ;;  %2098 = vst [vmem:[%s3694_s20 + $0xbc8] sm:$0xff] %v3158_v29  ;;  %3179 = vtanh.f32 %v1085_v21  ;;  %v1106_v21 = vmul.f32 %v3658_v1, %v593_v13  ;;  %v614_v13 = vld [vmem:[%s3651_s8 + $0xd70] sm:$0xff] }
 0x1d5   : > { %v3162_v35 = vpop.eup %3161  ;;  %2099 = vst [vmem:[%s3694_s20 + $0xbd0] sm:$0xff] %v3160_v32  ;;  %3181 = vtanh.f32 %v1086_v24  ;;  %v1107_v24 = vmul.f32 %v3658_v1, %v594_v16  ;;  %v615_v16 = vld [vmem:[%s3651_s8 + $0xd78] sm:$0xff] }
 0x1d6   : > { %v3164_v38 = vpop.eup %3163  ;;  %2100 = vst [vmem:[%s3694_s20 + $0xbd8] sm:$0xff] %v3162_v35  ;;  %3183 = vtanh.f32 %v1087_v27  ;;  %v1108_v27 = vmul.f32 %v3658_v1, %v595_v19  ;;  %v616_v19 = vld [vmem:[%s3651_s8 + $0xd80] sm:$0xff] }
 0x1d7   : > { %v3166_v41 = vpop.eup %3165  ;;  %2101 = vst [vmem:[%s3694_s20 + $0xbe0] sm:$0xff] %v3164_v38  ;;  %3185 = vtanh.f32 %v1088_v30  ;;  %v1109_v30 = vmul.f32 %v3658_v1, %v596_v22  ;;  %v617_v22 = vld [vmem:[%s3651_s8 + $0xd88] sm:$0xff] }
 0x1d8   : > { %v3168_v44 = vpop.eup %3167  ;;  %2102 = vst [vmem:[%s3694_s20 + $0xbe8] sm:$0xff] %v3166_v41  ;;  %3187 = vtanh.f32 %v1089_v33  ;;  %v1110_v33 = vmul.f32 %v3658_v1, %v597_v25  ;;  %v618_v25 = vld [vmem:[%s3651_s8 + $0xd90] sm:$0xff] }
 0x1d9   : > { %v3170_v47 = vpop.eup %3169  ;;  %2103 = vst [vmem:[%s3694_s20 + $0xbf0] sm:$0xff] %v3168_v44  ;;  %3189 = vtanh.f32 %v1090_v36  ;;  %v1111_v36 = vmul.f32 %v3658_v1, %v598_v28  ;;  %v619_v28 = vld [vmem:[%s3651_s8 + $0xd98] sm:$0xff] }
 0x1da   : > { %v3172_v50 = vpop.eup %3171  ;;  %2104 = vst [vmem:[%s3694_s20 + $0xbf8] sm:$0xff] %v3170_v47  ;;  %3191 = vtanh.f32 %v1091_v39  ;;  %v1112_v39 = vmul.f32 %v3658_v1, %v599_v31  ;;  %v620_v31 = vld [vmem:[%s3651_s8 + $0xda0] sm:$0xff] }
 0x1db   : > { %v3174_v53 = vpop.eup %3173  ;;  %2105 = vst [vmem:[%s3694_s20 + $0xc00] sm:$0xff] %v3172_v50  ;;  %3193 = vtanh.f32 %v1092_v42  ;;  %v1113_v42 = vmul.f32 %v3658_v1, %v600_v34  ;;  %v621_v34 = vld [vmem:[%s3651_s8 + $0xda8] sm:$0xff] }
 0x1dc   : > { %v3176_v56 = vpop.eup %3175  ;;  %2106 = vst [vmem:[%s3694_s20 + $0xc08] sm:$0xff] %v3174_v53  ;;  %3195 = vtanh.f32 %v1093_v45  ;;  %v1114_v45 = vmul.f32 %v3658_v1, %v601_v37  ;;  %v622_v37 = vld [vmem:[%s3651_s8 + $0xdb0] sm:$0xff] }
 0x1dd   : > { %v3178_v59 = vpop.eup %3177  ;;  %2107 = vst [vmem:[%s3694_s20 + $0xc10] sm:$0xff] %v3176_v56  ;;  %3197 = vtanh.f32 %v1094_v48  ;;  %v1115_v48 = vmul.f32 %v3658_v1, %v602_v40  ;;  %v623_v40 = vld [vmem:[%s3651_s8 + $0xdb8] sm:$0xff] }
 0x1de   : > { %v3180_v62 = vpop.eup %3179  ;;  %2108 = vst [vmem:[%s3694_s20 + $0xc18] sm:$0xff] %v3178_v59  ;;  %3199 = vtanh.f32 %v1095_v51  ;;  %v1116_v51 = vmul.f32 %v3658_v1, %v603_v43  ;;  %v624_v43 = vld [vmem:[%s3651_s8 + $0xdc0] sm:$0xff] }
 0x1df   : > { %v3182_v2 = vpop.eup %3181  ;;  %2109 = vst [vmem:[%s3694_s20 + $0xc20] sm:$0xff] %v3180_v62  ;;  %3201 = vtanh.f32 %v1096_v54  ;;  %v1117_v54 = vmul.f32 %v3658_v1, %v604_v46  ;;  %v625_v46 = vld [vmem:[%s3651_s8 + $0xdc8] sm:$0xff] }
 0x1e0   : > { %v3184_v5 = vpop.eup %3183  ;;  %2110 = vst [vmem:[%s3694_s20 + $0xc28] sm:$0xff] %v3182_v2  ;;  %3203 = vtanh.f32 %v1097_v57  ;;  %v1118_v57 = vmul.f32 %v3658_v1, %v605_v49  ;;  %v626_v49 = vld [vmem:[%s3651_s8 + $0xdd0] sm:$0xff] }
 0x1e1   : > { %v3186_v8 = vpop.eup %3185  ;;  %2111 = vst [vmem:[%s3694_s20 + $0xc30] sm:$0xff] %v3184_v5  ;;  %3205 = vtanh.f32 %v1098_v60  ;;  %v1119_v60 = vmul.f32 %v3658_v1, %v606_v52  ;;  %v627_v52 = vld [vmem:[%s3651_s8 + $0xdd8] sm:$0xff] }
 0x1e2   : > { %v3188_v11 = vpop.eup %3187  ;;  %2112 = vst [vmem:[%s3694_s20 + $0xc38] sm:$0xff] %v3186_v8  ;;  %3207 = vtanh.f32 %v1099_v63  ;;  %v1120_v63 = vmul.f32 %v3658_v1, %v607_v55  ;;  %v628_v55 = vld [vmem:[%s3651_s8 + $0xde0] sm:$0xff] }
 0x1e3   : > { %v3190_v14 = vpop.eup %3189  ;;  %2113 = vst [vmem:[%s3694_s20 + $0xc40] sm:$0xff] %v3188_v11  ;;  %3209 = vtanh.f32 %v1100_v3  ;;  %v1121_v3 = vmul.f32 %v3658_v1, %v608_v58  ;;  %v629_v58 = vld [vmem:[%s3651_s8 + $0xde8] sm:$0xff] }
 0x1e4   : > { %v3192_v17 = vpop.eup %3191  ;;  %2114 = vst [vmem:[%s3694_s20 + $0xc48] sm:$0xff] %v3190_v14  ;;  %3211 = vtanh.f32 %v1101_v6  ;;  %v1122_v6 = vmul.f32 %v3658_v1, %v609_v61  ;;  %v630_v61 = vld [vmem:[%s3651_s8 + $0xdf0] sm:$0xff] }
 0x1e5   : > { %v3194_v20 = vpop.eup %3193  ;;  %2115 = vst [vmem:[%s3694_s20 + $0xc50] sm:$0xff] %v3192_v17  ;;  %3213 = vtanh.f32 %v1102_v9  ;;  %v1123_v9 = vmul.f32 %v3658_v1, %v610_v0  ;;  %v631_v0 = vld [vmem:[%s3651_s8 + $0xdf8] sm:$0xff] }
 0x1e6   : > { %v3196_v23 = vpop.eup %3195  ;;  %2116 = vst [vmem:[%s3694_s20 + $0xc58] sm:$0xff] %v3194_v20  ;;  %3215 = vtanh.f32 %v1103_v12  ;;  %v1124_v12 = vmul.f32 %v3658_v1, %v611_v4  ;;  %v632_v4 = vld [vmem:[%s3651_s8 + $0xe00] sm:$0xff] }
 0x1e7   : > { %v3198_v26 = vpop.eup %3197  ;;  %2117 = vst [vmem:[%s3694_s20 + $0xc60] sm:$0xff] %v3196_v23  ;;  %3217 = vtanh.f32 %v1104_v15  ;;  %v1125_v15 = vmul.f32 %v3658_v1, %v612_v7  ;;  %v633_v7 = vld [vmem:[%s3651_s8 + $0xe08] sm:$0xff] }
 0x1e8   : > { %v3200_v29 = vpop.eup %3199  ;;  %2118 = vst [vmem:[%s3694_s20 + $0xc68] sm:$0xff] %v3198_v26  ;;  %3219 = vtanh.f32 %v1105_v18  ;;  %v1126_v18 = vmul.f32 %v3658_v1, %v613_v10  ;;  %v634_v10 = vld [vmem:[%s3651_s8 + $0xe10] sm:$0xff] }
 0x1e9   : > { %v3202_v32 = vpop.eup %3201  ;;  %2119 = vst [vmem:[%s3694_s20 + $0xc70] sm:$0xff] %v3200_v29  ;;  %3221 = vtanh.f32 %v1106_v21  ;;  %v1127_v21 = vmul.f32 %v3658_v1, %v614_v13  ;;  %v635_v13 = vld [vmem:[%s3651_s8 + $0xe18] sm:$0xff] }
 0x1ea   : > { %v3204_v35 = vpop.eup %3203  ;;  %2120 = vst [vmem:[%s3694_s20 + $0xc78] sm:$0xff] %v3202_v32  ;;  %3223 = vtanh.f32 %v1107_v24  ;;  %v1128_v24 = vmul.f32 %v3658_v1, %v615_v16  ;;  %v636_v16 = vld [vmem:[%s3651_s8 + $0xe20] sm:$0xff] }
 0x1eb   : > { %v3206_v38 = vpop.eup %3205  ;;  %2121 = vst [vmem:[%s3694_s20 + $0xc80] sm:$0xff] %v3204_v35  ;;  %3225 = vtanh.f32 %v1108_v27  ;;  %v1129_v27 = vmul.f32 %v3658_v1, %v616_v19  ;;  %v637_v19 = vld [vmem:[%s3651_s8 + $0xe28] sm:$0xff] }
 0x1ec   : > { %v3208_v41 = vpop.eup %3207  ;;  %2122 = vst [vmem:[%s3694_s20 + $0xc88] sm:$0xff] %v3206_v38  ;;  %3227 = vtanh.f32 %v1109_v30  ;;  %v1130_v30 = vmul.f32 %v3658_v1, %v617_v22  ;;  %v638_v22 = vld [vmem:[%s3651_s8 + $0xe30] sm:$0xff] }
 0x1ed   : > { %v3210_v44 = vpop.eup %3209  ;;  %2123 = vst [vmem:[%s3694_s20 + $0xc90] sm:$0xff] %v3208_v41  ;;  %3229 = vtanh.f32 %v1110_v33  ;;  %v1131_v33 = vmul.f32 %v3658_v1, %v618_v25  ;;  %v639_v25 = vld [vmem:[%s3651_s8 + $0xe38] sm:$0xff] }
 0x1ee   : > { %v3212_v47 = vpop.eup %3211  ;;  %2124 = vst [vmem:[%s3694_s20 + $0xc98] sm:$0xff] %v3210_v44  ;;  %3231 = vtanh.f32 %v1111_v36  ;;  %v1132_v36 = vmul.f32 %v3658_v1, %v619_v28  ;;  %v640_v28 = vld [vmem:[%s3651_s8 + $0xe40] sm:$0xff] }
 0x1ef   : > { %v3214_v50 = vpop.eup %3213  ;;  %2125 = vst [vmem:[%s3694_s20 + $0xca0] sm:$0xff] %v3212_v47  ;;  %3233 = vtanh.f32 %v1112_v39  ;;  %v1133_v39 = vmul.f32 %v3658_v1, %v620_v31  ;;  %v641_v31 = vld [vmem:[%s3651_s8 + $0xe48] sm:$0xff] }
 0x1f0   : > { %v3216_v53 = vpop.eup %3215  ;;  %2126 = vst [vmem:[%s3694_s20 + $0xca8] sm:$0xff] %v3214_v50  ;;  %3235 = vtanh.f32 %v1113_v42  ;;  %v1134_v42 = vmul.f32 %v3658_v1, %v621_v34  ;;  %v642_v34 = vld [vmem:[%s3651_s8 + $0xe50] sm:$0xff] }
 0x1f1   : > { %v3218_v56 = vpop.eup %3217  ;;  %2127 = vst [vmem:[%s3694_s20 + $0xcb0] sm:$0xff] %v3216_v53  ;;  %3237 = vtanh.f32 %v1114_v45  ;;  %v1135_v45 = vmul.f32 %v3658_v1, %v622_v37  ;;  %v643_v37 = vld [vmem:[%s3651_s8 + $0xe58] sm:$0xff] }
 0x1f2   : > { %v3220_v59 = vpop.eup %3219  ;;  %2128 = vst [vmem:[%s3694_s20 + $0xcb8] sm:$0xff] %v3218_v56  ;;  %3239 = vtanh.f32 %v1115_v48  ;;  %v1136_v48 = vmul.f32 %v3658_v1, %v623_v40  ;;  %v644_v40 = vld [vmem:[%s3651_s8 + $0xe60] sm:$0xff] }
 0x1f3   : > { %v3222_v62 = vpop.eup %3221  ;;  %2129 = vst [vmem:[%s3694_s20 + $0xcc0] sm:$0xff] %v3220_v59  ;;  %3241 = vtanh.f32 %v1116_v51  ;;  %v1137_v51 = vmul.f32 %v3658_v1, %v624_v43  ;;  %v645_v43 = vld [vmem:[%s3651_s8 + $0xe68] sm:$0xff] }
 0x1f4   : > { %v3224_v2 = vpop.eup %3223  ;;  %2130 = vst [vmem:[%s3694_s20 + $0xcc8] sm:$0xff] %v3222_v62  ;;  %3243 = vtanh.f32 %v1117_v54  ;;  %v1138_v54 = vmul.f32 %v3658_v1, %v625_v46  ;;  %v646_v46 = vld [vmem:[%s3651_s8 + $0xe70] sm:$0xff] }
 0x1f5   : > { %v3226_v5 = vpop.eup %3225  ;;  %2131 = vst [vmem:[%s3694_s20 + $0xcd0] sm:$0xff] %v3224_v2  ;;  %3245 = vtanh.f32 %v1118_v57  ;;  %v1139_v57 = vmul.f32 %v3658_v1, %v626_v49  ;;  %v647_v49 = vld [vmem:[%s3651_s8 + $0xe78] sm:$0xff] }
 0x1f6   : > { %v3228_v8 = vpop.eup %3227  ;;  %2132 = vst [vmem:[%s3694_s20 + $0xcd8] sm:$0xff] %v3226_v5  ;;  %3247 = vtanh.f32 %v1119_v60  ;;  %v1140_v60 = vmul.f32 %v3658_v1, %v627_v52  ;;  %v648_v52 = vld [vmem:[%s3651_s8 + $0xe80] sm:$0xff] }
 0x1f7   : > { %v3230_v11 = vpop.eup %3229  ;;  %2133 = vst [vmem:[%s3694_s20 + $0xce0] sm:$0xff] %v3228_v8  ;;  %3249 = vtanh.f32 %v1120_v63  ;;  %v1141_v63 = vmul.f32 %v3658_v1, %v628_v55  ;;  %v649_v55 = vld [vmem:[%s3651_s8 + $0xe88] sm:$0xff] }
 0x1f8   : > { %v3232_v14 = vpop.eup %3231  ;;  %2134 = vst [vmem:[%s3694_s20 + $0xce8] sm:$0xff] %v3230_v11  ;;  %3251 = vtanh.f32 %v1121_v3  ;;  %v1142_v3 = vmul.f32 %v3658_v1, %v629_v58  ;;  %v650_v58 = vld [vmem:[%s3651_s8 + $0xe90] sm:$0xff] }
 0x1f9   : > { %v3234_v17 = vpop.eup %3233  ;;  %2135 = vst [vmem:[%s3694_s20 + $0xcf0] sm:$0xff] %v3232_v14  ;;  %3253 = vtanh.f32 %v1122_v6  ;;  %v1143_v6 = vmul.f32 %v3658_v1, %v630_v61  ;;  %v651_v61 = vld [vmem:[%s3651_s8 + $0xe98] sm:$0xff] }
 0x1fa   : > { %v3236_v20 = vpop.eup %3235  ;;  %2136 = vst [vmem:[%s3694_s20 + $0xcf8] sm:$0xff] %v3234_v17  ;;  %3255 = vtanh.f32 %v1123_v9  ;;  %v1144_v9 = vmul.f32 %v3658_v1, %v631_v0  ;;  %v652_v0 = vld [vmem:[%s3651_s8 + $0xea0] sm:$0xff] }
 0x1fb   : > { %v3238_v23 = vpop.eup %3237  ;;  %2137 = vst [vmem:[%s3694_s20 + $0xd00] sm:$0xff] %v3236_v20  ;;  %3257 = vtanh.f32 %v1124_v12  ;;  %v1145_v12 = vmul.f32 %v3658_v1, %v632_v4  ;;  %v653_v4 = vld [vmem:[%s3651_s8 + $0xea8] sm:$0xff] }
 0x1fc   : > { %v3240_v26 = vpop.eup %3239  ;;  %2138 = vst [vmem:[%s3694_s20 + $0xd08] sm:$0xff] %v3238_v23  ;;  %3259 = vtanh.f32 %v1125_v15  ;;  %v1146_v15 = vmul.f32 %v3658_v1, %v633_v7  ;;  %v654_v7 = vld [vmem:[%s3651_s8 + $0xeb0] sm:$0xff] }
 0x1fd   : > { %v3242_v29 = vpop.eup %3241  ;;  %2139 = vst [vmem:[%s3694_s20 + $0xd10] sm:$0xff] %v3240_v26  ;;  %3261 = vtanh.f32 %v1126_v18  ;;  %v1147_v18 = vmul.f32 %v3658_v1, %v634_v10  ;;  %v655_v10 = vld [vmem:[%s3651_s8 + $0xeb8] sm:$0xff] }
 0x1fe   : > { %v3244_v32 = vpop.eup %3243  ;;  %2140 = vst [vmem:[%s3694_s20 + $0xd18] sm:$0xff] %v3242_v29  ;;  %3263 = vtanh.f32 %v1127_v21  ;;  %v1148_v21 = vmul.f32 %v3658_v1, %v635_v13  ;;  %v656_v13 = vld [vmem:[%s3651_s8 + $0xec0] sm:$0xff] }
 0x1ff   : > { %v3246_v35 = vpop.eup %3245  ;;  %2141 = vst [vmem:[%s3694_s20 + $0xd20] sm:$0xff] %v3244_v32  ;;  %3265 = vtanh.f32 %v1128_v24  ;;  %v1149_v24 = vmul.f32 %v3658_v1, %v636_v16  ;;  %v657_v16 = vld [vmem:[%s3651_s8 + $0xec8] sm:$0xff] }
 0x200   : > { %v3248_v38 = vpop.eup %3247  ;;  %2142 = vst [vmem:[%s3694_s20 + $0xd28] sm:$0xff] %v3246_v35  ;;  %3267 = vtanh.f32 %v1129_v27  ;;  %v1150_v27 = vmul.f32 %v3658_v1, %v637_v19  ;;  %v658_v19 = vld [vmem:[%s3651_s8 + $0xed0] sm:$0xff] }
 0x201   : > { %v3250_v41 = vpop.eup %3249  ;;  %2143 = vst [vmem:[%s3694_s20 + $0xd30] sm:$0xff] %v3248_v38  ;;  %3269 = vtanh.f32 %v1130_v30  ;;  %v1151_v30 = vmul.f32 %v3658_v1, %v638_v22  ;;  %v659_v22 = vld [vmem:[%s3651_s8 + $0xed8] sm:$0xff] }
 0x202   : > { %v3252_v44 = vpop.eup %3251  ;;  %2144 = vst [vmem:[%s3694_s20 + $0xd38] sm:$0xff] %v3250_v41  ;;  %3271 = vtanh.f32 %v1131_v33  ;;  %v1152_v33 = vmul.f32 %v3658_v1, %v639_v25  ;;  %v660_v25 = vld [vmem:[%s3651_s8 + $0xee0] sm:$0xff] }
 0x203   : > { %v3254_v47 = vpop.eup %3253  ;;  %2145 = vst [vmem:[%s3694_s20 + $0xd40] sm:$0xff] %v3252_v44  ;;  %3273 = vtanh.f32 %v1132_v36  ;;  %v1153_v36 = vmul.f32 %v3658_v1, %v640_v28  ;;  %v661_v28 = vld [vmem:[%s3651_s8 + $0xee8] sm:$0xff] }
 0x204   : > { %v3256_v50 = vpop.eup %3255  ;;  %2146 = vst [vmem:[%s3694_s20 + $0xd48] sm:$0xff] %v3254_v47  ;;  %3275 = vtanh.f32 %v1133_v39  ;;  %v1154_v39 = vmul.f32 %v3658_v1, %v641_v31  ;;  %v662_v31 = vld [vmem:[%s3651_s8 + $0xef0] sm:$0xff] }
 0x205   : > { %v3258_v53 = vpop.eup %3257  ;;  %2147 = vst [vmem:[%s3694_s20 + $0xd50] sm:$0xff] %v3256_v50  ;;  %3277 = vtanh.f32 %v1134_v42  ;;  %v1155_v42 = vmul.f32 %v3658_v1, %v642_v34  ;;  %v663_v34 = vld [vmem:[%s3651_s8 + $0xef8] sm:$0xff] }
 0x206   : > { %v3260_v56 = vpop.eup %3259  ;;  %2148 = vst [vmem:[%s3694_s20 + $0xd58] sm:$0xff] %v3258_v53  ;;  %3279 = vtanh.f32 %v1135_v45  ;;  %v1156_v45 = vmul.f32 %v3658_v1, %v643_v37  ;;  %v664_v37 = vld [vmem:[%s3651_s8 + $0xf00] sm:$0xff] }
 0x207   : > { %v3262_v59 = vpop.eup %3261  ;;  %2149 = vst [vmem:[%s3694_s20 + $0xd60] sm:$0xff] %v3260_v56  ;;  %3281 = vtanh.f32 %v1136_v48  ;;  %v1157_v48 = vmul.f32 %v3658_v1, %v644_v40  ;;  %v665_v40 = vld [vmem:[%s3651_s8 + $0xf08] sm:$0xff] }
 0x208   : > { %v3264_v62 = vpop.eup %3263  ;;  %2150 = vst [vmem:[%s3694_s20 + $0xd68] sm:$0xff] %v3262_v59  ;;  %3283 = vtanh.f32 %v1137_v51  ;;  %v1158_v51 = vmul.f32 %v3658_v1, %v645_v43  ;;  %v666_v43 = vld [vmem:[%s3651_s8 + $0xf10] sm:$0xff] }
 0x209   : > { %v3266_v2 = vpop.eup %3265  ;;  %2151 = vst [vmem:[%s3694_s20 + $0xd70] sm:$0xff] %v3264_v62  ;;  %3285 = vtanh.f32 %v1138_v54  ;;  %v1159_v54 = vmul.f32 %v3658_v1, %v646_v46  ;;  %v667_v46 = vld [vmem:[%s3651_s8 + $0xf18] sm:$0xff] }
 0x20a   : > { %v3268_v5 = vpop.eup %3267  ;;  %2152 = vst [vmem:[%s3694_s20 + $0xd78] sm:$0xff] %v3266_v2  ;;  %3287 = vtanh.f32 %v1139_v57  ;;  %v1160_v57 = vmul.f32 %v3658_v1, %v647_v49  ;;  %v668_v49 = vld [vmem:[%s3651_s8 + $0xf20] sm:$0xff] }
 0x20b   : > { %v3270_v8 = vpop.eup %3269  ;;  %2153 = vst [vmem:[%s3694_s20 + $0xd80] sm:$0xff] %v3268_v5  ;;  %3289 = vtanh.f32 %v1140_v60  ;;  %v1161_v60 = vmul.f32 %v3658_v1, %v648_v52  ;;  %v669_v52 = vld [vmem:[%s3651_s8 + $0xf28] sm:$0xff] }
 0x20c   : > { %v3272_v11 = vpop.eup %3271  ;;  %2154 = vst [vmem:[%s3694_s20 + $0xd88] sm:$0xff] %v3270_v8  ;;  %3291 = vtanh.f32 %v1141_v63  ;;  %v1162_v63 = vmul.f32 %v3658_v1, %v649_v55  ;;  %v670_v55 = vld [vmem:[%s3651_s8 + $0xf30] sm:$0xff] }
 0x20d   : > { %v3274_v14 = vpop.eup %3273  ;;  %2155 = vst [vmem:[%s3694_s20 + $0xd90] sm:$0xff] %v3272_v11  ;;  %3293 = vtanh.f32 %v1142_v3  ;;  %v1163_v3 = vmul.f32 %v3658_v1, %v650_v58  ;;  %v671_v58 = vld [vmem:[%s3651_s8 + $0xf38] sm:$0xff] }
 0x20e   : > { %v3276_v17 = vpop.eup %3275  ;;  %2156 = vst [vmem:[%s3694_s20 + $0xd98] sm:$0xff] %v3274_v14  ;;  %3295 = vtanh.f32 %v1143_v6  ;;  %v1164_v6 = vmul.f32 %v3658_v1, %v651_v61  ;;  %v672_v61 = vld [vmem:[%s3651_s8 + $0xf40] sm:$0xff] }
 0x20f   : > { %v3278_v20 = vpop.eup %3277  ;;  %2157 = vst [vmem:[%s3694_s20 + $0xda0] sm:$0xff] %v3276_v17  ;;  %3297 = vtanh.f32 %v1144_v9  ;;  %v1165_v9 = vmul.f32 %v3658_v1, %v652_v0  ;;  %v673_v0 = vld [vmem:[%s3651_s8 + $0xf48] sm:$0xff] }
 0x210   : > { %v3280_v23 = vpop.eup %3279  ;;  %2158 = vst [vmem:[%s3694_s20 + $0xda8] sm:$0xff] %v3278_v20  ;;  %3299 = vtanh.f32 %v1145_v12  ;;  %v1166_v12 = vmul.f32 %v3658_v1, %v653_v4  ;;  %v674_v4 = vld [vmem:[%s3651_s8 + $0xf50] sm:$0xff] }
 0x211   : > { %v3282_v26 = vpop.eup %3281  ;;  %2159 = vst [vmem:[%s3694_s20 + $0xdb0] sm:$0xff] %v3280_v23  ;;  %3301 = vtanh.f32 %v1146_v15  ;;  %v1167_v15 = vmul.f32 %v3658_v1, %v654_v7  ;;  %v675_v7 = vld [vmem:[%s3651_s8 + $0xf58] sm:$0xff] }
 0x212   : > { %v3284_v29 = vpop.eup %3283  ;;  %2160 = vst [vmem:[%s3694_s20 + $0xdb8] sm:$0xff] %v3282_v26  ;;  %3303 = vtanh.f32 %v1147_v18  ;;  %v1168_v18 = vmul.f32 %v3658_v1, %v655_v10  ;;  %v676_v10 = vld [vmem:[%s3651_s8 + $0xf60] sm:$0xff] }
 0x213   : > { %v3286_v32 = vpop.eup %3285  ;;  %2161 = vst [vmem:[%s3694_s20 + $0xdc0] sm:$0xff] %v3284_v29  ;;  %3305 = vtanh.f32 %v1148_v21  ;;  %v1169_v21 = vmul.f32 %v3658_v1, %v656_v13  ;;  %v677_v13 = vld [vmem:[%s3651_s8 + $0xf68] sm:$0xff] }
 0x214   : > { %v3288_v35 = vpop.eup %3287  ;;  %2162 = vst [vmem:[%s3694_s20 + $0xdc8] sm:$0xff] %v3286_v32  ;;  %3307 = vtanh.f32 %v1149_v24  ;;  %v1170_v24 = vmul.f32 %v3658_v1, %v657_v16  ;;  %v678_v16 = vld [vmem:[%s3651_s8 + $0xf70] sm:$0xff] }
 0x215   : > { %v3290_v38 = vpop.eup %3289  ;;  %2163 = vst [vmem:[%s3694_s20 + $0xdd0] sm:$0xff] %v3288_v35  ;;  %3309 = vtanh.f32 %v1150_v27  ;;  %v1171_v27 = vmul.f32 %v3658_v1, %v658_v19  ;;  %v679_v19 = vld [vmem:[%s3651_s8 + $0xf78] sm:$0xff] }
 0x216   : > { %v3292_v41 = vpop.eup %3291  ;;  %2164 = vst [vmem:[%s3694_s20 + $0xdd8] sm:$0xff] %v3290_v38  ;;  %3311 = vtanh.f32 %v1151_v30  ;;  %v1172_v30 = vmul.f32 %v3658_v1, %v659_v22  ;;  %v680_v22 = vld [vmem:[%s3651_s8 + $0xf80] sm:$0xff] }
 0x217   : > { %v3294_v44 = vpop.eup %3293  ;;  %2165 = vst [vmem:[%s3694_s20 + $0xde0] sm:$0xff] %v3292_v41  ;;  %3313 = vtanh.f32 %v1152_v33  ;;  %v1173_v33 = vmul.f32 %v3658_v1, %v660_v25  ;;  %v681_v25 = vld [vmem:[%s3651_s8 + $0xf88] sm:$0xff] }
 0x218   : > { %v3296_v47 = vpop.eup %3295  ;;  %2166 = vst [vmem:[%s3694_s20 + $0xde8] sm:$0xff] %v3294_v44  ;;  %3315 = vtanh.f32 %v1153_v36  ;;  %v1174_v36 = vmul.f32 %v3658_v1, %v661_v28  ;;  %v682_v28 = vld [vmem:[%s3651_s8 + $0xf90] sm:$0xff] }
 0x219   : > { %v3298_v50 = vpop.eup %3297  ;;  %2167 = vst [vmem:[%s3694_s20 + $0xdf0] sm:$0xff] %v3296_v47  ;;  %3317 = vtanh.f32 %v1154_v39  ;;  %v1175_v39 = vmul.f32 %v3658_v1, %v662_v31  ;;  %v683_v31 = vld [vmem:[%s3651_s8 + $0xf98] sm:$0xff] }
 0x21a   : > { %v3300_v53 = vpop.eup %3299  ;;  %2168 = vst [vmem:[%s3694_s20 + $0xdf8] sm:$0xff] %v3298_v50  ;;  %3319 = vtanh.f32 %v1155_v42  ;;  %v1176_v42 = vmul.f32 %v3658_v1, %v663_v34  ;;  %v684_v34 = vld [vmem:[%s3651_s8 + $0xfa0] sm:$0xff] }
 0x21b   : > { %v3302_v56 = vpop.eup %3301  ;;  %2169 = vst [vmem:[%s3694_s20 + $0xe00] sm:$0xff] %v3300_v53  ;;  %3321 = vtanh.f32 %v1156_v45  ;;  %v1177_v45 = vmul.f32 %v3658_v1, %v664_v37  ;;  %v685_v37 = vld [vmem:[%s3651_s8 + $0xfa8] sm:$0xff] }
 0x21c   : > { %v3304_v59 = vpop.eup %3303  ;;  %2170 = vst [vmem:[%s3694_s20 + $0xe08] sm:$0xff] %v3302_v56  ;;  %3323 = vtanh.f32 %v1157_v48  ;;  %v1178_v48 = vmul.f32 %v3658_v1, %v665_v40  ;;  %v686_v40 = vld [vmem:[%s3651_s8 + $0xfb0] sm:$0xff] }
 0x21d   : > { %v3306_v62 = vpop.eup %3305  ;;  %2171 = vst [vmem:[%s3694_s20 + $0xe10] sm:$0xff] %v3304_v59  ;;  %3325 = vtanh.f32 %v1158_v51  ;;  %v1179_v51 = vmul.f32 %v3658_v1, %v666_v43  ;;  %v687_v43 = vld [vmem:[%s3651_s8 + $0xfb8] sm:$0xff] }
 0x21e   : > { %v3308_v2 = vpop.eup %3307  ;;  %2172 = vst [vmem:[%s3694_s20 + $0xe18] sm:$0xff] %v3306_v62  ;;  %3327 = vtanh.f32 %v1159_v54  ;;  %v1180_v54 = vmul.f32 %v3658_v1, %v667_v46  ;;  %v688_v46 = vld [vmem:[%s3651_s8 + $0xfc0] sm:$0xff] }
 0x21f   : > { %v3310_v5 = vpop.eup %3309  ;;  %2173 = vst [vmem:[%s3694_s20 + $0xe20] sm:$0xff] %v3308_v2  ;;  %3329 = vtanh.f32 %v1160_v57  ;;  %v1181_v57 = vmul.f32 %v3658_v1, %v668_v49  ;;  %v689_v49 = vld [vmem:[%s3651_s8 + $0xfc8] sm:$0xff] }
 0x220   : > { %v3312_v8 = vpop.eup %3311  ;;  %2174 = vst [vmem:[%s3694_s20 + $0xe28] sm:$0xff] %v3310_v5  ;;  %3331 = vtanh.f32 %v1161_v60  ;;  %v1182_v60 = vmul.f32 %v3658_v1, %v669_v52  ;;  %v690_v52 = vld [vmem:[%s3651_s8 + $0xfd0] sm:$0xff] }
 0x221   : > { %v3314_v11 = vpop.eup %3313  ;;  %2175 = vst [vmem:[%s3694_s20 + $0xe30] sm:$0xff] %v3312_v8  ;;  %3333 = vtanh.f32 %v1162_v63  ;;  %v1183_v63 = vmul.f32 %v3658_v1, %v670_v55  ;;  %v691_v55 = vld [vmem:[%s3651_s8 + $0xfd8] sm:$0xff] }
 0x222   : > { %v3316_v14 = vpop.eup %3315  ;;  %2176 = vst [vmem:[%s3694_s20 + $0xe38] sm:$0xff] %v3314_v11  ;;  %3335 = vtanh.f32 %v1163_v3  ;;  %v1184_v3 = vmul.f32 %v3658_v1, %v671_v58  ;;  %v692_v58 = vld [vmem:[%s3651_s8 + $0xfe0] sm:$0xff] }
 0x223   : > { %v3318_v17 = vpop.eup %3317  ;;  %2177 = vst [vmem:[%s3694_s20 + $0xe40] sm:$0xff] %v3316_v14  ;;  %3337 = vtanh.f32 %v1164_v6  ;;  %v1185_v6 = vmul.f32 %v3658_v1, %v672_v61  ;;  %v693_v61 = vld [vmem:[%s3651_s8 + $0xfe8] sm:$0xff] }
 0x224   : > { %v3320_v20 = vpop.eup %3319  ;;  %2178 = vst [vmem:[%s3694_s20 + $0xe48] sm:$0xff] %v3318_v17  ;;  %3339 = vtanh.f32 %v1165_v9  ;;  %v1186_v9 = vmul.f32 %v3658_v1, %v673_v0  ;;  %v694_v0 = vld [vmem:[%s3651_s8 + $0xff0] sm:$0xff] }
 0x225   : > { %v3322_v23 = vpop.eup %3321  ;;  %2179 = vst [vmem:[%s3694_s20 + $0xe50] sm:$0xff] %v3320_v20  ;;  %3341 = vtanh.f32 %v1166_v12  ;;  %v1187_v12 = vmul.f32 %v3658_v1, %v674_v4  ;;  %v695_v4 = vld [vmem:[%s3651_s8 + $0xff8] sm:$0xff] }
 0x226   : > { %v3324_v26 = vpop.eup %3323  ;;  %2180 = vst [vmem:[%s3694_s20 + $0xe58] sm:$0xff] %v3322_v23  ;;  %3343 = vtanh.f32 %v1167_v15  ;;  %v1188_v15 = vmul.f32 %v3658_v1, %v675_v7 }
 0x227   : > { %v3326_v29 = vpop.eup %3325  ;;  %2181 = vst [vmem:[%s3694_s20 + $0xe60] sm:$0xff] %v3324_v26  ;;  %3345 = vtanh.f32 %v1168_v18  ;;  %v1189_v18 = vmul.f32 %v3658_v1, %v676_v10  ;;  %v1208_v10 = vmul.f32 %v3658_v1, %v695_v4 }
 0x228   : > { %v3328_v32 = vpop.eup %3327  ;;  %2182 = vst [vmem:[%s3694_s20 + $0xe68] sm:$0xff] %v3326_v29  ;;  %3347 = vtanh.f32 %v1169_v21  ;;  %v1190_v21 = vmul.f32 %v3658_v1, %v677_v13 }
 0x229   : > { %v3330_v35 = vpop.eup %3329  ;;  %2183 = vst [vmem:[%s3694_s20 + $0xe70] sm:$0xff] %v3328_v32  ;;  %3349 = vtanh.f32 %v1170_v24  ;;  %v1191_v24 = vmul.f32 %v3658_v1, %v678_v16 }
 0x22a   : > { %v3332_v38 = vpop.eup %3331  ;;  %2184 = vst [vmem:[%s3694_s20 + $0xe78] sm:$0xff] %v3330_v35  ;;  %3351 = vtanh.f32 %v1171_v27  ;;  %v1192_v27 = vmul.f32 %v3658_v1, %v679_v19 }
 0x22b   : > { %v3334_v41 = vpop.eup %3333  ;;  %2185 = vst [vmem:[%s3694_s20 + $0xe80] sm:$0xff] %v3332_v38  ;;  %3353 = vtanh.f32 %v1172_v30  ;;  %v1193_v30 = vmul.f32 %v3658_v1, %v680_v22 }
 0x22c   : > { %v3336_v44 = vpop.eup %3335  ;;  %2186 = vst [vmem:[%s3694_s20 + $0xe88] sm:$0xff] %v3334_v41  ;;  %3355 = vtanh.f32 %v1173_v33  ;;  %v1194_v33 = vmul.f32 %v3658_v1, %v681_v25 }
 0x22d   : > { %v3338_v47 = vpop.eup %3337  ;;  %2187 = vst [vmem:[%s3694_s20 + $0xe90] sm:$0xff] %v3336_v44  ;;  %3357 = vtanh.f32 %v1174_v36  ;;  %v1195_v36 = vmul.f32 %v3658_v1, %v682_v28 }
 0x22e   : > { %v3340_v50 = vpop.eup %3339  ;;  %2188 = vst [vmem:[%s3694_s20 + $0xe98] sm:$0xff] %v3338_v47  ;;  %3359 = vtanh.f32 %v1175_v39  ;;  %v1196_v39 = vmul.f32 %v3658_v1, %v683_v31 }
 0x22f   : > { %v3342_v53 = vpop.eup %3341  ;;  %2189 = vst [vmem:[%s3694_s20 + $0xea0] sm:$0xff] %v3340_v50  ;;  %3361 = vtanh.f32 %v1176_v42  ;;  %v1197_v42 = vmul.f32 %v3658_v1, %v684_v34 }
 0x230   : > { %v3344_v56 = vpop.eup %3343  ;;  %2190 = vst [vmem:[%s3694_s20 + $0xea8] sm:$0xff] %v3342_v53  ;;  %3363 = vtanh.f32 %v1177_v45  ;;  %v1198_v45 = vmul.f32 %v3658_v1, %v685_v37 }
 0x231   : > { %v3346_v59 = vpop.eup %3345  ;;  %2191 = vst [vmem:[%s3694_s20 + $0xeb0] sm:$0xff] %v3344_v56  ;;  %3365 = vtanh.f32 %v1178_v48  ;;  %v1199_v48 = vmul.f32 %v3658_v1, %v686_v40 }
 0x232   : > { %v3348_v62 = vpop.eup %3347  ;;  %2192 = vst [vmem:[%s3694_s20 + $0xeb8] sm:$0xff] %v3346_v59  ;;  %3367 = vtanh.f32 %v1179_v51  ;;  %v1200_v51 = vmul.f32 %v3658_v1, %v687_v43 }
 0x233   : > { %v3350_v2 = vpop.eup %3349  ;;  %2193 = vst [vmem:[%s3694_s20 + $0xec0] sm:$0xff] %v3348_v62  ;;  %3369 = vtanh.f32 %v1180_v54  ;;  %v1201_v54 = vmul.f32 %v3658_v1, %v688_v46 }
 0x234   : > { %v3352_v5 = vpop.eup %3351  ;;  %2194 = vst [vmem:[%s3694_s20 + $0xec8] sm:$0xff] %v3350_v2  ;;  %3371 = vtanh.f32 %v1181_v57  ;;  %v1202_v57 = vmul.f32 %v3658_v1, %v689_v49 }
 0x235   : > { %v3354_v8 = vpop.eup %3353  ;;  %2195 = vst [vmem:[%s3694_s20 + $0xed0] sm:$0xff] %v3352_v5  ;;  %3373 = vtanh.f32 %v1182_v60  ;;  %v1203_v60 = vmul.f32 %v3658_v1, %v690_v52 }
 0x236   : > { %v3356_v11 = vpop.eup %3355  ;;  %2196 = vst [vmem:[%s3694_s20 + $0xed8] sm:$0xff] %v3354_v8  ;;  %3375 = vtanh.f32 %v1183_v63  ;;  %v1204_v63 = vmul.f32 %v3658_v1, %v691_v55  ;;  %v1207_v8 = vmul.f32 %v3658_v1, %v694_v0 }
 0x237   : > { %v3358_v14 = vpop.eup %3357  ;;  %2197 = vst [vmem:[%s3694_s20 + $0xee0] sm:$0xff] %v3356_v11  ;;  %3377 = vtanh.f32 %v1184_v3  ;;  %v1205_v3 = vmul.f32 %v3658_v1, %v692_v58 }
 0x238   : > { %v3360_v17 = vpop.eup %3359  ;;  %2198 = vst [vmem:[%s3694_s20 + $0xee8] sm:$0xff] %v3358_v14  ;;  %3379 = vtanh.f32 %v1185_v6  ;;  %v1206_v6 = vmul.f32 %v3658_v1, %v693_v61 }
 0x239   : > { %v3362_v20 = vpop.eup %3361  ;;  %2199 = vst [vmem:[%s3694_s20 + $0xef0] sm:$0xff] %v3360_v17  ;;  %3381 = vtanh.f32 %v1186_v9 }
 0x23a   : > { %v3364_v23 = vpop.eup %3363  ;;  %2200 = vst [vmem:[%s3694_s20 + $0xef8] sm:$0xff] %v3362_v20  ;;  %3383 = vtanh.f32 %v1187_v12 }
 0x23b   : > { %v3366_v26 = vpop.eup %3365  ;;  %2201 = vst [vmem:[%s3694_s20 + $0xf00] sm:$0xff] %v3364_v23  ;;  %3385 = vtanh.f32 %v1188_v15 }
 0x23c   : > { %v3368_v29 = vpop.eup %3367  ;;  %2202 = vst [vmem:[%s3694_s20 + $0xf08] sm:$0xff] %v3366_v26  ;;  %3387 = vtanh.f32 %v1189_v18 }
 0x23d   : > { %v3370_v32 = vpop.eup %3369  ;;  %2203 = vst [vmem:[%s3694_s20 + $0xf10] sm:$0xff] %v3368_v29  ;;  %3389 = vtanh.f32 %v1190_v21 }
 0x23e   : > { %v3372_v35 = vpop.eup %3371  ;;  %2204 = vst [vmem:[%s3694_s20 + $0xf18] sm:$0xff] %v3370_v32  ;;  %3391 = vtanh.f32 %v1191_v24 }
 0x23f   : > { %v3374_v38 = vpop.eup %3373  ;;  %2205 = vst [vmem:[%s3694_s20 + $0xf20] sm:$0xff] %v3372_v35  ;;  %3393 = vtanh.f32 %v1192_v27 }
 0x240   : > { %v3376_v41 = vpop.eup %3375  ;;  %2206 = vst [vmem:[%s3694_s20 + $0xf28] sm:$0xff] %v3374_v38  ;;  %3395 = vtanh.f32 %v1193_v30 }
 0x241   : > { %v3378_v44 = vpop.eup %3377  ;;  %2207 = vst [vmem:[%s3694_s20 + $0xf30] sm:$0xff] %v3376_v41  ;;  %3397 = vtanh.f32 %v1194_v33 }
 0x242   : > { %v3380_v47 = vpop.eup %3379  ;;  %2208 = vst [vmem:[%s3694_s20 + $0xf38] sm:$0xff] %v3378_v44  ;;  %3399 = vtanh.f32 %v1195_v36 }
 0x243   : > { %v3382_v50 = vpop.eup %3381  ;;  %2209 = vst [vmem:[%s3694_s20 + $0xf40] sm:$0xff] %v3380_v47  ;;  %3401 = vtanh.f32 %v1196_v39 }
 0x244   : > { %v3384_v53 = vpop.eup %3383  ;;  %2210 = vst [vmem:[%s3694_s20 + $0xf48] sm:$0xff] %v3382_v50  ;;  %3403 = vtanh.f32 %v1197_v42 }
 0x245   : > { %v3386_v56 = vpop.eup %3385  ;;  %2211 = vst [vmem:[%s3694_s20 + $0xf50] sm:$0xff] %v3384_v53  ;;  %3405 = vtanh.f32 %v1198_v45 }
 0x246   : > { %v3388_v59 = vpop.eup %3387  ;;  %2212 = vst [vmem:[%s3694_s20 + $0xf58] sm:$0xff] %v3386_v56  ;;  %3407 = vtanh.f32 %v1199_v48 }
 0x247   : > { %v3390_v62 = vpop.eup %3389  ;;  %2213 = vst [vmem:[%s3694_s20 + $0xf60] sm:$0xff] %v3388_v59  ;;  %3409 = vtanh.f32 %v1200_v51 }
 0x248   : > { %v3392_v2 = vpop.eup %3391  ;;  %2214 = vst [vmem:[%s3694_s20 + $0xf68] sm:$0xff] %v3390_v62  ;;  %3411 = vtanh.f32 %v1201_v54 }
 0x249   : > { %v3394_v5 = vpop.eup %3393  ;;  %2215 = vst [vmem:[%s3694_s20 + $0xf70] sm:$0xff] %v3392_v2  ;;  %3413 = vtanh.f32 %v1202_v57 }
 0x24a   : > { %v3396_v7 = vpop.eup %3395  ;;  %2216 = vst [vmem:[%s3694_s20 + $0xf78] sm:$0xff] %v3394_v5  ;;  %3415 = vtanh.f32 %v1203_v60 }
 0x24b   : > { %v3398_v9 = vpop.eup %3397  ;;  %2217 = vst [vmem:[%s3694_s20 + $0xf80] sm:$0xff] %v3396_v7  ;;  %3417 = vtanh.f32 %v1204_v63 }
 0x24c   : > { %v3400_v11 = vpop.eup %3399  ;;  %2218 = vst [vmem:[%s3694_s20 + $0xf88] sm:$0xff] %v3398_v9  ;;  %3419 = vtanh.f32 %v1205_v3 }
 0x24d   : > { %v3402_v12 = vpop.eup %3401  ;;  %2219 = vst [vmem:[%s3694_s20 + $0xf90] sm:$0xff] %v3400_v11  ;;  %3421 = vtanh.f32 %v1206_v6 }
 0x24e   : > { %v3404_v13 = vpop.eup %3403  ;;  %2220 = vst [vmem:[%s3694_s20 + $0xf98] sm:$0xff] %v3402_v12  ;;  %3423 = vtanh.f32 %v1207_v8 }
 0x24f   : > { %v3406_v14 = vpop.eup %3405  ;;  %2221 = vst [vmem:[%s3694_s20 + $0xfa0] sm:$0xff] %v3404_v13  ;;  %3425 = vtanh.f32 %v1208_v10 }
 0x250   : > { %v3408_v1 = vpop.eup %3407  ;;  %2222 = vst [vmem:[%s3694_s20 + $0xfa8] sm:$0xff] %v3406_v14 }
 0x251   : > { %v3410_v15 = vpop.eup %3409  ;;  %2223 = vst [vmem:[%s3694_s20 + $0xfb0] sm:$0xff] %v3408_v1 }
 0x252   : > { %v3412_v16 = vpop.eup %3411  ;;  %2224 = vst [vmem:[%s3694_s20 + $0xfb8] sm:$0xff] %v3410_v15 }
 0x253   : > { %v3414_v17 = vpop.eup %3413  ;;  %2225 = vst [vmem:[%s3694_s20 + $0xfc0] sm:$0xff] %v3412_v16 }
 0x254   : > { %v3416_v18 = vpop.eup %3415  ;;  %2226 = vst [vmem:[%s3694_s20 + $0xfc8] sm:$0xff] %v3414_v17  ;;  %2240 = sbr.rel (!%p3591_p9) target bundleno = 631 (0x277), region = 36 }
 0x255   : > { %v3418_v19 = vpop.eup %3417  ;;  %2227 = vst [vmem:[%s3694_s20 + $0xfd0] sm:$0xff] %v3416_v18 }
 0x256   : > { %v3420_v20 = vpop.eup %3419  ;;  %2228 = vst [vmem:[%s3694_s20 + $0xfd8] sm:$0xff] %v3418_v19 }
 0x257   : > { %v3422_v21 = vpop.eup %3421  ;;  %2229 = vst [vmem:[%s3694_s20 + $0xfe0] sm:$0xff] %v3420_v20 }
 0x258   : > { %v3424_v22 = vpop.eup %3423  ;;  %2230 = vst [vmem:[%s3694_s20 + $0xfe8] sm:$0xff] %v3422_v21 }
 0x259   : > { %v3426_v23 = vpop.eup %3425  ;;  %2231 = vst [vmem:[%s3694_s20 + $0xff0] sm:$0xff] %v3424_v22 }
 0x25a   : > { %2232 = vst [vmem:[%s3694_s20 + $0xff8] sm:$0xff] %v3426_v23 }
 0x25b   : > { %s5275_s7 = smov (!%p2243_p6, %s2242_s7), 64 }
 0x25c   : > { %s5203_s9 = sshll.u32 %s5275_s7, 10 }
 0x25d   : > { %s2248_s10 = ssub.s32 65536, %s5203_s9 }
 0x25e   : > { %2249 = vsyncadd %s2234_s29, %s2248_s10  ;;  %p2347_p10 = scmp.ne.s32.totalorder %s5203_s9, 0  ;;  %s2359_s21 = sshll.u32 %s3568_s0, 16 }
 0x25f   : > { %s5213_s18 = scalar_lea.hbm %s5263_s2, %s2359_s21  ;;  %s2255_s23 = sshll.u32 %s3694_s20, 4  ;;  %s5216_s23 = int_to_ptr.vmem [resolvable:$true] %s2255_s23 }
 0x260   : > { %s3455_s24 = scalar_lea.vmem %s5216_s23, %s5203_s9  ;;  %s3526_s25 = smov [#allocation6]  }
 0x261   : > { %p3456_p9 = scmp.ne.s32.totalorder %s5216_s23, %s3455_s24  ;;  %s3459_s26 = sshll.u32 %s3526_s25, 4  ;;  %s3460_s26 = int_to_ptr.vmem [resolvable:$false] %s3459_s26 }
 0x262   : > { %s3461_s0 = scalar_lea.vmem %s3460_s26, 131072  ;;  %p3462_p12 = scmp.lt.s32.totalorder %s5216_s23, %s3460_s26 }
 0x263   : > { %p3457_p13 = pnand %p3456_p9, %p2347_p10  ;;  %p3463_p0 = scmp.lt.s32.totalorder %s3461_s0, %s3455_s24 }
 0x265   : > { %p3458_p11 = pneg %p3457_p13  ;;  %p3464_p1 = por %p3463_p0, %p3462_p12 }
 0x267   : > { %p3465_p3 = pnand %p3464_p1, %p3458_p11 }
 0x269   : > { %3468 = shalt.err (!%p3465_p3)
}
 0x26a   : > { %s3469_s28 = scalar_lea.hbm %s5213_s18, %s5203_s9  ;;  %s3473_s5 = scalar_lea.hbm %s5263_s2, 132096 }
 0x26b   : > { %p3470_p4 = scmp.ne.s32.totalorder %s5213_s18, %s3469_s28  ;;  %p3474_p7 = scmp.lt.u32.totalorder %s5213_s18, %s5263_s2 }
 0x26c   : > { %p3475_p8 = scmp.lt.u32.totalorder %s3473_s5, %s3469_s28  ;;  %p3477_p9 = scmp.lt.u32.totalorder %s3469_s28, %s5213_s18 }
 0x26d   : > { %p3471_p5 = pnand %p3470_p4, %p2347_p10 }
 0x26e   : > { %p3476_p6 = por %p3475_p8, %p3474_p7 }
 0x26f   : > { %p3472_p2 = pneg %p3471_p5 }
 0x270   : > { %p3478_p13 = por %p3477_p9, %p3476_p6 }
 0x272   : > { %p3479_p11 = pnand %p3478_p13, %p3472_p2 }
 0x274   : > { %3482 = shalt.err (!%p3479_p11)
}
 0x275   : > { %s3527_s20 = smov 1024   ;;  %s3528_s6 = smov 64  }
 0x276   : > { %2261 = dma.vmem_to_hbm [thread:$0]  (%p2347_p10), %s5216_s23, %s5203_s9, %s5213_s18, %s2234_s29, %s3527_s20, %s3527_s20, %s3528_s6  }
 0x277 PF: > { %p2366_p12 = scmp.ge.s32.totalorder %s3521_s14, 2  ;;  %s2270_s7 = sand.u32 1, %s3509_s11  }
 0x278   : > { %p5267_p0 = scmp.ne.s32.totalorder %s5266_s22, 0  ;;  %s2271_s10 = scalar_lea.sflag [#allocation5], %s2270_s7 }
 0x27a   : > { %p2363_p1 = pnand %p2366_p12, %p5267_p0 }
 0x27c   : > { %3504 = dma.done.wait (!%p2363_p1), %s2271_s10, 65536  }
 0x27d   : > { %3506 = vsyncadd (!%p2363_p1), %s2271_s10, 4294901760  ;;  %p16_p3 = scmp.ge.s32.totalorder %s3572_s16, 5   ;;  %s5268_s11 = smov %s3513_s12 }
 0x27e   : > { %s5269_s12 = smov %s3517_s13  ;;  %s5270_s13 = smov %s3584_s19 }
 0x27f   : > { %s5271_s14 = smov %s3572_s16  ;;  %18 = sbr.rel (!%p16_p3) target bundleno = 7 (0x7), region = 73 }
 0x286   :  { %2276 = vsyncpa [#allocation4], 1 }
 0x287   :  { %2278 = vsyncpa [#allocation4 + $0x1], 1 }
 0x288   :  { %2279 = vsyncpa [#allocation5], 1 }
 0x289   :  { %2281 = vsyncpa [#allocation5 + $0x1], 1 }

</bundles_post_ra>
